<compile_context>
chip_gen: v6e
topology: v6e:2x2x1
jax: 0.10.0
libtpu: 0.0.40
codegen_flags: <defaults>
</compile_context>

<pallas_src>
import numpy as np
import jax
import jax.numpy as jnp
from jax.experimental import pallas as pl
from jax.experimental.pallas import tpu as pltpu


# ----------------------------- Pallas kernel --------------------------------
def make_psa_kernel(K, Cin, Cout, Csplit, Wp, Nout, inv_hw):
    """Per-batch kernel: shifted-slice convolution + shared-SE attention."""

    def kernel(x_ref, w_ref, mask_ref, fc1wT_ref, fc1b_ref, fc2w_ref, fc2b_ref,
               out_ref):
        # x_ref   : (Cin, Lin)        bf16  padded image, rows flattened (Hp*Wp + tail)
        # w_ref   : (K, Cout, K*Cin)  bf16  dense zero-embedded weight, kh-major,
        #                                   (kw, cin) contraction order, output
        #                                   channels in reversed-branch order
        # mask_ref: (1, Nout)         f32   1.0 on valid (w < W) output columns
        # fc1wT   : (Cs, hidden) f32 ; fc1b : (1, hidden)   shared-SE params
        # fc2w    : (Cs, hidden) f32 ; fc2b : (Cs, 1)
        # out_ref : (Cout, Nout)      f32   conv output, accumulated in place

        # ---- convolution: K row-grouped matmuls, K*Cin-deep contraction ----
        for kh in range(K):
            base = kh * Wp
            cols = jnp.concatenate(
                [x_ref[:, base + kw: base + kw + Nout] for kw in range(K)],
                axis=0)                                      # (K*Cin, Nout) bf16
            contrib = jnp.dot(w_ref[kh], cols,
                              preferred_element_type=jnp.float32)  # (Cout, Nout)
            if kh == 0:
                out_ref[...] = contrib
            else:
                out_ref[...] += contrib

        # ---- SE epilogue (shared weights), branch block by branch block ----
        mask = mask_ref[...]                                 # (1, Nout)
        fc1wT = fc1wT_ref[...]                               # (Cs, hidden)
        fc1b = fc1b_ref[...]                                 # (1, hidden)
        fc2w = fc2w_ref[...]                                 # (Cs, hidden)
        fc2b = fc2b_ref[...]                                 # (Cs, 1)

        ses = []
        for q in range(4):
            blk = out_ref[q * Csplit:(q + 1) * Csplit, :]    # (Cs, Nout)
            # Global average pool over the valid spatial positions only.
            p_q = jnp.sum(blk * mask, axis=1, keepdims=True) * inv_hw   # (Cs, 1)
            h_q = jnp.sum(p_q * fc1wT, axis=0, keepdims=True) + fc1b
            h_q = jnp.maximum(h_q, 0.0)                      # (1, hidden)
            s_q = jnp.sum(h_q * fc2w, axis=1, keepdims=True) + fc2b
            ses.append(jax.nn.sigmoid(s_q))                  # (Cs, 1)

        # Per-channel softmax over the 4 branches (EUP approx reciprocal).
        m = jnp.maximum(jnp.maximum(ses[0], ses[1]),
                        jnp.maximum(ses[2], ses[3]))
        e = [jnp.exp(s - m) for s in ses]
        inv = pl.reciprocal(e[0] + e[1] + e[2] + e[3], approx=True)

        # Attention scaling in place (branch reversal already in the weights).
        for q in range(4):
            att_q = e[q] * inv                               # (Cs, 1)
            sl = slice(q * Csplit, (q + 1) * Csplit)
            out_ref[sl, :] = out_ref[sl, :] * att_q

    return kernel


# ------------------------------- wrapper -------------------------------------
def psa_module_pallas(x_nchw, w_dense_rev, fc1_w, fc1_b, fc2_w, fc2_b, K=9):
    """w_dense_rev: (K, K, Cin, Cout) dense HWIO weight whose output channels
    are already ordered [branch3 | branch2 | branch1 | branch0]."""
    B, Cin, H, W = x_nchw.shape
    Cout = w_dense_rev.shape[-1]
    Csplit = Cout // 4
    hidden = fc1_w.shape[0]
    pad = K // 2
    Hp, Wp = H + 2 * pad, W + 2 * pad
    Nout = H * Wp                                  # output cols incl. W-padding
    Lin = -(-(Hp * Wp + K - 1) // 128) * 128       # tail keeps all shifts in-bounds

    # ---- input: bf16 cast + spatial zero-pad + flatten (NO im2col) ----
    xb = x_nchw.astype(jnp.bfloat16)
    xp = jnp.pad(xb, ((0, 0), (0, 0), (pad, pad), (pad, pad)))
    xf = xp.reshape(B, Cin, Hp * Wp)
    xf = jnp.pad(xf, ((0, 0), (0, 0), (0, Lin - Hp * Wp)))   # (B, Cin, Lin)

    # ---- weight: (K,K,Cin,Cout) HWIO -> (K, Cout, K*Cin), bf16, kh-major ----
    w_k = jnp.transpose(w_dense_rev, (0, 3, 1, 2)).reshape(K, Cout, K * Cin)
    w_k = w_k.astype(jnp.bfloat16)

    # ---- valid-column mask (w < W) for the pooled mean ----
    mask = jnp.asarray((np.arange(Nout) % Wp < W)
                       .astype(np.float32).reshape(1, Nout))

    # ---- small SE params (f32) ----
    fc1wT_k = jnp.asarray(fc1_w, jnp.float32).reshape(hidden, Csplit).T
    fc1b_k = jnp.asarray(fc1_b, jnp.float32).reshape(1, hidden)
    fc2w_k = jnp.asarray(fc2_w, jnp.float32).reshape(Csplit, hidden)
    fc2b_k = jnp.asarray(fc2_b, jnp.float32).reshape(Csplit, 1)

    # Explicit scoped-VMEM budget from the actual block sizes (+ headroom).
    x_blk = Cin * Lin * 2
    w_blk = K * Cout * K * Cin * 2
    o_blk = Cout * Nout * 4
    vmem_limit = int(min(100 << 20, 2 * x_blk + w_blk + 2 * o_blk + (16 << 20)))

    grid_spec = pltpu.PrefetchScalarGridSpec(
        num_scalar_prefetch=0,
        grid=(B,),
        in_specs=[
            pl.BlockSpec((None, Cin, Lin), lambda b: (b, 0, 0)),       # image
            pl.BlockSpec((K, Cout, K * Cin), lambda b: (0, 0, 0)),     # weight (resident)
            pl.BlockSpec((1, Nout), lambda b: (0, 0)),                 # mask
            pl.BlockSpec((Csplit, hidden), lambda b: (0, 0)),
            pl.BlockSpec((1, hidden), lambda b: (0, 0)),
            pl.BlockSpec((Csplit, hidden), lambda b: (0, 0)),
            pl.BlockSpec((Csplit, 1), lambda b: (0, 0)),
        ],
        out_specs=pl.BlockSpec((None, Cout, Nout), lambda b: (b, 0, 0)),
    )

    out = pl.pallas_call(
        make_psa_kernel(K, Cin, Cout, Csplit, Wp, Nout, 1.0 / float(H * W)),
        out_shape=jax.ShapeDtypeStruct((B, Cout, Nout), jnp.float32),
        grid_spec=grid_spec,
        compiler_params=pltpu.CompilerParams(
            dimension_semantics=("parallel",),
            vmem_limit_bytes=vmem_limit),
    )(xf, w_k, mask, fc1wT_k, fc1b_k, fc2w_k, fc2b_k)

    # (B, Cout, H*Wp) -> (B, Cout, H, W): drop the horizontal-padding columns.
    return out.reshape(B, Cout, H, Wp)[:, :, :, :W]


# ------------------------ parameter construction ----------------------------
def grouped_to_dense_hwio(w_oihw, cin, groups, K):
    """Embed a grouped (O, cin/groups, k, k) kernel into a dense HWIO KxK kernel."""
    w = np.asarray(w_oihw, np.float32)
    O, ig, k, _ = w.shape
    og = O // groups
    dense = np.zeros((K, K, cin, O), np.float32)
    off = (K - k) // 2
    for g in range(groups):
        for oo in range(og):
            o = g * og + oo
            for ii in range(ig):
                dense[off:off + k, off:off + k, g * ig + ii, o] = w[o, ii]
    return dense


# ------------------------------ pure-JAX reference ---------------------------
def reference_forward(x_nchw, conv_ws, conv_defs, fc1_w, fc1_b, fc2_w, fc2_b):
    branches = []
    for w, (k, g) in zip(conv_ws, conv_defs):
        y = jax.lax.conv_general_dilated(
            x_nchw, w, window_strides=(1, 1),
            padding=[(k // 2, k // 2), (k // 2, k // 2)],
            dimension_numbers=('NCHW', 'OIHW', 'NCHW'),
            feature_group_count=g,
            precision=jax.lax.Precision.HIGHEST)
        branches.append(y)
    feats = jnp.stack(branches, axis=1)                     # (B, 4, Cs, H, W)

    def se(xi):
        p = jnp.mean(xi, axis=(2, 3))                       # (B, Cs)
        h = jnp.maximum(p @ fc1_w.T + fc1_b, 0.0)           # (B, hidden)
        return jax.nn.sigmoid(h @ fc2_w.T + fc2_b)          # (B, Cs)

    ses = jnp.stack([se(b) for b in branches], axis=1)      # (B, 4, Cs)
    att = jax.nn.softmax(ses, axis=1)[:, :, :, None, None]  # (B, 4, Cs, 1, 1)
    fw = feats * att
    # PyTorch loop concatenates branches in reversed order along channels.
    return jnp.concatenate([fw[:, 3], fw[:, 2], fw[:, 1], fw[:, 0]], axis=1)


# ---------------------------------- main -------------------------------------
if __name__ == "__main__":
    B, inplanes, planes, H, W = 2, 16, 64, 16, 16
    Csplit = planes // 4                      # 16
    reduction = 16                            # SE hidden = Csplit // 16 = 1
    K = 9
    conv_defs = [(3, 1), (5, 4), (7, 8), (9, 16)]   # (kernel, groups)

    key = jax.random.PRNGKey(0)
    keys = jax.random.split(key, 9)

    conv_ws = []
    for i, (k, g) in enumerate(conv_defs):
        w = 0.1 * jax.random.normal(keys[i], (Csplit, inplanes // g, k, k),
                                    jnp.float32)
        conv_ws.append(w)

    hidden = Csplit // reduction              # = 1
    fc1_w = 0.2 * jax.random.normal(keys[4], (hidden, Csplit), jnp.float32)
    fc1_b = 0.1 * jax.random.normal(keys[5], (hidden,), jnp.float32)
    fc2_w = 0.2 * jax.random.normal(keys[6], (Csplit, hidden), jnp.float32)
    fc2_b = 0.1 * jax.random.normal(keys[7], (Csplit,), jnp.float32)

    x = jax.random.normal(keys[8], (B, inplanes, H, W), jnp.float32)

    # Dense zero-embedded HWIO weight for all 4 branches, with output channels
    # pre-ordered in PyTorch's reversed-branch concat order [b3|b2|b1|b0].
    dense_branches = [grouped_to_dense_hwio(w, inplanes, g, K)
                      for w, (k, g) in zip(conv_ws, conv_defs)]
    w_dense_rev = jnp.asarray(np.concatenate(dense_branches[::-1], axis=-1))

    @jax.jit
    def run(xx, ww, a, b, c, d):
        return psa_module_pallas(xx, ww, a, b, c, d, K=K)

    out_kernel = jax.block_until_ready(
        run(x, w_dense_rev, fc1_w, fc1_b, fc2_w, fc2_b))

    out_ref = jax.block_until_ready(
        reference_forward(x, conv_ws, conv_defs, fc1_w, fc1_b, fc2_w, fc2_b))

    # bf16 operands with f32 accumulation vs. f32 HIGHEST reference.
    np.testing.assert_allclose(np.asarray(out_kernel), np.asarray(out_ref),
                               rtol=2e-2, atol=1e-2)
    print("KERNEL_OK")
</pallas_src>

<mosaic_0001>
module attributes {stable_mosaic.version = 11 : i64} {
  func.func @kernel(%arg0: i32, %arg1: memref<1x16x640xbf16, #tpu.memory_space<vmem>>, %arg2: memref<9x64x144xbf16, #tpu.memory_space<vmem>>, %arg3: memref<1x384xf32, #tpu.memory_space<vmem>>, %arg4: memref<16x1xf32, #tpu.memory_space<vmem>>, %arg5: memref<1x1xf32, #tpu.memory_space<vmem>>, %arg6: memref<16x1xf32, #tpu.memory_space<vmem>>, %arg7: memref<16x1xf32, #tpu.memory_space<vmem>>, %arg8: memref<1x64x384xf32, #tpu.memory_space<vmem>>) attributes {dimension_semantics = [#tpu.dimension_semantics<parallel>], iteration_bounds = array<i64: 2>, scalar_prefetch = 0 : i64, scratch_operands = 0 : i64, tpu.core_type = #tpu.core_type<tc>, window_params = [{transform_indices = @transform_0, window_bounds = array<i64: 1, 16, 640>}, {pipeline_mode = #tpu.pipeline_mode<synchronous>, transform_indices = @transform_1, window_bounds = array<i64: 9, 64, 144>}, {pipeline_mode = #tpu.pipeline_mode<synchronous>, transform_indices = @transform_2, window_bounds = array<i64: 1, 384>}, {pipeline_mode = #tpu.pipeline_mode<synchronous>, transform_indices = @transform_3, window_bounds = array<i64: 16, 1>}, {pipeline_mode = #tpu.pipeline_mode<synchronous>, transform_indices = @transform_4, window_bounds = array<i64: 1, 1>}, {pipeline_mode = #tpu.pipeline_mode<synchronous>, transform_indices = @transform_5, window_bounds = array<i64: 16, 1>}, {pipeline_mode = #tpu.pipeline_mode<synchronous>, transform_indices = @transform_6, window_bounds = array<i64: 16, 1>}, {transform_indices = @transform_7, window_bounds = array<i64: 1, 64, 384>}]} {
    %c0 = arith.constant 0 : index
    %c0_0 = arith.constant 0 : index
    %c0_1 = arith.constant 0 : index
    %0 = vector.load %arg1[%c0, %c0_0, %c0_1] : memref<1x16x640xbf16, #tpu.memory_space<vmem>>, vector<1x16x384xbf16>
    %1 = vector.shape_cast %0 : vector<1x16x384xbf16> to vector<16x384xbf16>
    %c0_2 = arith.constant 0 : index
    %c0_3 = arith.constant 0 : index
    %c1 = arith.constant 1 : index
    %2 = vector.load %arg1[%c0_2, %c0_3, %c1] : memref<1x16x640xbf16, #tpu.memory_space<vmem>>, vector<1x16x384xbf16>
    %3 = vector.shape_cast %2 : vector<1x16x384xbf16> to vector<16x384xbf16>
    %c0_4 = arith.constant 0 : index
    %c0_5 = arith.constant 0 : index
    %c2 = arith.constant 2 : index
    %4 = vector.load %arg1[%c0_4, %c0_5, %c2] : memref<1x16x640xbf16, #tpu.memory_space<vmem>>, vector<1x16x384xbf16>
    %5 = vector.shape_cast %4 : vector<1x16x384xbf16> to vector<16x384xbf16>
    %c0_6 = arith.constant 0 : index
    %c0_7 = arith.constant 0 : index
    %c3 = arith.constant 3 : index
    %6 = vector.load %arg1[%c0_6, %c0_7, %c3] : memref<1x16x640xbf16, #tpu.memory_space<vmem>>, vector<1x16x384xbf16>
    %7 = vector.shape_cast %6 : vector<1x16x384xbf16> to vector<16x384xbf16>
    %c0_8 = arith.constant 0 : index
    %c0_9 = arith.constant 0 : index
    %c4 = arith.constant 4 : index
    %8 = vector.load %arg1[%c0_8, %c0_9, %c4] : memref<1x16x640xbf16, #tpu.memory_space<vmem>>, vector<1x16x384xbf16>
    %9 = vector.shape_cast %8 : vector<1x16x384xbf16> to vector<16x384xbf16>
    %c0_10 = arith.constant 0 : index
    %c0_11 = arith.constant 0 : index
    %c5 = arith.constant 5 : index
    %10 = vector.load %arg1[%c0_10, %c0_11, %c5] : memref<1x16x640xbf16, #tpu.memory_space<vmem>>, vector<1x16x384xbf16>
    %11 = vector.shape_cast %10 : vector<1x16x384xbf16> to vector<16x384xbf16>
    %c0_12 = arith.constant 0 : index
    %c0_13 = arith.constant 0 : index
    %c6 = arith.constant 6 : index
    %12 = vector.load %arg1[%c0_12, %c0_13, %c6] : memref<1x16x640xbf16, #tpu.memory_space<vmem>>, vector<1x16x384xbf16>
    %13 = vector.shape_cast %12 : vector<1x16x384xbf16> to vector<16x384xbf16>
    %c0_14 = arith.constant 0 : index
    %c0_15 = arith.constant 0 : index
    %c7 = arith.constant 7 : index
    %14 = vector.load %arg1[%c0_14, %c0_15, %c7] : memref<1x16x640xbf16, #tpu.memory_space<vmem>>, vector<1x16x384xbf16>
    %15 = vector.shape_cast %14 : vector<1x16x384xbf16> to vector<16x384xbf16>
    %c0_16 = arith.constant 0 : index
    %c0_17 = arith.constant 0 : index
    %c8 = arith.constant 8 : index
    %16 = vector.load %arg1[%c0_16, %c0_17, %c8] : memref<1x16x640xbf16, #tpu.memory_space<vmem>>, vector<1x16x384xbf16>
    %17 = vector.shape_cast %16 : vector<1x16x384xbf16> to vector<16x384xbf16>
    %18 = tpu.concatenate %1, %3, %5, %7, %9, %11, %13, %15, %17 in 0 : vector<16x384xbf16>, vector<16x384xbf16>, vector<16x384xbf16>, vector<16x384xbf16>, vector<16x384xbf16>, vector<16x384xbf16>, vector<16x384xbf16>, vector<16x384xbf16>, vector<16x384xbf16> -> vector<144x384xbf16>
    %c0_18 = arith.constant 0 : index
    %c0_19 = arith.constant 0 : index
    %c0_20 = arith.constant 0 : index
    %19 = vector.load %arg2[%c0_18, %c0_19, %c0_20] : memref<9x64x144xbf16, #tpu.memory_space<vmem>>, vector<1x64x144xbf16>
    %20 = vector.shape_cast %19 : vector<1x64x144xbf16> to vector<64x144xbf16>
    %cst = arith.constant dense<0.000000e+00> : vector<64x384xf32>
    %21 = tpu.matmul %20, %18, %cst {dimension_numbers = #tpu.dot_dimension_numbers<[1], [0], [0], [1], [0, 0, 1, 1], [], []>} : vector<64x144xbf16>, vector<144x384xbf16>, vector<64x384xf32> -> vector<64x384xf32>
    %c0_21 = arith.constant 0 : index
    %c0_22 = arith.constant 0 : index
    %c0_23 = arith.constant 0 : index
    %22 = vector.load %arg8[%c0_21, %c0_22, %c0_23] : memref<1x64x384xf32, #tpu.memory_space<vmem>>, vector<1x64x384xf32>
    %23 = vector.shape_cast %22 : vector<1x64x384xf32> to vector<64x384xf32>
    %24 = vector.shape_cast %21 : vector<64x384xf32> to vector<1x64x384xf32>
    tpu.vector_store %arg8[%c0_21, %c0_22, %c0_23], %24 {strides = array<i32>} : memref<1x64x384xf32, #tpu.memory_space<vmem>>, vector<1x64x384xf32>,
    %c0_24 = arith.constant 0 : index
    %c0_25 = arith.constant 0 : index
    %c24 = arith.constant 24 : index
    %25 = vector.load %arg1[%c0_24, %c0_25, %c24] : memref<1x16x640xbf16, #tpu.memory_space<vmem>>, vector<1x16x384xbf16>
    %26 = vector.shape_cast %25 : vector<1x16x384xbf16> to vector<16x384xbf16>
    %c0_26 = arith.constant 0 : index
    %c0_27 = arith.constant 0 : index
    %c25 = arith.constant 25 : index
    %27 = vector.load %arg1[%c0_26, %c0_27, %c25] : memref<1x16x640xbf16, #tpu.memory_space<vmem>>, vector<1x16x384xbf16>
    %28 = vector.shape_cast %27 : vector<1x16x384xbf16> to vector<16x384xbf16>
    %c0_28 = arith.constant 0 : index
    %c0_29 = arith.constant 0 : index
    %c26 = arith.constant 26 : index
    %29 = vector.load %arg1[%c0_28, %c0_29, %c26] : memref<1x16x640xbf16, #tpu.memory_space<vmem>>, vector<1x16x384xbf16>
    %30 = vector.shape_cast %29 : vector<1x16x384xbf16> to vector<16x384xbf16>
    %c0_30 = arith.constant 0 : index
    %c0_31 = arith.constant 0 : index
    %c27 = arith.constant 27 : index
    %31 = vector.load %arg1[%c0_30, %c0_31, %c27] : memref<1x16x640xbf16, #tpu.memory_space<vmem>>, vector<1x16x384xbf16>
    %32 = vector.shape_cast %31 : vector<1x16x384xbf16> to vector<16x384xbf16>
    %c0_32 = arith.constant 0 : index
    %c0_33 = arith.constant 0 : index
    %c28 = arith.constant 28 : index
    %33 = vector.load %arg1[%c0_32, %c0_33, %c28] : memref<1x16x640xbf16, #tpu.memory_space<vmem>>, vector<1x16x384xbf16>
    %34 = vector.shape_cast %33 : vector<1x16x384xbf16> to vector<16x384xbf16>
    %c0_34 = arith.constant 0 : index
    %c0_35 = arith.constant 0 : index
    %c29 = arith.constant 29 : index
    %35 = vector.load %arg1[%c0_34, %c0_35, %c29] : memref<1x16x640xbf16, #tpu.memory_space<vmem>>, vector<1x16x384xbf16>
    %36 = vector.shape_cast %35 : vector<1x16x384xbf16> to vector<16x384xbf16>
    %c0_36 = arith.constant 0 : index
    %c0_37 = arith.constant 0 : index
    %c30 = arith.constant 30 : index
    %37 = vector.load %arg1[%c0_36, %c0_37, %c30] : memref<1x16x640xbf16, #tpu.memory_space<vmem>>, vector<1x16x384xbf16>
    %38 = vector.shape_cast %37 : vector<1x16x384xbf16> to vector<16x384xbf16>
    %c0_38 = arith.constant 0 : index
    %c0_39 = arith.constant 0 : index
    %c31 = arith.constant 31 : index
    %39 = vector.load %arg1[%c0_38, %c0_39, %c31] : memref<1x16x640xbf16, #tpu.memory_space<vmem>>, vector<1x16x384xbf16>
    %40 = vector.shape_cast %39 : vector<1x16x384xbf16> to vector<16x384xbf16>
    %c0_40 = arith.constant 0 : index
    %c0_41 = arith.constant 0 : index
    %c32 = arith.constant 32 : index
    %41 = vector.load %arg1[%c0_40, %c0_41, %c32] : memref<1x16x640xbf16, #tpu.memory_space<vmem>>, vector<1x16x384xbf16>
    %42 = vector.shape_cast %41 : vector<1x16x384xbf16> to vector<16x384xbf16>
    %43 = tpu.concatenate %26, %28, %30, %32, %34, %36, %38, %40, %42 in 0 : vector<16x384xbf16>, vector<16x384xbf16>, vector<16x384xbf16>, vector<16x384xbf16>, vector<16x384xbf16>, vector<16x384xbf16>, vector<16x384xbf16>, vector<16x384xbf16>, vector<16x384xbf16> -> vector<144x384xbf16>
    %c1_42 = arith.constant 1 : index
    %c0_43 = arith.constant 0 : index
    %c0_44 = arith.constant 0 : index
    %44 = vector.load %arg2[%c1_42, %c0_43, %c0_44] : memref<9x64x144xbf16, #tpu.memory_space<vmem>>, vector<1x64x144xbf16>
    %45 = vector.shape_cast %44 : vector<1x64x144xbf16> to vector<64x144xbf16>
    %cst_45 = arith.constant dense<0.000000e+00> : vector<64x384xf32>
    %46 = tpu.matmul %45, %43, %cst_45 {dimension_numbers = #tpu.dot_dimension_numbers<[1], [0], [0], [1], [0, 0, 1, 1], [], []>} : vector<64x144xbf16>, vector<144x384xbf16>, vector<64x384xf32> -> vector<64x384xf32>
    %c0_46 = arith.constant 0 : index
    %c0_47 = arith.constant 0 : index
    %c0_48 = arith.constant 0 : index
    %47 = vector.load %arg8[%c0_46, %c0_47, %c0_48] : memref<1x64x384xf32, #tpu.memory_space<vmem>>, vector<1x64x384xf32>
    %48 = vector.shape_cast %47 : vector<1x64x384xf32> to vector<64x384xf32>
    %49 = arith.addf %48, %46 : vector<64x384xf32>
    %c0_49 = arith.constant 0 : index
    %c0_50 = arith.constant 0 : index
    %c0_51 = arith.constant 0 : index
    %50 = vector.load %arg8[%c0_49, %c0_50, %c0_51] : memref<1x64x384xf32, #tpu.memory_space<vmem>>, vector<1x64x384xf32>
    %51 = vector.shape_cast %50 : vector<1x64x384xf32> to vector<64x384xf32>
    %52 = vector.shape_cast %49 : vector<64x384xf32> to vector<1x64x384xf32>
    tpu.vector_store %arg8[%c0_49, %c0_50, %c0_51], %52 {strides = array<i32>} : memref<1x64x384xf32, #tpu.memory_space<vmem>>, vector<1x64x384xf32>,
    %c0_52 = arith.constant 0 : index
    %c0_53 = arith.constant 0 : index
    %c48 = arith.constant 48 : index
    %53 = vector.load %arg1[%c0_52, %c0_53, %c48] : memref<1x16x640xbf16, #tpu.memory_space<vmem>>, vector<1x16x384xbf16>
    %54 = vector.shape_cast %53 : vector<1x16x384xbf16> to vector<16x384xbf16>
    %c0_54 = arith.constant 0 : index
    %c0_55 = arith.constant 0 : index
    %c49 = arith.constant 49 : index
    %55 = vector.load %arg1[%c0_54, %c0_55, %c49] : memref<1x16x640xbf16, #tpu.memory_space<vmem>>, vector<1x16x384xbf16>
    %56 = vector.shape_cast %55 : vector<1x16x384xbf16> to vector<16x384xbf16>
    %c0_56 = arith.constant 0 : index
    %c0_57 = arith.constant 0 : index
    %c50 = arith.constant 50 : index
    %57 = vector.load %arg1[%c0_56, %c0_57, %c50] : memref<1x16x640xbf16, #tpu.memory_space<vmem>>, vector<1x16x384xbf16>
    %58 = vector.shape_cast %57 : vector<1x16x384xbf16> to vector<16x384xbf16>
    %c0_58 = arith.constant 0 : index
    %c0_59 = arith.constant 0 : index
    %c51 = arith.constant 51 : index
    %59 = vector.load %arg1[%c0_58, %c0_59, %c51] : memref<1x16x640xbf16, #tpu.memory_space<vmem>>, vector<1x16x384xbf16>
    %60 = vector.shape_cast %59 : vector<1x16x384xbf16> to vector<16x384xbf16>
    %c0_60 = arith.constant 0 : index
    %c0_61 = arith.constant 0 : index
    %c52 = arith.constant 52 : index
    %61 = vector.load %arg1[%c0_60, %c0_61, %c52] : memref<1x16x640xbf16, #tpu.memory_space<vmem>>, vector<1x16x384xbf16>
    %62 = vector.shape_cast %61 : vector<1x16x384xbf16> to vector<16x384xbf16>
    %c0_62 = arith.constant 0 : index
    %c0_63 = arith.constant 0 : index
    %c53 = arith.constant 53 : index
    %63 = vector.load %arg1[%c0_62, %c0_63, %c53] : memref<1x16x640xbf16, #tpu.memory_space<vmem>>, vector<1x16x384xbf16>
    %64 = vector.shape_cast %63 : vector<1x16x384xbf16> to vector<16x384xbf16>
    %c0_64 = arith.constant 0 : index
    %c0_65 = arith.constant 0 : index
    %c54 = arith.constant 54 : index
    %65 = vector.load %arg1[%c0_64, %c0_65, %c54] : memref<1x16x640xbf16, #tpu.memory_space<vmem>>, vector<1x16x384xbf16>
    %66 = vector.shape_cast %65 : vector<1x16x384xbf16> to vector<16x384xbf16>
    %c0_66 = arith.constant 0 : index
    %c0_67 = arith.constant 0 : index
    %c55 = arith.constant 55 : index
    %67 = vector.load %arg1[%c0_66, %c0_67, %c55] : memref<1x16x640xbf16, #tpu.memory_space<vmem>>, vector<1x16x384xbf16>
    %68 = vector.shape_cast %67 : vector<1x16x384xbf16> to vector<16x384xbf16>
    %c0_68 = arith.constant 0 : index
    %c0_69 = arith.constant 0 : index
    %c56 = arith.constant 56 : index
    %69 = vector.load %arg1[%c0_68, %c0_69, %c56] : memref<1x16x640xbf16, #tpu.memory_space<vmem>>, vector<1x16x384xbf16>
    %70 = vector.shape_cast %69 : vector<1x16x384xbf16> to vector<16x384xbf16>
    %71 = tpu.concatenate %54, %56, %58, %60, %62, %64, %66, %68, %70 in 0 : vector<16x384xbf16>, vector<16x384xbf16>, vector<16x384xbf16>, vector<16x384xbf16>, vector<16x384xbf16>, vector<16x384xbf16>, vector<16x384xbf16>, vector<16x384xbf16>, vector<16x384xbf16> -> vector<144x384xbf16>
    %c2_70 = arith.constant 2 : index
    %c0_71 = arith.constant 0 : index
    %c0_72 = arith.constant 0 : index
    %72 = vector.load %arg2[%c2_70, %c0_71, %c0_72] : memref<9x64x144xbf16, #tpu.memory_space<vmem>>, vector<1x64x144xbf16>
    %73 = vector.shape_cast %72 : vector<1x64x144xbf16> to vector<64x144xbf16>
    %cst_73 = arith.constant dense<0.000000e+00> : vector<64x384xf32>
    %74 = tpu.matmul %73, %71, %cst_73 {dimension_numbers = #tpu.dot_dimension_numbers<[1], [0], [0], [1], [0, 0, 1, 1], [], []>} : vector<64x144xbf16>, vector<144x384xbf16>, vector<64x384xf32> -> vector<64x384xf32>
    %c0_74 = arith.constant 0 : index
    %c0_75 = arith.constant 0 : index
    %c0_76 = arith.constant 0 : index
    %75 = vector.load %arg8[%c0_74, %c0_75, %c0_76] : memref<1x64x384xf32, #tpu.memory_space<vmem>>, vector<1x64x384xf32>
    %76 = vector.shape_cast %75 : vector<1x64x384xf32> to vector<64x384xf32>
    %77 = arith.addf %76, %74 : vector<64x384xf32>
    %c0_77 = arith.constant 0 : index
    %c0_78 = arith.constant 0 : index
    %c0_79 = arith.constant 0 : index
    %78 = vector.load %arg8[%c0_77, %c0_78, %c0_79] : memref<1x64x384xf32, #tpu.memory_space<vmem>>, vector<1x64x384xf32>
    %79 = vector.shape_cast %78 : vector<1x64x384xf32> to vector<64x384xf32>
    %80 = vector.shape_cast %77 : vector<64x384xf32> to vector<1x64x384xf32>
    tpu.vector_store %arg8[%c0_77, %c0_78, %c0_79], %80 {strides = array<i32>} : memref<1x64x384xf32, #tpu.memory_space<vmem>>, vector<1x64x384xf32>,
    %c0_80 = arith.constant 0 : index
    %c0_81 = arith.constant 0 : index
    %c72 = arith.constant 72 : index
    %81 = vector.load %arg1[%c0_80, %c0_81, %c72] : memref<1x16x640xbf16, #tpu.memory_space<vmem>>, vector<1x16x384xbf16>
    %82 = vector.shape_cast %81 : vector<1x16x384xbf16> to vector<16x384xbf16>
    %c0_82 = arith.constant 0 : index
    %c0_83 = arith.constant 0 : index
    %c73 = arith.constant 73 : index
    %83 = vector.load %arg1[%c0_82, %c0_83, %c73] : memref<1x16x640xbf16, #tpu.memory_space<vmem>>, vector<1x16x384xbf16>
    %84 = vector.shape_cast %83 : vector<1x16x384xbf16> to vector<16x384xbf16>
    %c0_84 = arith.constant 0 : index
    %c0_85 = arith.constant 0 : index
    %c74 = arith.constant 74 : index
    %85 = vector.load %arg1[%c0_84, %c0_85, %c74] : memref<1x16x640xbf16, #tpu.memory_space<vmem>>, vector<1x16x384xbf16>
    %86 = vector.shape_cast %85 : vector<1x16x384xbf16> to vector<16x384xbf16>
    %c0_86 = arith.constant 0 : index
    %c0_87 = arith.constant 0 : index
    %c75 = arith.constant 75 : index
    %87 = vector.load %arg1[%c0_86, %c0_87, %c75] : memref<1x16x640xbf16, #tpu.memory_space<vmem>>, vector<1x16x384xbf16>
    %88 = vector.shape_cast %87 : vector<1x16x384xbf16> to vector<16x384xbf16>
    %c0_88 = arith.constant 0 : index
    %c0_89 = arith.constant 0 : index
    %c76 = arith.constant 76 : index
    %89 = vector.load %arg1[%c0_88, %c0_89, %c76] : memref<1x16x640xbf16, #tpu.memory_space<vmem>>, vector<1x16x384xbf16>
    %90 = vector.shape_cast %89 : vector<1x16x384xbf16> to vector<16x384xbf16>
    %c0_90 = arith.constant 0 : index
    %c0_91 = arith.constant 0 : index
    %c77 = arith.constant 77 : index
    %91 = vector.load %arg1[%c0_90, %c0_91, %c77] : memref<1x16x640xbf16, #tpu.memory_space<vmem>>, vector<1x16x384xbf16>
    %92 = vector.shape_cast %91 : vector<1x16x384xbf16> to vector<16x384xbf16>
    %c0_92 = arith.constant 0 : index
    %c0_93 = arith.constant 0 : index
    %c78 = arith.constant 78 : index
    %93 = vector.load %arg1[%c0_92, %c0_93, %c78] : memref<1x16x640xbf16, #tpu.memory_space<vmem>>, vector<1x16x384xbf16>
    %94 = vector.shape_cast %93 : vector<1x16x384xbf16> to vector<16x384xbf16>
    %c0_94 = arith.constant 0 : index
    %c0_95 = arith.constant 0 : index
    %c79 = arith.constant 79 : index
    %95 = vector.load %arg1[%c0_94, %c0_95, %c79] : memref<1x16x640xbf16, #tpu.memory_space<vmem>>, vector<1x16x384xbf16>
    %96 = vector.shape_cast %95 : vector<1x16x384xbf16> to vector<16x384xbf16>
    %c0_96 = arith.constant 0 : index
    %c0_97 = arith.constant 0 : index
    %c80 = arith.constant 80 : index
    %97 = vector.load %arg1[%c0_96, %c0_97, %c80] : memref<1x16x640xbf16, #tpu.memory_space<vmem>>, vector<1x16x384xbf16>
    %98 = vector.shape_cast %97 : vector<1x16x384xbf16> to vector<16x384xbf16>
    %99 = tpu.concatenate %82, %84, %86, %88, %90, %92, %94, %96, %98 in 0 : vector<16x384xbf16>, vector<16x384xbf16>, vector<16x384xbf16>, vector<16x384xbf16>, vector<16x384xbf16>, vector<16x384xbf16>, vector<16x384xbf16>, vector<16x384xbf16>, vector<16x384xbf16> -> vector<144x384xbf16>
    %c3_98 = arith.constant 3 : index
    %c0_99 = arith.constant 0 : index
    %c0_100 = arith.constant 0 : index
    %100 = vector.load %arg2[%c3_98, %c0_99, %c0_100] : memref<9x64x144xbf16, #tpu.memory_space<vmem>>, vector<1x64x144xbf16>
    %101 = vector.shape_cast %100 : vector<1x64x144xbf16> to vector<64x144xbf16>
    %cst_101 = arith.constant dense<0.000000e+00> : vector<64x384xf32>
    %102 = tpu.matmul %101, %99, %cst_101 {dimension_numbers = #tpu.dot_dimension_numbers<[1], [0], [0], [1], [0, 0, 1, 1], [], []>} : vector<64x144xbf16>, vector<144x384xbf16>, vector<64x384xf32> -> vector<64x384xf32>
    %c0_102 = arith.constant 0 : index
    %c0_103 = arith.constant 0 : index
    %c0_104 = arith.constant 0 : index
    %103 = vector.load %arg8[%c0_102, %c0_103, %c0_104] : memref<1x64x384xf32, #tpu.memory_space<vmem>>, vector<1x64x384xf32>
    %104 = vector.shape_cast %103 : vector<1x64x384xf32> to vector<64x384xf32>
    %105 = arith.addf %104, %102 : vector<64x384xf32>
    %c0_105 = arith.constant 0 : index
    %c0_106 = arith.constant 0 : index
    %c0_107 = arith.constant 0 : index
    %106 = vector.load %arg8[%c0_105, %c0_106, %c0_107] : memref<1x64x384xf32, #tpu.memory_space<vmem>>, vector<1x64x384xf32>
    %107 = vector.shape_cast %106 : vector<1x64x384xf32> to vector<64x384xf32>
    %108 = vector.shape_cast %105 : vector<64x384xf32> to vector<1x64x384xf32>
    tpu.vector_store %arg8[%c0_105, %c0_106, %c0_107], %108 {strides = array<i32>} : memref<1x64x384xf32, #tpu.memory_space<vmem>>, vector<1x64x384xf32>,
    %c0_108 = arith.constant 0 : index
    %c0_109 = arith.constant 0 : index
    %c96 = arith.constant 96 : index
    %109 = vector.load %arg1[%c0_108, %c0_109, %c96] : memref<1x16x640xbf16, #tpu.memory_space<vmem>>, vector<1x16x384xbf16>
    %110 = vector.shape_cast %109 : vector<1x16x384xbf16> to vector<16x384xbf16>
    %c0_110 = arith.constant 0 : index
    %c0_111 = arith.constant 0 : index
    %c97 = arith.constant 97 : index
    %111 = vector.load %arg1[%c0_110, %c0_111, %c97] : memref<1x16x640xbf16, #tpu.memory_space<vmem>>, vector<1x16x384xbf16>
    %112 = vector.shape_cast %111 : vector<1x16x384xbf16> to vector<16x384xbf16>
    %c0_112 = arith.constant 0 : index
    %c0_113 = arith.constant 0 : index
    %c98 = arith.constant 98 : index
    %113 = vector.load %arg1[%c0_112, %c0_113, %c98] : memref<1x16x640xbf16, #tpu.memory_space<vmem>>, vector<1x16x384xbf16>
    %114 = vector.shape_cast %113 : vector<1x16x384xbf16> to vector<16x384xbf16>
    %c0_114 = arith.constant 0 : index
    %c0_115 = arith.constant 0 : index
    %c99 = arith.constant 99 : index
    %115 = vector.load %arg1[%c0_114, %c0_115, %c99] : memref<1x16x640xbf16, #tpu.memory_space<vmem>>, vector<1x16x384xbf16>
    %116 = vector.shape_cast %115 : vector<1x16x384xbf16> to vector<16x384xbf16>
    %c0_116 = arith.constant 0 : index
    %c0_117 = arith.constant 0 : index
    %c100 = arith.constant 100 : index
    %117 = vector.load %arg1[%c0_116, %c0_117, %c100] : memref<1x16x640xbf16, #tpu.memory_space<vmem>>, vector<1x16x384xbf16>
    %118 = vector.shape_cast %117 : vector<1x16x384xbf16> to vector<16x384xbf16>
    %c0_118 = arith.constant 0 : index
    %c0_119 = arith.constant 0 : index
    %c101 = arith.constant 101 : index
    %119 = vector.load %arg1[%c0_118, %c0_119, %c101] : memref<1x16x640xbf16, #tpu.memory_space<vmem>>, vector<1x16x384xbf16>
    %120 = vector.shape_cast %119 : vector<1x16x384xbf16> to vector<16x384xbf16>
    %c0_120 = arith.constant 0 : index
    %c0_121 = arith.constant 0 : index
    %c102 = arith.constant 102 : index
    %121 = vector.load %arg1[%c0_120, %c0_121, %c102] : memref<1x16x640xbf16, #tpu.memory_space<vmem>>, vector<1x16x384xbf16>
    %122 = vector.shape_cast %121 : vector<1x16x384xbf16> to vector<16x384xbf16>
    %c0_122 = arith.constant 0 : index
    %c0_123 = arith.constant 0 : index
    %c103 = arith.constant 103 : index
    %123 = vector.load %arg1[%c0_122, %c0_123, %c103] : memref<1x16x640xbf16, #tpu.memory_space<vmem>>, vector<1x16x384xbf16>
    %124 = vector.shape_cast %123 : vector<1x16x384xbf16> to vector<16x384xbf16>
    %c0_124 = arith.constant 0 : index
    %c0_125 = arith.constant 0 : index
    %c104 = arith.constant 104 : index
    %125 = vector.load %arg1[%c0_124, %c0_125, %c104] : memref<1x16x640xbf16, #tpu.memory_space<vmem>>, vector<1x16x384xbf16>
    %126 = vector.shape_cast %125 : vector<1x16x384xbf16> to vector<16x384xbf16>
    %127 = tpu.concatenate %110, %112, %114, %116, %118, %120, %122, %124, %126 in 0 : vector<16x384xbf16>, vector<16x384xbf16>, vector<16x384xbf16>, vector<16x384xbf16>, vector<16x384xbf16>, vector<16x384xbf16>, vector<16x384xbf16>, vector<16x384xbf16>, vector<16x384xbf16> -> vector<144x384xbf16>
    %c4_126 = arith.constant 4 : index
    %c0_127 = arith.constant 0 : index
    %c0_128 = arith.constant 0 : index
    %128 = vector.load %arg2[%c4_126, %c0_127, %c0_128] : memref<9x64x144xbf16, #tpu.memory_space<vmem>>, vector<1x64x144xbf16>
    %129 = vector.shape_cast %128 : vector<1x64x144xbf16> to vector<64x144xbf16>
    %cst_129 = arith.constant dense<0.000000e+00> : vector<64x384xf32>
    %130 = tpu.matmul %129, %127, %cst_129 {dimension_numbers = #tpu.dot_dimension_numbers<[1], [0], [0], [1], [0, 0, 1, 1], [], []>} : vector<64x144xbf16>, vector<144x384xbf16>, vector<64x384xf32> -> vector<64x384xf32>
    %c0_130 = arith.constant 0 : index
    %c0_131 = arith.constant 0 : index
    %c0_132 = arith.constant 0 : index
    %131 = vector.load %arg8[%c0_130, %c0_131, %c0_132] : memref<1x64x384xf32, #tpu.memory_space<vmem>>, vector<1x64x384xf32>
    %132 = vector.shape_cast %131 : vector<1x64x384xf32> to vector<64x384xf32>
    %133 = arith.addf %132, %130 : vector<64x384xf32>
    %c0_133 = arith.constant 0 : index
    %c0_134 = arith.constant 0 : index
    %c0_135 = arith.constant 0 : index
    %134 = vector.load %arg8[%c0_133, %c0_134, %c0_135] : memref<1x64x384xf32, #tpu.memory_space<vmem>>, vector<1x64x384xf32>
    %135 = vector.shape_cast %134 : vector<1x64x384xf32> to vector<64x384xf32>
    %136 = vector.shape_cast %133 : vector<64x384xf32> to vector<1x64x384xf32>
    tpu.vector_store %arg8[%c0_133, %c0_134, %c0_135], %136 {strides = array<i32>} : memref<1x64x384xf32, #tpu.memory_space<vmem>>, vector<1x64x384xf32>,
    %c0_136 = arith.constant 0 : index
    %c0_137 = arith.constant 0 : index
    %c120 = arith.constant 120 : index
    %137 = vector.load %arg1[%c0_136, %c0_137, %c120] : memref<1x16x640xbf16, #tpu.memory_space<vmem>>, vector<1x16x384xbf16>
    %138 = vector.shape_cast %137 : vector<1x16x384xbf16> to vector<16x384xbf16>
    %c0_138 = arith.constant 0 : index
    %c0_139 = arith.constant 0 : index
    %c121 = arith.constant 121 : index
    %139 = vector.load %arg1[%c0_138, %c0_139, %c121] : memref<1x16x640xbf16, #tpu.memory_space<vmem>>, vector<1x16x384xbf16>
    %140 = vector.shape_cast %139 : vector<1x16x384xbf16> to vector<16x384xbf16>
    %c0_140 = arith.constant 0 : index
    %c0_141 = arith.constant 0 : index
    %c122 = arith.constant 122 : index
    %141 = vector.load %arg1[%c0_140, %c0_141, %c122] : memref<1x16x640xbf16, #tpu.memory_space<vmem>>, vector<1x16x384xbf16>
    %142 = vector.shape_cast %141 : vector<1x16x384xbf16> to vector<16x384xbf16>
    %c0_142 = arith.constant 0 : index
    %c0_143 = arith.constant 0 : index
    %c123 = arith.constant 123 : index
    %143 = vector.load %arg1[%c0_142, %c0_143, %c123] : memref<1x16x640xbf16, #tpu.memory_space<vmem>>, vector<1x16x384xbf16>
    %144 = vector.shape_cast %143 : vector<1x16x384xbf16> to vector<16x384xbf16>
    %c0_144 = arith.constant 0 : index
    %c0_145 = arith.constant 0 : index
    %c124 = arith.constant 124 : index
    %145 = vector.load %arg1[%c0_144, %c0_145, %c124] : memref<1x16x640xbf16, #tpu.memory_space<vmem>>, vector<1x16x384xbf16>
    %146 = vector.shape_cast %145 : vector<1x16x384xbf16> to vector<16x384xbf16>
    %c0_146 = arith.constant 0 : index
    %c0_147 = arith.constant 0 : index
    %c125 = arith.constant 125 : index
    %147 = vector.load %arg1[%c0_146, %c0_147, %c125] : memref<1x16x640xbf16, #tpu.memory_space<vmem>>, vector<1x16x384xbf16>
    %148 = vector.shape_cast %147 : vector<1x16x384xbf16> to vector<16x384xbf16>
    %c0_148 = arith.constant 0 : index
    %c0_149 = arith.constant 0 : index
    %c126 = arith.constant 126 : index
    %149 = vector.load %arg1[%c0_148, %c0_149, %c126] : memref<1x16x640xbf16, #tpu.memory_space<vmem>>, vector<1x16x384xbf16>
    %150 = vector.shape_cast %149 : vector<1x16x384xbf16> to vector<16x384xbf16>
    %c0_150 = arith.constant 0 : index
    %c0_151 = arith.constant 0 : index
    %c127 = arith.constant 127 : index
    %151 = vector.load %arg1[%c0_150, %c0_151, %c127] : memref<1x16x640xbf16, #tpu.memory_space<vmem>>, vector<1x16x384xbf16>
    %152 = vector.shape_cast %151 : vector<1x16x384xbf16> to vector<16x384xbf16>
    %c0_152 = arith.constant 0 : index
    %c0_153 = arith.constant 0 : index
    %c128 = arith.constant 128 : index
    %153 = vector.load %arg1[%c0_152, %c0_153, %c128] : memref<1x16x640xbf16, #tpu.memory_space<vmem>>, vector<1x16x384xbf16>
    %154 = vector.shape_cast %153 : vector<1x16x384xbf16> to vector<16x384xbf16>
    %155 = tpu.concatenate %138, %140, %142, %144, %146, %148, %150, %152, %154 in 0 : vector<16x384xbf16>, vector<16x384xbf16>, vector<16x384xbf16>, vector<16x384xbf16>, vector<16x384xbf16>, vector<16x384xbf16>, vector<16x384xbf16>, vector<16x384xbf16>, vector<16x384xbf16> -> vector<144x384xbf16>
    %c5_154 = arith.constant 5 : index
    %c0_155 = arith.constant 0 : index
    %c0_156 = arith.constant 0 : index
    %156 = vector.load %arg2[%c5_154, %c0_155, %c0_156] : memref<9x64x144xbf16, #tpu.memory_space<vmem>>, vector<1x64x144xbf16>
    %157 = vector.shape_cast %156 : vector<1x64x144xbf16> to vector<64x144xbf16>
    %cst_157 = arith.constant dense<0.000000e+00> : vector<64x384xf32>
    %158 = tpu.matmul %157, %155, %cst_157 {dimension_numbers = #tpu.dot_dimension_numbers<[1], [0], [0], [1], [0, 0, 1, 1], [], []>} : vector<64x144xbf16>, vector<144x384xbf16>, vector<64x384xf32> -> vector<64x384xf32>
    %c0_158 = arith.constant 0 : index
    %c0_159 = arith.constant 0 : index
    %c0_160 = arith.constant 0 : index
    %159 = vector.load %arg8[%c0_158, %c0_159, %c0_160] : memref<1x64x384xf32, #tpu.memory_space<vmem>>, vector<1x64x384xf32>
    %160 = vector.shape_cast %159 : vector<1x64x384xf32> to vector<64x384xf32>
    %161 = arith.addf %160, %158 : vector<64x384xf32>
    %c0_161 = arith.constant 0 : index
    %c0_162 = arith.constant 0 : index
    %c0_163 = arith.constant 0 : index
    %162 = vector.load %arg8[%c0_161, %c0_162, %c0_163] : memref<1x64x384xf32, #tpu.memory_space<vmem>>, vector<1x64x384xf32>
    %163 = vector.shape_cast %162 : vector<1x64x384xf32> to vector<64x384xf32>
    %164 = vector.shape_cast %161 : vector<64x384xf32> to vector<1x64x384xf32>
    tpu.vector_store %arg8[%c0_161, %c0_162, %c0_163], %164 {strides = array<i32>} : memref<1x64x384xf32, #tpu.memory_space<vmem>>, vector<1x64x384xf32>,
    %c0_164 = arith.constant 0 : index
    %c0_165 = arith.constant 0 : index
    %c144 = arith.constant 144 : index
    %165 = vector.load %arg1[%c0_164, %c0_165, %c144] : memref<1x16x640xbf16, #tpu.memory_space<vmem>>, vector<1x16x384xbf16>
    %166 = vector.shape_cast %165 : vector<1x16x384xbf16> to vector<16x384xbf16>
    %c0_166 = arith.constant 0 : index
    %c0_167 = arith.constant 0 : index
    %c145 = arith.constant 145 : index
    %167 = vector.load %arg1[%c0_166, %c0_167, %c145] : memref<1x16x640xbf16, #tpu.memory_space<vmem>>, vector<1x16x384xbf16>
    %168 = vector.shape_cast %167 : vector<1x16x384xbf16> to vector<16x384xbf16>
    %c0_168 = arith.constant 0 : index
    %c0_169 = arith.constant 0 : index
    %c146 = arith.constant 146 : index
    %169 = vector.load %arg1[%c0_168, %c0_169, %c146] : memref<1x16x640xbf16, #tpu.memory_space<vmem>>, vector<1x16x384xbf16>
    %170 = vector.shape_cast %169 : vector<1x16x384xbf16> to vector<16x384xbf16>
    %c0_170 = arith.constant 0 : index
    %c0_171 = arith.constant 0 : index
    %c147 = arith.constant 147 : index
    %171 = vector.load %arg1[%c0_170, %c0_171, %c147] : memref<1x16x640xbf16, #tpu.memory_space<vmem>>, vector<1x16x384xbf16>
    %172 = vector.shape_cast %171 : vector<1x16x384xbf16> to vector<16x384xbf16>
    %c0_172 = arith.constant 0 : index
    %c0_173 = arith.constant 0 : index
    %c148 = arith.constant 148 : index
    %173 = vector.load %arg1[%c0_172, %c0_173, %c148] : memref<1x16x640xbf16, #tpu.memory_space<vmem>>, vector<1x16x384xbf16>
    %174 = vector.shape_cast %173 : vector<1x16x384xbf16> to vector<16x384xbf16>
    %c0_174 = arith.constant 0 : index
    %c0_175 = arith.constant 0 : index
    %c149 = arith.constant 149 : index
    %175 = vector.load %arg1[%c0_174, %c0_175, %c149] : memref<1x16x640xbf16, #tpu.memory_space<vmem>>, vector<1x16x384xbf16>
    %176 = vector.shape_cast %175 : vector<1x16x384xbf16> to vector<16x384xbf16>
    %c0_176 = arith.constant 0 : index
    %c0_177 = arith.constant 0 : index
    %c150 = arith.constant 150 : index
    %177 = vector.load %arg1[%c0_176, %c0_177, %c150] : memref<1x16x640xbf16, #tpu.memory_space<vmem>>, vector<1x16x384xbf16>
    %178 = vector.shape_cast %177 : vector<1x16x384xbf16> to vector<16x384xbf16>
    %c0_178 = arith.constant 0 : index
    %c0_179 = arith.constant 0 : index
    %c151 = arith.constant 151 : index
    %179 = vector.load %arg1[%c0_178, %c0_179, %c151] : memref<1x16x640xbf16, #tpu.memory_space<vmem>>, vector<1x16x384xbf16>
    %180 = vector.shape_cast %179 : vector<1x16x384xbf16> to vector<16x384xbf16>
    %c0_180 = arith.constant 0 : index
    %c0_181 = arith.constant 0 : index
    %c152 = arith.constant 152 : index
    %181 = vector.load %arg1[%c0_180, %c0_181, %c152] : memref<1x16x640xbf16, #tpu.memory_space<vmem>>, vector<1x16x384xbf16>
    %182 = vector.shape_cast %181 : vector<1x16x384xbf16> to vector<16x384xbf16>
    %183 = tpu.concatenate %166, %168, %170, %172, %174, %176, %178, %180, %182 in 0 : vector<16x384xbf16>, vector<16x384xbf16>, vector<16x384xbf16>, vector<16x384xbf16>, vector<16x384xbf16>, vector<16x384xbf16>, vector<16x384xbf16>, vector<16x384xbf16>, vector<16x384xbf16> -> vector<144x384xbf16>
    %c6_182 = arith.constant 6 : index
    %c0_183 = arith.constant 0 : index
    %c0_184 = arith.constant 0 : index
    %184 = vector.load %arg2[%c6_182, %c0_183, %c0_184] : memref<9x64x144xbf16, #tpu.memory_space<vmem>>, vector<1x64x144xbf16>
    %185 = vector.shape_cast %184 : vector<1x64x144xbf16> to vector<64x144xbf16>
    %cst_185 = arith.constant dense<0.000000e+00> : vector<64x384xf32>
    %186 = tpu.matmul %185, %183, %cst_185 {dimension_numbers = #tpu.dot_dimension_numbers<[1], [0], [0], [1], [0, 0, 1, 1], [], []>} : vector<64x144xbf16>, vector<144x384xbf16>, vector<64x384xf32> -> vector<64x384xf32>
    %c0_186 = arith.constant 0 : index
    %c0_187 = arith.constant 0 : index
    %c0_188 = arith.constant 0 : index
    %187 = vector.load %arg8[%c0_186, %c0_187, %c0_188] : memref<1x64x384xf32, #tpu.memory_space<vmem>>, vector<1x64x384xf32>
    %188 = vector.shape_cast %187 : vector<1x64x384xf32> to vector<64x384xf32>
    %189 = arith.addf %188, %186 : vector<64x384xf32>
    %c0_189 = arith.constant 0 : index
    %c0_190 = arith.constant 0 : index
    %c0_191 = arith.constant 0 : index
    %190 = vector.load %arg8[%c0_189, %c0_190, %c0_191] : memref<1x64x384xf32, #tpu.memory_space<vmem>>, vector<1x64x384xf32>
    %191 = vector.shape_cast %190 : vector<1x64x384xf32> to vector<64x384xf32>
    %192 = vector.shape_cast %189 : vector<64x384xf32> to vector<1x64x384xf32>
    tpu.vector_store %arg8[%c0_189, %c0_190, %c0_191], %192 {strides = array<i32>} : memref<1x64x384xf32, #tpu.memory_space<vmem>>, vector<1x64x384xf32>,
    %c0_192 = arith.constant 0 : index
    %c0_193 = arith.constant 0 : index
    %c168 = arith.constant 168 : index
    %193 = vector.load %arg1[%c0_192, %c0_193, %c168] : memref<1x16x640xbf16, #tpu.memory_space<vmem>>, vector<1x16x384xbf16>
    %194 = vector.shape_cast %193 : vector<1x16x384xbf16> to vector<16x384xbf16>
    %c0_194 = arith.constant 0 : index
    %c0_195 = arith.constant 0 : index
    %c169 = arith.constant 169 : index
    %195 = vector.load %arg1[%c0_194, %c0_195, %c169] : memref<1x16x640xbf16, #tpu.memory_space<vmem>>, vector<1x16x384xbf16>
    %196 = vector.shape_cast %195 : vector<1x16x384xbf16> to vector<16x384xbf16>
    %c0_196 = arith.constant 0 : index
    %c0_197 = arith.constant 0 : index
    %c170 = arith.constant 170 : index
    %197 = vector.load %arg1[%c0_196, %c0_197, %c170] : memref<1x16x640xbf16, #tpu.memory_space<vmem>>, vector<1x16x384xbf16>
    %198 = vector.shape_cast %197 : vector<1x16x384xbf16> to vector<16x384xbf16>
    %c0_198 = arith.constant 0 : index
    %c0_199 = arith.constant 0 : index
    %c171 = arith.constant 171 : index
    %199 = vector.load %arg1[%c0_198, %c0_199, %c171] : memref<1x16x640xbf16, #tpu.memory_space<vmem>>, vector<1x16x384xbf16>
    %200 = vector.shape_cast %199 : vector<1x16x384xbf16> to vector<16x384xbf16>
    %c0_200 = arith.constant 0 : index
    %c0_201 = arith.constant 0 : index
    %c172 = arith.constant 172 : index
    %201 = vector.load %arg1[%c0_200, %c0_201, %c172] : memref<1x16x640xbf16, #tpu.memory_space<vmem>>, vector<1x16x384xbf16>
    %202 = vector.shape_cast %201 : vector<1x16x384xbf16> to vector<16x384xbf16>
    %c0_202 = arith.constant 0 : index
    %c0_203 = arith.constant 0 : index
    %c173 = arith.constant 173 : index
    %203 = vector.load %arg1[%c0_202, %c0_203, %c173] : memref<1x16x640xbf16, #tpu.memory_space<vmem>>, vector<1x16x384xbf16>
    %204 = vector.shape_cast %203 : vector<1x16x384xbf16> to vector<16x384xbf16>
    %c0_204 = arith.constant 0 : index
    %c0_205 = arith.constant 0 : index
    %c174 = arith.constant 174 : index
    %205 = vector.load %arg1[%c0_204, %c0_205, %c174] : memref<1x16x640xbf16, #tpu.memory_space<vmem>>, vector<1x16x384xbf16>
    %206 = vector.shape_cast %205 : vector<1x16x384xbf16> to vector<16x384xbf16>
    %c0_206 = arith.constant 0 : index
    %c0_207 = arith.constant 0 : index
    %c175 = arith.constant 175 : index
    %207 = vector.load %arg1[%c0_206, %c0_207, %c175] : memref<1x16x640xbf16, #tpu.memory_space<vmem>>, vector<1x16x384xbf16>
    %208 = vector.shape_cast %207 : vector<1x16x384xbf16> to vector<16x384xbf16>
    %c0_208 = arith.constant 0 : index
    %c0_209 = arith.constant 0 : index
    %c176 = arith.constant 176 : index
    %209 = vector.load %arg1[%c0_208, %c0_209, %c176] : memref<1x16x640xbf16, #tpu.memory_space<vmem>>, vector<1x16x384xbf16>
    %210 = vector.shape_cast %209 : vector<1x16x384xbf16> to vector<16x384xbf16>
    %211 = tpu.concatenate %194, %196, %198, %200, %202, %204, %206, %208, %210 in 0 : vector<16x384xbf16>, vector<16x384xbf16>, vector<16x384xbf16>, vector<16x384xbf16>, vector<16x384xbf16>, vector<16x384xbf16>, vector<16x384xbf16>, vector<16x384xbf16>, vector<16x384xbf16> -> vector<144x384xbf16>
    %c7_210 = arith.constant 7 : index
    %c0_211 = arith.constant 0 : index
    %c0_212 = arith.constant 0 : index
    %212 = vector.load %arg2[%c7_210, %c0_211, %c0_212] : memref<9x64x144xbf16, #tpu.memory_space<vmem>>, vector<1x64x144xbf16>
    %213 = vector.shape_cast %212 : vector<1x64x144xbf16> to vector<64x144xbf16>
    %cst_213 = arith.constant dense<0.000000e+00> : vector<64x384xf32>
    %214 = tpu.matmul %213, %211, %cst_213 {dimension_numbers = #tpu.dot_dimension_numbers<[1], [0], [0], [1], [0, 0, 1, 1], [], []>} : vector<64x144xbf16>, vector<144x384xbf16>, vector<64x384xf32> -> vector<64x384xf32>
    %c0_214 = arith.constant 0 : index
    %c0_215 = arith.constant 0 : index
    %c0_216 = arith.constant 0 : index
    %215 = vector.load %arg8[%c0_214, %c0_215, %c0_216] : memref<1x64x384xf32, #tpu.memory_space<vmem>>, vector<1x64x384xf32>
    %216 = vector.shape_cast %215 : vector<1x64x384xf32> to vector<64x384xf32>
    %217 = arith.addf %216, %214 : vector<64x384xf32>
    %c0_217 = arith.constant 0 : index
    %c0_218 = arith.constant 0 : index
    %c0_219 = arith.constant 0 : index
    %218 = vector.load %arg8[%c0_217, %c0_218, %c0_219] : memref<1x64x384xf32, #tpu.memory_space<vmem>>, vector<1x64x384xf32>
    %219 = vector.shape_cast %218 : vector<1x64x384xf32> to vector<64x384xf32>
    %220 = vector.shape_cast %217 : vector<64x384xf32> to vector<1x64x384xf32>
    tpu.vector_store %arg8[%c0_217, %c0_218, %c0_219], %220 {strides = array<i32>} : memref<1x64x384xf32, #tpu.memory_space<vmem>>, vector<1x64x384xf32>,
    %c0_220 = arith.constant 0 : index
    %c0_221 = arith.constant 0 : index
    %c192 = arith.constant 192 : index
    %221 = vector.load %arg1[%c0_220, %c0_221, %c192] : memref<1x16x640xbf16, #tpu.memory_space<vmem>>, vector<1x16x384xbf16>
    %222 = vector.shape_cast %221 : vector<1x16x384xbf16> to vector<16x384xbf16>
    %c0_222 = arith.constant 0 : index
    %c0_223 = arith.constant 0 : index
    %c193 = arith.constant 193 : index
    %223 = vector.load %arg1[%c0_222, %c0_223, %c193] : memref<1x16x640xbf16, #tpu.memory_space<vmem>>, vector<1x16x384xbf16>
    %224 = vector.shape_cast %223 : vector<1x16x384xbf16> to vector<16x384xbf16>
    %c0_224 = arith.constant 0 : index
    %c0_225 = arith.constant 0 : index
    %c194 = arith.constant 194 : index
    %225 = vector.load %arg1[%c0_224, %c0_225, %c194] : memref<1x16x640xbf16, #tpu.memory_space<vmem>>, vector<1x16x384xbf16>
    %226 = vector.shape_cast %225 : vector<1x16x384xbf16> to vector<16x384xbf16>
    %c0_226 = arith.constant 0 : index
    %c0_227 = arith.constant 0 : index
    %c195 = arith.constant 195 : index
    %227 = vector.load %arg1[%c0_226, %c0_227, %c195] : memref<1x16x640xbf16, #tpu.memory_space<vmem>>, vector<1x16x384xbf16>
    %228 = vector.shape_cast %227 : vector<1x16x384xbf16> to vector<16x384xbf16>
    %c0_228 = arith.constant 0 : index
    %c0_229 = arith.constant 0 : index
    %c196 = arith.constant 196 : index
    %229 = vector.load %arg1[%c0_228, %c0_229, %c196] : memref<1x16x640xbf16, #tpu.memory_space<vmem>>, vector<1x16x384xbf16>
    %230 = vector.shape_cast %229 : vector<1x16x384xbf16> to vector<16x384xbf16>
    %c0_230 = arith.constant 0 : index
    %c0_231 = arith.constant 0 : index
    %c197 = arith.constant 197 : index
    %231 = vector.load %arg1[%c0_230, %c0_231, %c197] : memref<1x16x640xbf16, #tpu.memory_space<vmem>>, vector<1x16x384xbf16>
    %232 = vector.shape_cast %231 : vector<1x16x384xbf16> to vector<16x384xbf16>
    %c0_232 = arith.constant 0 : index
    %c0_233 = arith.constant 0 : index
    %c198 = arith.constant 198 : index
    %233 = vector.load %arg1[%c0_232, %c0_233, %c198] : memref<1x16x640xbf16, #tpu.memory_space<vmem>>, vector<1x16x384xbf16>
    %234 = vector.shape_cast %233 : vector<1x16x384xbf16> to vector<16x384xbf16>
    %c0_234 = arith.constant 0 : index
    %c0_235 = arith.constant 0 : index
    %c199 = arith.constant 199 : index
    %235 = vector.load %arg1[%c0_234, %c0_235, %c199] : memref<1x16x640xbf16, #tpu.memory_space<vmem>>, vector<1x16x384xbf16>
    %236 = vector.shape_cast %235 : vector<1x16x384xbf16> to vector<16x384xbf16>
    %c0_236 = arith.constant 0 : index
    %c0_237 = arith.constant 0 : index
    %c200 = arith.constant 200 : index
    %237 = vector.load %arg1[%c0_236, %c0_237, %c200] : memref<1x16x640xbf16, #tpu.memory_space<vmem>>, vector<1x16x384xbf16>
    %238 = vector.shape_cast %237 : vector<1x16x384xbf16> to vector<16x384xbf16>
    %239 = tpu.concatenate %222, %224, %226, %228, %230, %232, %234, %236, %238 in 0 : vector<16x384xbf16>, vector<16x384xbf16>, vector<16x384xbf16>, vector<16x384xbf16>, vector<16x384xbf16>, vector<16x384xbf16>, vector<16x384xbf16>, vector<16x384xbf16>, vector<16x384xbf16> -> vector<144x384xbf16>
    %c8_238 = arith.constant 8 : index
    %c0_239 = arith.constant 0 : index
    %c0_240 = arith.constant 0 : index
    %240 = vector.load %arg2[%c8_238, %c0_239, %c0_240] : memref<9x64x144xbf16, #tpu.memory_space<vmem>>, vector<1x64x144xbf16>
    %241 = vector.shape_cast %240 : vector<1x64x144xbf16> to vector<64x144xbf16>
    %cst_241 = arith.constant dense<0.000000e+00> : vector<64x384xf32>
    %242 = tpu.matmul %241, %239, %cst_241 {dimension_numbers = #tpu.dot_dimension_numbers<[1], [0], [0], [1], [0, 0, 1, 1], [], []>} : vector<64x144xbf16>, vector<144x384xbf16>, vector<64x384xf32> -> vector<64x384xf32>
    %c0_242 = arith.constant 0 : index
    %c0_243 = arith.constant 0 : index
    %c0_244 = arith.constant 0 : index
    %243 = vector.load %arg8[%c0_242, %c0_243, %c0_244] : memref<1x64x384xf32, #tpu.memory_space<vmem>>, vector<1x64x384xf32>
    %244 = vector.shape_cast %243 : vector<1x64x384xf32> to vector<64x384xf32>
    %245 = arith.addf %244, %242 : vector<64x384xf32>
    %c0_245 = arith.constant 0 : index
    %c0_246 = arith.constant 0 : index
    %c0_247 = arith.constant 0 : index
    %246 = vector.load %arg8[%c0_245, %c0_246, %c0_247] : memref<1x64x384xf32, #tpu.memory_space<vmem>>, vector<1x64x384xf32>
    %247 = vector.shape_cast %246 : vector<1x64x384xf32> to vector<64x384xf32>
    %248 = vector.shape_cast %245 : vector<64x384xf32> to vector<1x64x384xf32>
    tpu.vector_store %arg8[%c0_245, %c0_246, %c0_247], %248 {strides = array<i32>} : memref<1x64x384xf32, #tpu.memory_space<vmem>>, vector<1x64x384xf32>,
    %c0_248 = arith.constant 0 : index
    %c0_249 = arith.constant 0 : index
    %249 = vector.load %arg3[%c0_248, %c0_249] : memref<1x384xf32, #tpu.memory_space<vmem>>, vector<1x384xf32>
    %c0_250 = arith.constant 0 : index
    %c0_251 = arith.constant 0 : index
    %250 = vector.load %arg4[%c0_250, %c0_251] : memref<16x1xf32, #tpu.memory_space<vmem>>, vector<16x1xf32>
    %c0_252 = arith.constant 0 : index
    %c0_253 = arith.constant 0 : index
    %251 = vector.load %arg5[%c0_252, %c0_253] : memref<1x1xf32, #tpu.memory_space<vmem>>, vector<1x1xf32>
    %c0_254 = arith.constant 0 : index
    %c0_255 = arith.constant 0 : index
    %252 = vector.load %arg6[%c0_254, %c0_255] : memref<16x1xf32, #tpu.memory_space<vmem>>, vector<16x1xf32>
    %c0_256 = arith.constant 0 : index
    %c0_257 = arith.constant 0 : index
    %253 = vector.load %arg7[%c0_256, %c0_257] : memref<16x1xf32, #tpu.memory_space<vmem>>, vector<16x1xf32>
    %c0_258 = arith.constant 0 : index
    %c0_259 = arith.constant 0 : index
    %c0_260 = arith.constant 0 : index
    %254 = vector.load %arg8[%c0_258, %c0_259, %c0_260] : memref<1x64x384xf32, #tpu.memory_space<vmem>>, vector<1x16x384xf32>
    %255 = vector.shape_cast %254 : vector<1x16x384xf32> to vector<16x384xf32>
    %256 = vector.broadcast %249 : vector<1x384xf32> to vector<16x384xf32>
    %257 = arith.mulf %255, %256 : vector<16x384xf32>
    %cst_261 = arith.constant dense<0.000000e+00> : vector<16xf32>
    %258 = vector.multi_reduction <add>, %257, %cst_261 [1] : vector<16x384xf32> to vector<16xf32>
    %259 = vector.shape_cast %258 : vector<16xf32> to vector<16x1xf32>
    %cst_262 = arith.constant 3.906250e-03 : f32
    %260 = vector.broadcast %cst_262 : f32 to vector<16x1xf32>
    %261 = arith.mulf %259, %260 : vector<16x1xf32>
    %262 = arith.mulf %261, %250 : vector<16x1xf32>
    %cst_263 = arith.constant dense<0.000000e+00> : vector<1xf32>
    %263 = vector.multi_reduction <add>, %262, %cst_263 [0] : vector<16x1xf32> to vector<1xf32>
    %264 = vector.shape_cast %263 : vector<1xf32> to vector<1x1xf32>
    %265 = arith.addf %264, %251 : vector<1x1xf32>
    %cst_264 = arith.constant 0.000000e+00 : f32
    %266 = vector.broadcast %cst_264 : f32 to vector<1x1xf32>
    %267 = arith.maximumf %265, %266 : vector<1x1xf32>
    %268 = vector.broadcast %267 : vector<1x1xf32> to vector<16x1xf32>
    %269 = arith.mulf %268, %252 : vector<16x1xf32>
    %cst_265 = arith.constant dense<0.000000e+00> : vector<16xf32>
    %270 = vector.multi_reduction <add>, %269, %cst_265 [1] : vector<16x1xf32> to vector<16xf32>
    %271 = vector.shape_cast %270 : vector<16xf32> to vector<16x1xf32>
    %272 = arith.addf %271, %253 : vector<16x1xf32>
    %273 = arith.negf %272 : vector<16x1xf32>
    %274 = math.exp %273 : vector<16x1xf32>
    %cst_266 = arith.constant 1.000000e+00 : f32
    %275 = vector.broadcast %cst_266 : f32 to vector<16x1xf32>
    %276 = arith.addf %275, %274 : vector<16x1xf32>
    %277 = arith.divf %275, %276 : vector<16x1xf32>
    %c0_267 = arith.constant 0 : index
    %c16 = arith.constant 16 : index
    %c0_268 = arith.constant 0 : index
    %278 = vector.load %arg8[%c0_267, %c16, %c0_268] : memref<1x64x384xf32, #tpu.memory_space<vmem>>, vector<1x16x384xf32>
    %279 = vector.shape_cast %278 : vector<1x16x384xf32> to vector<16x384xf32>
    %280 = vector.broadcast %249 : vector<1x384xf32> to vector<16x384xf32>
    %281 = arith.mulf %279, %280 : vector<16x384xf32>
    %cst_269 = arith.constant dense<0.000000e+00> : vector<16xf32>
    %282 = vector.multi_reduction <add>, %281, %cst_269 [1] : vector<16x384xf32> to vector<16xf32>
    %283 = vector.shape_cast %282 : vector<16xf32> to vector<16x1xf32>
    %cst_270 = arith.constant 3.906250e-03 : f32
    %284 = vector.broadcast %cst_270 : f32 to vector<16x1xf32>
    %285 = arith.mulf %283, %284 : vector<16x1xf32>
    %286 = arith.mulf %285, %250 : vector<16x1xf32>
    %cst_271 = arith.constant dense<0.000000e+00> : vector<1xf32>
    %287 = vector.multi_reduction <add>, %286, %cst_271 [0] : vector<16x1xf32> to vector<1xf32>
    %288 = vector.shape_cast %287 : vector<1xf32> to vector<1x1xf32>
    %289 = arith.addf %288, %251 : vector<1x1xf32>
    %cst_272 = arith.constant 0.000000e+00 : f32
    %290 = vector.broadcast %cst_272 : f32 to vector<1x1xf32>
    %291 = arith.maximumf %289, %290 : vector<1x1xf32>
    %292 = vector.broadcast %291 : vector<1x1xf32> to vector<16x1xf32>
    %293 = arith.mulf %292, %252 : vector<16x1xf32>
    %cst_273 = arith.constant dense<0.000000e+00> : vector<16xf32>
    %294 = vector.multi_reduction <add>, %293, %cst_273 [1] : vector<16x1xf32> to vector<16xf32>
    %295 = vector.shape_cast %294 : vector<16xf32> to vector<16x1xf32>
    %296 = arith.addf %295, %253 : vector<16x1xf32>
    %297 = arith.negf %296 : vector<16x1xf32>
    %298 = math.exp %297 : vector<16x1xf32>
    %cst_274 = arith.constant 1.000000e+00 : f32
    %299 = vector.broadcast %cst_274 : f32 to vector<16x1xf32>
    %300 = arith.addf %299, %298 : vector<16x1xf32>
    %301 = arith.divf %299, %300 : vector<16x1xf32>
    %c0_275 = arith.constant 0 : index
    %c32_276 = arith.constant 32 : index
    %c0_277 = arith.constant 0 : index
    %302 = vector.load %arg8[%c0_275, %c32_276, %c0_277] : memref<1x64x384xf32, #tpu.memory_space<vmem>>, vector<1x16x384xf32>
    %303 = vector.shape_cast %302 : vector<1x16x384xf32> to vector<16x384xf32>
    %304 = vector.broadcast %249 : vector<1x384xf32> to vector<16x384xf32>
    %305 = arith.mulf %303, %304 : vector<16x384xf32>
    %cst_278 = arith.constant dense<0.000000e+00> : vector<16xf32>
    %306 = vector.multi_reduction <add>, %305, %cst_278 [1] : vector<16x384xf32> to vector<16xf32>
    %307 = vector.shape_cast %306 : vector<16xf32> to vector<16x1xf32>
    %cst_279 = arith.constant 3.906250e-03 : f32
    %308 = vector.broadcast %cst_279 : f32 to vector<16x1xf32>
    %309 = arith.mulf %307, %308 : vector<16x1xf32>
    %310 = arith.mulf %309, %250 : vector<16x1xf32>
    %cst_280 = arith.constant dense<0.000000e+00> : vector<1xf32>
    %311 = vector.multi_reduction <add>, %310, %cst_280 [0] : vector<16x1xf32> to vector<1xf32>
    %312 = vector.shape_cast %311 : vector<1xf32> to vector<1x1xf32>
    %313 = arith.addf %312, %251 : vector<1x1xf32>
    %cst_281 = arith.constant 0.000000e+00 : f32
    %314 = vector.broadcast %cst_281 : f32 to vector<1x1xf32>
    %315 = arith.maximumf %313, %314 : vector<1x1xf32>
    %316 = vector.broadcast %315 : vector<1x1xf32> to vector<16x1xf32>
    %317 = arith.mulf %316, %252 : vector<16x1xf32>
    %cst_282 = arith.constant dense<0.000000e+00> : vector<16xf32>
    %318 = vector.multi_reduction <add>, %317, %cst_282 [1] : vector<16x1xf32> to vector<16xf32>
    %319 = vector.shape_cast %318 : vector<16xf32> to vector<16x1xf32>
    %320 = arith.addf %319, %253 : vector<16x1xf32>
    %321 = arith.negf %320 : vector<16x1xf32>
    %322 = math.exp %321 : vector<16x1xf32>
    %cst_283 = arith.constant 1.000000e+00 : f32
    %323 = vector.broadcast %cst_283 : f32 to vector<16x1xf32>
    %324 = arith.addf %323, %322 : vector<16x1xf32>
    %325 = arith.divf %323, %324 : vector<16x1xf32>
    %c0_284 = arith.constant 0 : index
    %c48_285 = arith.constant 48 : index
    %c0_286 = arith.constant 0 : index
    %326 = vector.load %arg8[%c0_284, %c48_285, %c0_286] : memref<1x64x384xf32, #tpu.memory_space<vmem>>, vector<1x16x384xf32>
    %327 = vector.shape_cast %326 : vector<1x16x384xf32> to vector<16x384xf32>
    %328 = vector.broadcast %249 : vector<1x384xf32> to vector<16x384xf32>
    %329 = arith.mulf %327, %328 : vector<16x384xf32>
    %cst_287 = arith.constant dense<0.000000e+00> : vector<16xf32>
    %330 = vector.multi_reduction <add>, %329, %cst_287 [1] : vector<16x384xf32> to vector<16xf32>
    %331 = vector.shape_cast %330 : vector<16xf32> to vector<16x1xf32>
    %cst_288 = arith.constant 3.906250e-03 : f32
    %332 = vector.broadcast %cst_288 : f32 to vector<16x1xf32>
    %333 = arith.mulf %331, %332 : vector<16x1xf32>
    %334 = arith.mulf %333, %250 : vector<16x1xf32>
    %cst_289 = arith.constant dense<0.000000e+00> : vector<1xf32>
    %335 = vector.multi_reduction <add>, %334, %cst_289 [0] : vector<16x1xf32> to vector<1xf32>
    %336 = vector.shape_cast %335 : vector<1xf32> to vector<1x1xf32>
    %337 = arith.addf %336, %251 : vector<1x1xf32>
    %cst_290 = arith.constant 0.000000e+00 : f32
    %338 = vector.broadcast %cst_290 : f32 to vector<1x1xf32>
    %339 = arith.maximumf %337, %338 : vector<1x1xf32>
    %340 = vector.broadcast %339 : vector<1x1xf32> to vector<16x1xf32>
    %341 = arith.mulf %340, %252 : vector<16x1xf32>
    %cst_291 = arith.constant dense<0.000000e+00> : vector<16xf32>
    %342 = vector.multi_reduction <add>, %341, %cst_291 [1] : vector<16x1xf32> to vector<16xf32>
    %343 = vector.shape_cast %342 : vector<16xf32> to vector<16x1xf32>
    %344 = arith.addf %343, %253 : vector<16x1xf32>
    %345 = arith.negf %344 : vector<16x1xf32>
    %346 = math.exp %345 : vector<16x1xf32>
    %cst_292 = arith.constant 1.000000e+00 : f32
    %347 = vector.broadcast %cst_292 : f32 to vector<16x1xf32>
    %348 = arith.addf %347, %346 : vector<16x1xf32>
    %349 = arith.divf %347, %348 : vector<16x1xf32>
    %350 = arith.maximumf %277, %301 : vector<16x1xf32>
    %351 = arith.maximumf %325, %349 : vector<16x1xf32>
    %352 = arith.maximumf %350, %351 : vector<16x1xf32>
    %353 = arith.subf %277, %352 : vector<16x1xf32>
    %354 = math.exp %353 : vector<16x1xf32>
    %355 = arith.subf %301, %352 : vector<16x1xf32>
    %356 = math.exp %355 : vector<16x1xf32>
    %357 = arith.subf %325, %352 : vector<16x1xf32>
    %358 = math.exp %357 : vector<16x1xf32>
    %359 = arith.subf %349, %352 : vector<16x1xf32>
    %360 = math.exp %359 : vector<16x1xf32>
    %361 = arith.addf %354, %356 : vector<16x1xf32>
    %362 = arith.addf %361, %358 : vector<16x1xf32>
    %363 = arith.addf %362, %360 : vector<16x1xf32>
    %364 = tpu.reciprocal %363 {approx = true} : vector<16x1xf32> -> vector<16x1xf32>
    %365 = arith.mulf %354, %364 : vector<16x1xf32>
    %c0_293 = arith.constant 0 : index
    %c0_294 = arith.constant 0 : index
    %c0_295 = arith.constant 0 : index
    %366 = vector.load %arg8[%c0_293, %c0_294, %c0_295] : memref<1x64x384xf32, #tpu.memory_space<vmem>>, vector<1x16x384xf32>
    %367 = vector.shape_cast %366 : vector<1x16x384xf32> to vector<16x384xf32>
    %368 = vector.broadcast %365 : vector<16x1xf32> to vector<16x384xf32>
    %369 = arith.mulf %367, %368 : vector<16x384xf32>
    %c0_296 = arith.constant 0 : index
    %c0_297 = arith.constant 0 : index
    %c0_298 = arith.constant 0 : index
    %370 = vector.load %arg8[%c0_296, %c0_297, %c0_298] : memref<1x64x384xf32, #tpu.memory_space<vmem>>, vector<1x16x384xf32>
    %371 = vector.shape_cast %370 : vector<1x16x384xf32> to vector<16x384xf32>
    %372 = vector.shape_cast %369 : vector<16x384xf32> to vector<1x16x384xf32>
    tpu.vector_store %arg8[%c0_296, %c0_297, %c0_298], %372 {strides = array<i32>} : memref<1x64x384xf32, #tpu.memory_space<vmem>>, vector<1x16x384xf32>,
    %373 = arith.mulf %356, %364 : vector<16x1xf32>
    %c0_299 = arith.constant 0 : index
    %c16_300 = arith.constant 16 : index
    %c0_301 = arith.constant 0 : index
    %374 = vector.load %arg8[%c0_299, %c16_300, %c0_301] : memref<1x64x384xf32, #tpu.memory_space<vmem>>, vector<1x16x384xf32>
    %375 = vector.shape_cast %374 : vector<1x16x384xf32> to vector<16x384xf32>
    %376 = vector.broadcast %373 : vector<16x1xf32> to vector<16x384xf32>
    %377 = arith.mulf %375, %376 : vector<16x384xf32>
    %c0_302 = arith.constant 0 : index
    %c16_303 = arith.constant 16 : index
    %c0_304 = arith.constant 0 : index
    %378 = vector.load %arg8[%c0_302, %c16_303, %c0_304] : memref<1x64x384xf32, #tpu.memory_space<vmem>>, vector<1x16x384xf32>
    %379 = vector.shape_cast %378 : vector<1x16x384xf32> to vector<16x384xf32>
    %380 = vector.shape_cast %377 : vector<16x384xf32> to vector<1x16x384xf32>
    tpu.vector_store %arg8[%c0_302, %c16_303, %c0_304], %380 {strides = array<i32>} : memref<1x64x384xf32, #tpu.memory_space<vmem>>, vector<1x16x384xf32>,
    %381 = arith.mulf %358, %364 : vector<16x1xf32>
    %c0_305 = arith.constant 0 : index
    %c32_306 = arith.constant 32 : index
    %c0_307 = arith.constant 0 : index
    %382 = vector.load %arg8[%c0_305, %c32_306, %c0_307] : memref<1x64x384xf32, #tpu.memory_space<vmem>>, vector<1x16x384xf32>
    %383 = vector.shape_cast %382 : vector<1x16x384xf32> to vector<16x384xf32>
    %384 = vector.broadcast %381 : vector<16x1xf32> to vector<16x384xf32>
    %385 = arith.mulf %383, %384 : vector<16x384xf32>
    %c0_308 = arith.constant 0 : index
    %c32_309 = arith.constant 32 : index
    %c0_310 = arith.constant 0 : index
    %386 = vector.load %arg8[%c0_308, %c32_309, %c0_310] : memref<1x64x384xf32, #tpu.memory_space<vmem>>, vector<1x16x384xf32>
    %387 = vector.shape_cast %386 : vector<1x16x384xf32> to vector<16x384xf32>
    %388 = vector.shape_cast %385 : vector<16x384xf32> to vector<1x16x384xf32>
    tpu.vector_store %arg8[%c0_308, %c32_309, %c0_310], %388 {strides = array<i32>} : memref<1x64x384xf32, #tpu.memory_space<vmem>>, vector<1x16x384xf32>,
    %389 = arith.mulf %360, %364 : vector<16x1xf32>
    %c0_311 = arith.constant 0 : index
    %c48_312 = arith.constant 48 : index
    %c0_313 = arith.constant 0 : index
    %390 = vector.load %arg8[%c0_311, %c48_312, %c0_313] : memref<1x64x384xf32, #tpu.memory_space<vmem>>, vector<1x16x384xf32>
    %391 = vector.shape_cast %390 : vector<1x16x384xf32> to vector<16x384xf32>
    %392 = vector.broadcast %389 : vector<16x1xf32> to vector<16x384xf32>
    %393 = arith.mulf %391, %392 : vector<16x384xf32>
    %c0_314 = arith.constant 0 : index
    %c48_315 = arith.constant 48 : index
    %c0_316 = arith.constant 0 : index
    %394 = vector.load %arg8[%c0_314, %c48_315, %c0_316] : memref<1x64x384xf32, #tpu.memory_space<vmem>>, vector<1x16x384xf32>
    %395 = vector.shape_cast %394 : vector<1x16x384xf32> to vector<16x384xf32>
    %396 = vector.shape_cast %393 : vector<16x384xf32> to vector<1x16x384xf32>
    tpu.vector_store %arg8[%c0_314, %c48_315, %c0_316], %396 {strides = array<i32>} : memref<1x64x384xf32, #tpu.memory_space<vmem>>, vector<1x16x384xf32>,
    return
  }
  func.func @transform_0(%arg0: i32) -> (i32, i32, i32) {
    %c0_i32 = arith.constant 0 : i32
    %c0_i32_0 = arith.constant 0 : i32
    %c0_i32_1 = arith.constant 0 : i32
    return %arg0, %c0_i32, %c0_i32_0 : i32, i32, i32
  }
  func.func @transform_1(%arg0: i32) -> (i32, i32, i32) {
    %c0_i32 = arith.constant 0 : i32
    %c0_i32_0 = arith.constant 0 : i32
    %c0_i32_1 = arith.constant 0 : i32
    %c0_i32_2 = arith.constant 0 : i32
    return %c0_i32, %c0_i32_0, %c0_i32_1 : i32, i32, i32
  }
  func.func @transform_2(%arg0: i32) -> (i32, i32) {
    %c0_i32 = arith.constant 0 : i32
    %c0_i32_0 = arith.constant 0 : i32
    %c0_i32_1 = arith.constant 0 : i32
    return %c0_i32, %c0_i32_0 : i32, i32
  }
  func.func @transform_3(%arg0: i32) -> (i32, i32) {
    %c0_i32 = arith.constant 0 : i32
    %c0_i32_0 = arith.constant 0 : i32
    %c0_i32_1 = arith.constant 0 : i32
    return %c0_i32, %c0_i32_0 : i32, i32
  }
  func.func @transform_4(%arg0: i32) -> (i32, i32) {
    %c0_i32 = arith.constant 0 : i32
    %c0_i32_0 = arith.constant 0 : i32
    %c0_i32_1 = arith.constant 0 : i32
    return %c0_i32, %c0_i32_0 : i32, i32
  }
  func.func @transform_5(%arg0: i32) -> (i32, i32) {
    %c0_i32 = arith.constant 0 : i32
    %c0_i32_0 = arith.constant 0 : i32
    %c0_i32_1 = arith.constant 0 : i32
    return %c0_i32, %c0_i32_0 : i32, i32
  }
  func.func @transform_6(%arg0: i32) -> (i32, i32) {
    %c0_i32 = arith.constant 0 : i32
    %c0_i32_0 = arith.constant 0 : i32
    %c0_i32_1 = arith.constant 0 : i32
    return %c0_i32, %c0_i32_0 : i32, i32
  }
  func.func @transform_7(%arg0: i32) -> (i32, i32, i32) {
    %c0_i32 = arith.constant 0 : i32
    %c0_i32_0 = arith.constant 0 : i32
    %c0_i32_1 = arith.constant 0 : i32
    return %arg0, %c0_i32, %c0_i32_0 : i32, i32, i32
  }
}

</mosaic_0001>

<bundles_post_ra>
// kernel: run.1
= control target key start
LH: loop header
LB: loop body
LE: loop exit
PB: predicated region body
PF: predicated region fallthrough
CT: control target
= control target key end

     0   :  { %s5703_s26 = smov 0   ;;  %s9213_s0 = inlined_call_operand.vmem [shape: bf16[2,16,640], index: 0, kind: input, shape index: {}]   ;;  %s9214_s1 = inlined_call_operand.vmem [shape: bf16[9,64,144], index: 1, kind: input, shape index: {}]   ;;  %s9215_s2 = inlined_call_operand.vmem [shape: f32[1,384], index: 2, kind: input, shape index: {}]   ;;  %s9216_s3 = inlined_call_operand.vmem [shape: f32[16,1], index: 3, kind: input, shape index: {}]   ;;  %s9217_s4 = inlined_call_operand.<no memory space> [shape: f32[1,1], index: 4, kind: input, shape index: {}]   ;;  %s9218_s5 = inlined_call_operand.vmem [shape: f32[16,1], index: 5, kind: input, shape index: {}]   ;;  %s9219_s6 = inlined_call_operand.vmem [shape: f32[16,1], index: 6, kind: input, shape index: {}]   ;;  %s9220_s7 = inlined_call_operand.vmem [shape: f32[2,64,384], index: 7, kind: output, shape index: {}]  }
   0x1   :  { %v12_v0 = vstv %s9217_s4 }
   0x2   :  { %13 = vst [vmem:[#allocation2] sm:$0x1] %v12_v0 }
   0x3 LB: > { %s5141_s27 = sadd.s32 4294967295, %s5641_s26   ;;  %p5145_p0 = scmp.ge.s32.totalorder %s5641_s26, 1  ;;  %s5641_s26 = sphi %s5703_s26, %s19_s26  }
   0x4   : > { %p239_p1 = scmp.lt.s32.totalorder %s5641_s26, 3 }
   0x6   : > { %p240_p2 = pnand %p5145_p0, %p239_p1 }
   0x8   : > { %243 = sbr.rel (%p240_p2) target bundleno = 2052 (0x804), region = 48 }
   0xd   : > { %p271_p3 = scmp.lt.s32.totalorder %s5141_s27, 1  ;;  %s5643_s8 = smov 127   ;;  %v9221_v5 = vmov 0   ;;  %vm410_vm0 = vcmask 990208   ;;  %vm395_vm1 = vcmask 998400   ;;  %vm380_vm2 = vcmask 1006592  }
   0xe   : > { %s5644_s9 = smov 126   ;;  %s5645_s10 = smov 125   ;;  %562 = vmatprep.subr.bf16.mxu1 %v9221_v5  ;;  %5434 = vset.pattern.permute.xlu1 %v9221_v5  ;;  %vm365_vm3 = vcmask 1014784   ;;  %vm320_vm4 = vcmask 1039360   ;;  %vm350_vm5 = vcmask 1022976   ;;  %vm335_vm6 = vcmask 1031168  }
   0xf   : > { %s9401_s27 = smov (!%p271_p3, %s5141_s27), 1  ;;  %s5646_s11 = smov 124   ;;  %5433 = vset.pattern.permute.xlu0 %v9221_v5  ;;  %vm425_vm7 = vcmask 982016   ;;  %vm476_vm8 = vcmask 130048   ;;  %vm876_vm9 = vcmask 850944   ;;  %vm1378_vm10 = vcmask 654336  }
  0x10   : > { %s5406_s4 = smul.u32 40, %s9401_s27  ;;  %s5647_s12 = smov 123   ;;  %vm1880_vm11 = vcmask 457728   ;;  %vm2382_vm12 = vcmask 261120   ;;  %vm2898_vm13 = vcmask 64512   ;;  %vm3400_vm14 = vcmask 916480  }
  0x11   : > { %s5648_s13 = smov 122   ;;  %s5650_s14 = smov 121   ;;  %vm3902_vm15 = vcmask 719872  }
  0x12   : > { %s5717_s30 = scalar_lea.vmem %s9213_s0, %s5406_s4  ;;  %s5651_s15 = smov 120  }
  0x13   : > { %v5720_v1 = vld [vmem:[%s5717_s30 + $0x8] ss:$20 sps:$4 sm:$0xff]   ;;  %v5723_v2 = vld [vmem:[%s5717_s30] ss:$20 sps:$4 sm:$0xff]   ;;  %v5731_v4 = vld [vmem:[%s5717_s30 + $0x4] ss:$20 sps:$4 sm:$0xff]  }
  0x14   : > { %316 = vrot.lane.b32.xlu1 %v5720_v1, %s5643_s8  ;;  %v5728_v3 = vld [vmem:[%s5717_s30 + $0xc] ss:$20 sps:$4 sm:$0xff]   ;;  %312 = vrot.lane.b32.xlu0 %v5723_v2, %s5643_s8  ;;  %s5652_s16 = smov 104   ;;  %s5653_s21 = smov 80  }
  0x15   : > { %s5655_s19 = smov 32   ;;  %s5656_s24 = smov 8  }
  0x16   : > { %s5657_s29 = smov 112   ;;  %s5658_s28 = smov 88  }
  0x18   : > { %318 = vrot.lane.b32.xlu1 %v5728_v3, %s5643_s8  ;;  %314 = vrot.lane.b32.xlu0 %v5731_v4, %s5643_s8 }
  0x1c   : > { %329 = vrot.lane.b32.xlu1 %v5731_v4, %s5644_s9  ;;  %327 = vrot.lane.b32.xlu0 %v5723_v2, %s5644_s9 }
  0x20   : > { %333 = vrot.lane.b32.xlu1 %v5728_v3, %s5644_s9  ;;  %331 = vrot.lane.b32.xlu0 %v5720_v1, %s5644_s9 }
  0x24   : > { %344 = vrot.lane.b32.xlu1 %v5731_v4, %s5645_s10  ;;  %342 = vrot.lane.b32.xlu0 %v5723_v2, %s5645_s10 }
  0x28   : > { %348 = vrot.lane.b32.xlu1 %v5728_v3, %s5645_s10  ;;  %346 = vrot.lane.b32.xlu0 %v5720_v1, %s5645_s10 }
  0x2c   : > { %359 = vrot.lane.b32.xlu1 %v5731_v4, %s5646_s11  ;;  %357 = vrot.lane.b32.xlu0 %v5723_v2, %s5646_s11 }
  0x30   : > { %363 = vrot.lane.b32.xlu1 %v5728_v3, %s5646_s11  ;;  %361 = vrot.lane.b32.xlu0 %v5720_v1, %s5646_s11 }
  0x34   : > { %374 = vrot.lane.b32.xlu1 %v5731_v4, %s5647_s12  ;;  %372 = vrot.lane.b32.xlu0 %v5723_v2, %s5647_s12 }
  0x38   : > { %378 = vrot.lane.b32.xlu1 %v5728_v3, %s5647_s12  ;;  %376 = vrot.lane.b32.xlu0 %v5720_v1, %s5647_s12 }
  0x3c   : > { %389 = vrot.lane.b32.xlu1 %v5731_v4, %s5648_s13  ;;  %387 = vrot.lane.b32.xlu0 %v5723_v2, %s5648_s13 }
  0x40   : > { %393 = vrot.lane.b32.xlu1 %v5728_v3, %s5648_s13  ;;  %391 = vrot.lane.b32.xlu0 %v5720_v1, %s5648_s13 }
  0x44   : > { %404 = vrot.lane.b32.xlu1 %v5731_v4, %s5650_s14  ;;  %402 = vrot.lane.b32.xlu0 %v5723_v2, %s5650_s14 }
  0x48   : > { %408 = vrot.lane.b32.xlu1 %v5728_v3, %s5650_s14  ;;  %406 = vrot.lane.b32.xlu0 %v5720_v1, %s5650_s14 }
  0x4c   : > { %419 = vrot.lane.b32.xlu1 %v5731_v4, %s5651_s15  ;;  %417 = vrot.lane.b32.xlu0 %v5723_v2, %s5651_s15 }
  0x50   : > { %423 = vrot.lane.b32.xlu1 %v5728_v3, %s5651_s15  ;;  %421 = vrot.lane.b32.xlu0 %v5720_v1, %s5651_s15 }
  0x54   : > { %673 = vrot.lane.b32.xlu1 %v5731_v4, %s5643_s8  ;;  %671 = vrot.lane.b32.xlu0 %v5723_v2, %s5643_s8 }
  0x58   : > { %677 = vrot.lane.b32.xlu1 %v5728_v3, %s5643_s8  ;;  %675 = vrot.lane.b32.xlu0 %v5720_v1, %s5643_s8 }
  0x5c   : > { %684 = vrot.lane.b32.xlu1 %v5731_v4, %s5644_s9  ;;  %682 = vrot.lane.b32.xlu0 %v5723_v2, %s5644_s9 }
  0x60   : > { %688 = vrot.lane.b32.xlu1 %v5728_v3, %s5644_s9  ;;  %686 = vrot.lane.b32.xlu0 %v5720_v1, %s5644_s9 }
  0x64   : > { %695 = vrot.lane.b32.xlu1 %v5731_v4, %s5645_s10  ;;  %693 = vrot.lane.b32.xlu0 %v5723_v2, %s5645_s10 }
  0x68   : > { %699 = vrot.lane.b32.xlu1 %v5728_v3, %s5645_s10  ;;  %697 = vrot.lane.b32.xlu0 %v5720_v1, %s5645_s10 }
  0x6c   : > { %706 = vrot.lane.b32.xlu1 %v5731_v4, %s5646_s11  ;;  %704 = vrot.lane.b32.xlu0 %v5723_v2, %s5646_s11 }
  0x70   : > { %710 = vrot.lane.b32.xlu1 %v5728_v3, %s5646_s11  ;;  %708 = vrot.lane.b32.xlu0 %v5720_v1, %s5646_s11 }
  0x74   : > { %717 = vrot.lane.b32.xlu1 %v5731_v4, %s5647_s12  ;;  %715 = vrot.lane.b32.xlu0 %v5723_v2, %s5647_s12 }
  0x78   : > { %721 = vrot.lane.b32.xlu1 %v5728_v3, %s5647_s12  ;;  %719 = vrot.lane.b32.xlu0 %v5720_v1, %s5647_s12 }
  0x7c   : > { %728 = vrot.lane.b32.xlu1 %v5731_v4, %s5648_s13  ;;  %726 = vrot.lane.b32.xlu0 %v5723_v2, %s5648_s13 }
  0x80   : > { %732 = vrot.lane.b32.xlu1 %v5728_v3, %s5648_s13  ;;  %730 = vrot.lane.b32.xlu0 %v5720_v1, %s5648_s13 }
  0x84   : > { %739 = vrot.lane.b32.xlu1 %v5731_v4, %s5650_s14  ;;  %737 = vrot.lane.b32.xlu0 %v5723_v2, %s5650_s14 }
  0x86   : > { %v5850_v6 = vpop.permute.xlu1 %316  ;;  %v5852_v7 = vpop.permute.xlu0 %312 }
  0x88   : > { %743 = vrot.lane.b32.xlu1 %v5728_v3, %s5650_s14  ;;  %741 = vrot.lane.b32.xlu0 %v5720_v1, %s5650_s14 }
  0x8a   : > { %v5858_v8 = vpop.permute.xlu1 %318  ;;  %v5860_v9 = vpop.permute.xlu0 %314 }
  0x8c   : > { %750 = vrot.lane.b32.xlu1 %v5731_v4, %s5651_s15  ;;  %748 = vrot.lane.b32.xlu0 %v5723_v2, %s5651_s15 }
  0x8e   : > { %v5866_v10 = vpop.permute.xlu1 %329  ;;  %v5868_v11 = vpop.permute.xlu0 %327 }
  0x90   : > { %754 = vrot.lane.b32.xlu1 %v5728_v3, %s5651_s15  ;;  %752 = vrot.lane.b32.xlu0 %v5720_v1, %s5651_s15 }
  0x92   : > { %v5874_v12 = vpop.permute.xlu1 %333  ;;  %v5876_v13 = vpop.permute.xlu0 %331 }
  0x93   : > { %v337_v61 = vsel %vm335_vm6, %v5866_v10, %v5876_v13  ;;  %v338_v63 = vsel %vm335_vm6, %v5876_v13, %v5874_v12  ;;  %v323_v13 = vsel %vm320_vm4, %v5850_v6, %v5858_v8 }
  0x94   : > { %806 = vrot.lane.b32.xlu1 %v5731_v4, %s5652_s16  ;;  %804 = vrot.lane.b32.xlu0 %v5723_v2, %s5652_s16 }
  0x96   : > { %v5882_v14 = vpop.permute.xlu1 %344  ;;  %v5884_v15 = vpop.permute.xlu0 %342 }
  0x97   : > { %v351_v59 = vsel %vm350_vm5, %v5884_v15, %v5882_v14 }
  0x98   : > { %810 = vrot.lane.b32.xlu1 %v5728_v3, %s5652_s16  ;;  %808 = vrot.lane.b32.xlu0 %v5720_v1, %s5652_s16 }
  0x9a   : > { %v5890_v16 = vpop.permute.xlu1 %348  ;;  %v5892_v17 = vpop.permute.xlu0 %346 }
  0x9b   : > { %v352_v54 = vsel %vm350_vm5, %v5882_v14, %v5892_v17  ;;  %v353_v56 = vsel %vm350_vm5, %v5892_v17, %v5890_v16  ;;  %v336_v14 = vsel %vm335_vm6, %v5868_v11, %v5866_v10  ;;  %v322_v16 = vsel %vm320_vm4, %v5860_v9, %v5850_v6 }
  0x9c   : > { %v321_v11 = vsel %vm320_vm4, %v5852_v7, %v5860_v9 }
  0x9e   : > { %v360_v18 = vpop.permute.xlu1 %359  ;;  %v358_v19 = vpop.permute.xlu0 %357 }
  0x9f   : > { %v366_v52 = vsel %vm365_vm3, %v358_v19, %v360_v18 }
  0xa2   : > { %v364_v20 = vpop.permute.xlu1 %363  ;;  %v362_v21 = vpop.permute.xlu0 %361 }
  0xa3   : > { %v367_v48 = vsel %vm365_vm3, %v360_v18, %v362_v21  ;;  %v368_v50 = vsel %vm365_vm3, %v362_v21, %v364_v20  ;;  %v5441_v18 = vld [vmem:[%s5717_s30 + $0x8] ss:$20 sps:$4 sm:$0xff]  }
  0xa6   : > { %v375_v22 = vpop.permute.xlu1 %374  ;;  %v373_v23 = vpop.permute.xlu0 %372 }
  0xa7   : > { %v381_v46 = vsel %vm380_vm2, %v373_v23, %v375_v22 }
  0xaa   : > { %v379_v24 = vpop.permute.xlu1 %378  ;;  %v377_v25 = vpop.permute.xlu0 %376 }
  0xab   : > { %v382_v43 = vsel %vm380_vm2, %v375_v22, %v377_v25  ;;  %v383_v45 = vsel %vm380_vm2, %v377_v25, %v379_v24 }
  0xae   : > { %v390_v26 = vpop.permute.xlu1 %389  ;;  %v388_v27 = vpop.permute.xlu0 %387 }
  0xaf   : > { %v396_v41 = vsel %vm395_vm1, %v388_v27, %v390_v26 }
  0xb2   : > { %v394_v28 = vpop.permute.xlu1 %393  ;;  %v392_v29 = vpop.permute.xlu0 %391 }
  0xb3   : > { %v397_v38 = vsel %vm395_vm1, %v390_v26, %v392_v29  ;;  %v398_v40 = vsel %vm395_vm1, %v392_v29, %v394_v28 }
  0xb6   : > { %v405_v30 = vpop.permute.xlu1 %404  ;;  %v403_v31 = vpop.permute.xlu0 %402 }
  0xb7   : > { %v411_v36 = vsel %vm410_vm0, %v403_v31, %v405_v30 }
  0xba   : > { %v409_v32 = vpop.permute.xlu1 %408  ;;  %v407_v33 = vpop.permute.xlu0 %406 }
  0xbb   : > { %v412_v34 = vsel %vm410_vm0, %v405_v30, %v407_v33  ;;  %v413_v35 = vsel %vm410_vm0, %v407_v33, %v409_v32 }
  0xbc   : > { %489 = vmatprep.subr.bf16.mxu0 %v412_v34  ;;  %563 = vmatpush1.bf16.msra.mxu1 %v413_v35 }
  0xbd   : > { %490 = vmatpush1.bf16.msra.mxu0 %v411_v36  ;;  %564 = vmatprep.subr.bf16.mxu1 %v9221_v5 }
  0xbe   : > { %v5897_v37 = vpop.permute.xlu1 %419  ;;  %491 = vmatprep.subr.bf16.mxu0 %v397_v38  ;;  %v5901_v39 = vpop.permute.xlu0 %417 }
  0xbf   : > { %v426_v24 = vsel %vm425_vm7, %v5901_v39, %v5897_v37 }
  0xc0   : > { %565 = vmatpush1.bf16.msra.mxu1 %v398_v40 }
  0xc1   : > { %492 = vmatpush1.bf16.msra.mxu0 %v396_v41  ;;  %566 = vmatprep.subr.bf16.mxu1 %v9221_v5 }
  0xc2   : > { %v5905_v42 = vpop.permute.xlu1 %423  ;;  %493 = vmatprep.subr.bf16.mxu0 %v382_v43  ;;  %v5909_v44 = vpop.permute.xlu0 %421  ;;  %v5444_v43 = vld [vmem:[%s9214_s1 + $0x4] ss:$8 sps:$4 sm:$0xff]  }
  0xc3   : > { %v427_v8 = vsel %vm425_vm7, %v5897_v37, %v5909_v44  ;;  %v428_v21 = vsel %vm425_vm7, %v5909_v44, %v5905_v42  ;;  %v5442_v42 = vld [vmem:[%s9214_s1] ss:$8 sps:$4 sm:$0xff]   ;;  %5161 = vmatprep.mubr.msk.bf16.mxu0 %vm476_vm8, %v5444_v43  ;;  %5165 = vmatprep.mubr.msk.bf16.mxu1 %vm476_vm8, %v5444_v43 }
  0xc4   : > { %567 = vmatpush1.bf16.msra.mxu1 %v383_v45 }
  0xc5   : > { %494 = vmatpush1.bf16.msra.mxu0 %v381_v46  ;;  %568 = vmatprep.subr.bf16.mxu1 %v9221_v5 }
  0xc6   : > { %v674_v47 = vpop.permute.xlu1 %673  ;;  %495 = vmatprep.subr.bf16.mxu0 %v367_v48  ;;  %v672_v49 = vpop.permute.xlu0 %671 }
  0xc7   : > { %v679_v51 = vsel %vm320_vm4, %v672_v49, %v674_v47 }
  0xc8   : > { %569 = vmatpush1.bf16.msra.mxu1 %v368_v50  ;;  %812 = vrot.lane.b32.xlu0 %v679_v51, %s5652_s16 }
  0xc9   : > { %496 = vmatpush1.bf16.msra.mxu0 %v366_v52  ;;  %570 = vmatprep.subr.bf16.mxu1 %v9221_v5 }
  0xca   : > { %v678_v53 = vpop.permute.xlu1 %677  ;;  %497 = vmatprep.subr.bf16.mxu0 %v352_v54  ;;  %v676_v55 = vpop.permute.xlu0 %675 }
  0xcb   : > { %v681_v57 = vsel %vm320_vm4, %v676_v55, %v678_v53  ;;  %v680_v58 = vsel %vm320_vm4, %v674_v47, %v676_v55 }
  0xcc   : > { %571 = vmatpush1.bf16.msra.mxu1 %v353_v56  ;;  %816 = vrot.lane.b32.xlu0 %v681_v57, %s5652_s16 }
  0xcd   : > { %814 = vrot.lane.b32.xlu1 %v680_v58, %s5652_s16  ;;  %498 = vmatpush1.bf16.msra.mxu0 %v351_v59 }
  0xce   : > { %v685_v60 = vpop.permute.xlu1 %684  ;;  %499 = vmatprep.subr.bf16.mxu0 %v337_v61  ;;  %v683_v62 = vpop.permute.xlu0 %682  ;;  %572 = vmatprep.subr.bf16.mxu1 %v9221_v5 }
  0xcf   : > { %v690_v0 = vsel %vm335_vm6, %v683_v62, %v685_v60 }
  0xd0   : > { %573 = vmatpush1.bf16.msra.mxu1 %v338_v63  ;;  %820 = vrot.lane.b32.xlu0 %v690_v0, %s5652_s16 }
  0xd1   : > { %818 = vrot.lane.b32.xlu1 %v678_v53, %s5652_s16  ;;  %500 = vmatpush1.bf16.msra.mxu0 %v336_v14 }
  0xd2   : > { %v689_v15 = vpop.permute.xlu1 %688  ;;  %501 = vmatprep.subr.bf16.mxu0 %v322_v16  ;;  %v687_v12 = vpop.permute.xlu0 %686  ;;  %574 = vmatprep.subr.bf16.mxu1 %v9221_v5 }
  0xd3   : > { %v692_v17 = vsel %vm335_vm6, %v687_v12, %v689_v15  ;;  %v691_v10 = vsel %vm335_vm6, %v685_v60, %v687_v12 }
  0xd4   : > { %575 = vmatpush1.bf16.msra.mxu1 %v323_v13  ;;  %824 = vrot.lane.b32.xlu0 %v692_v17, %s5652_s16 }
  0xd5   : > { %822 = vrot.lane.b32.xlu1 %v691_v10, %s5652_s16  ;;  %502 = vmatpush1.bf16.msra.mxu0 %v321_v11 }
  0xd6   : > { %v696_v19 = vpop.permute.xlu1 %695  ;;  %v694_v20 = vpop.permute.xlu0 %693  ;;  %576 = vmatprep.subr.bf16.mxu1 %v9221_v5  ;;  %503 = vmatprep.subr.bf16.mxu0 %v5731_v4 }
  0xd7   : > { %v701_v6 = vsel %vm350_vm5, %v694_v20, %v696_v19 }
  0xd8   : > { %577 = vmatpush1.bf16.msra.mxu1 %v5441_v18  ;;  %828 = vrot.lane.b32.xlu0 %v701_v6, %s5652_s16 }
  0xd9   : > { %826 = vrot.lane.b32.xlu1 %v689_v15, %s5652_s16  ;;  %504 = vmatpush1.bf16.msra.mxu0 %v5723_v2 }
  0xda   : > { %v700_v7 = vpop.permute.xlu1 %699  ;;  %519 = vmatprep.subr.bf16.mxu0 %v427_v8  ;;  %v698_v9 = vpop.permute.xlu0 %697  ;;  %592 = vmatprep.subr.bf16.mxu1 %v9221_v5 }
  0xdb   : > { %v703_v22 = vsel %vm350_vm5, %v698_v9, %v700_v7  ;;  %v702_v23 = vsel %vm350_vm5, %v696_v19, %v698_v9 }
  0xdc   : > { %593 = vmatpush2.bf16.msra.mxu1 %v428_v21  ;;  %832 = vrot.lane.b32.xlu0 %v703_v22, %s5652_s16 }
  0xdd   : > { %830 = vrot.lane.b32.xlu1 %v702_v23, %s5652_s16  ;;  %520 = vmatpush2.bf16.msra.mxu0 %v426_v24 }
  0xde   : > { %v707_v25 = vpop.permute.xlu1 %706  ;;  %v705_v26 = vpop.permute.xlu0 %704  ;;  %1016 = vmatprep.subr.bf16.mxu1 %v9221_v5 }
  0xdf   : > { %v712_v27 = vsel %vm365_vm3, %v705_v26, %v707_v25  ;;  %595 = vmatmul.mubr.bf16.vlgmr.msra.gmra.mxu1 %v5442_v42 }
  0xe0   : > { %836 = vrot.lane.b32.xlu0 %v712_v27, %s5652_s16  ;;  %522 = vmatmul.mubr.bf16.vlgmr.msra.gmra.mxu0 %v5442_v42 }
  0xe1   : > { %834 = vrot.lane.b32.xlu1 %v700_v7, %s5652_s16 }
  0xe2   : > { %v711_v28 = vpop.permute.xlu1 %710  ;;  %v709_v29 = vpop.permute.xlu0 %708 }
  0xe3   : > { %v714_v30 = vsel %vm365_vm3, %v709_v29, %v711_v28  ;;  %v713_v31 = vsel %vm365_vm3, %v707_v25, %v709_v29 }
  0xe4   : > { %840 = vrot.lane.b32.xlu0 %v714_v30, %s5652_s16 }
  0xe5   : > { %838 = vrot.lane.b32.xlu1 %v713_v31, %s5652_s16 }
  0xe6   : > { %v718_v32 = vpop.permute.xlu1 %717  ;;  %v716_v33 = vpop.permute.xlu0 %715 }
  0xe7   : > { %v723_v34 = vsel %vm380_vm2, %v716_v33, %v718_v32 }
  0xe8   : > { %844 = vrot.lane.b32.xlu0 %v723_v34, %s5652_s16 }
  0xe9   : > { %842 = vrot.lane.b32.xlu1 %v711_v28, %s5652_s16 }
  0xea   : > { %v722_v35 = vpop.permute.xlu1 %721  ;;  %v720_v36 = vpop.permute.xlu0 %719 }
  0xeb   : > { %v725_v37 = vsel %vm380_vm2, %v720_v36, %v722_v35  ;;  %v724_v38 = vsel %vm380_vm2, %v718_v32, %v720_v36 }
  0xec   : > { %848 = vrot.lane.b32.xlu0 %v725_v37, %s5652_s16 }
  0xed   : > { %846 = vrot.lane.b32.xlu1 %v724_v38, %s5652_s16 }
  0xee   : > { %v729_v39 = vpop.permute.xlu1 %728  ;;  %v727_v40 = vpop.permute.xlu0 %726 }
  0xef   : > { %v734_v41 = vsel %vm395_vm1, %v727_v40, %v729_v39 }
  0xf0   : > { %852 = vrot.lane.b32.xlu0 %v734_v41, %s5652_s16 }
  0xf1   : > { %850 = vrot.lane.b32.xlu1 %v722_v35, %s5652_s16 }
  0xf2   : > { %v733_v44 = vpop.permute.xlu1 %732  ;;  %v731_v45 = vpop.permute.xlu0 %730 }
  0xf3   : > { %v736_v46 = vsel %vm395_vm1, %v731_v45, %v733_v44  ;;  %v735_v47 = vsel %vm395_vm1, %v729_v39, %v731_v45 }
  0xf4   : > { %856 = vrot.lane.b32.xlu0 %v736_v46, %s5652_s16 }
  0xf5   : > { %854 = vrot.lane.b32.xlu1 %v735_v47, %s5652_s16 }
  0xf6   : > { %v740_v48 = vpop.permute.xlu1 %739  ;;  %v738_v49 = vpop.permute.xlu0 %737 }
  0xf7   : > { %v745_v50 = vsel %vm410_vm0, %v738_v49, %v740_v48 }
  0xf8   : > { %860 = vrot.lane.b32.xlu0 %v745_v50, %s5652_s16 }
  0xf9   : > { %858 = vrot.lane.b32.xlu1 %v733_v44, %s5652_s16 }
  0xfa   : > { %v744_v51 = vpop.permute.xlu1 %743  ;;  %v742_v52 = vpop.permute.xlu0 %741 }
  0xfb   : > { %v747_v53 = vsel %vm410_vm0, %v742_v52, %v744_v51  ;;  %v746_v54 = vsel %vm410_vm0, %v740_v48, %v742_v52 }
  0xfc   : > { %864 = vrot.lane.b32.xlu0 %v747_v53, %s5652_s16 }
  0xfd   : > { %862 = vrot.lane.b32.xlu1 %v746_v54, %s5652_s16 }
  0xfe   : > { %v751_v55 = vpop.permute.xlu1 %750  ;;  %v749_v56 = vpop.permute.xlu0 %748 }
  0xff   : > { %v756_v57 = vsel %vm425_vm7, %v749_v56, %v751_v55 }
 0x100   : > { %868 = vrot.lane.b32.xlu0 %v756_v57, %s5652_s16 }
 0x101   : > { %866 = vrot.lane.b32.xlu1 %v744_v51, %s5652_s16 }
 0x102   : > { %v755_v58 = vpop.permute.xlu1 %754  ;;  %v753_v59 = vpop.permute.xlu0 %752 }
 0x103   : > { %v758_v60 = vsel %vm425_vm7, %v753_v59, %v755_v58  ;;  %v757_v61 = vsel %vm425_vm7, %v751_v55, %v753_v59 }
 0x104   : > { %872 = vrot.lane.b32.xlu0 %v758_v60, %s5652_s16 }
 0x105   : > { %870 = vrot.lane.b32.xlu1 %v757_v61, %s5652_s16 }
 0x106   : > { %v6064_v62 = vpop.permute.xlu0 %804  ;;  %v6070_v63 = vpop.permute.xlu1 %806 }
 0x108   : > { %1173 = vrot.lane.b32.xlu0 %v5723_v2, %s5643_s8 }
 0x109   : > { %874 = vrot.lane.b32.xlu1 %v755_v58, %s5652_s16 }
 0x10a   : > { %v6074_v0 = vpop.permute.xlu0 %808  ;;  %v6082_v14 = vpop.permute.xlu1 %810 }
 0x10c   : > { %1177 = vrot.lane.b32.xlu0 %v5720_v1, %s5643_s8 }
 0x10d   : > { %1175 = vrot.lane.b32.xlu1 %v5731_v4, %s5643_s8 }
 0x110   : > { %1184 = vrot.lane.b32.xlu0 %v5723_v2, %s5644_s9 }
 0x111   : > { %1179 = vrot.lane.b32.xlu1 %v5728_v3, %s5643_s8 }
 0x114   : > { %1188 = vrot.lane.b32.xlu0 %v5720_v1, %s5644_s9 }
 0x115   : > { %1186 = vrot.lane.b32.xlu1 %v5731_v4, %s5644_s9 }
 0x118   : > { %1195 = vrot.lane.b32.xlu0 %v5723_v2, %s5645_s10 }
 0x119   : > { %1190 = vrot.lane.b32.xlu1 %v5728_v3, %s5644_s9 }
 0x11c   : > { %1199 = vrot.lane.b32.xlu0 %v5720_v1, %s5645_s10 }
 0x11d   : > { %1197 = vrot.lane.b32.xlu1 %v5731_v4, %s5645_s10 }
 0x120   : > { %1206 = vrot.lane.b32.xlu0 %v5723_v2, %s5646_s11 }
 0x121   : > { %1201 = vrot.lane.b32.xlu1 %v5728_v3, %s5645_s10 }
 0x124   : > { %1210 = vrot.lane.b32.xlu0 %v5720_v1, %s5646_s11 }
 0x125   : > { %1208 = vrot.lane.b32.xlu1 %v5731_v4, %s5646_s11 }
 0x128   : > { %1217 = vrot.lane.b32.xlu0 %v5723_v2, %s5647_s12 }
 0x129   : > { %1212 = vrot.lane.b32.xlu1 %v5728_v3, %s5646_s11 }
 0x12c   : > { %1221 = vrot.lane.b32.xlu0 %v5720_v1, %s5647_s12 }
 0x12d   : > { %1219 = vrot.lane.b32.xlu1 %v5731_v4, %s5647_s12 }
 0x130   : > { %1228 = vrot.lane.b32.xlu0 %v5723_v2, %s5648_s13 }
 0x131   : > { %1223 = vrot.lane.b32.xlu1 %v5728_v3, %s5647_s12 }
 0x134   : > { %1232 = vrot.lane.b32.xlu0 %v5720_v1, %s5648_s13 }
 0x135   : > { %1230 = vrot.lane.b32.xlu1 %v5731_v4, %s5648_s13 }
 0x138   : > { %1239 = vrot.lane.b32.xlu0 %v5723_v2, %s5650_s14 }
 0x139   : > { %1234 = vrot.lane.b32.xlu1 %v5728_v3, %s5648_s13 }
 0x13a   : > { %v6084_v15 = vpop.permute.xlu0 %812 }
 0x13c   : > { %1243 = vrot.lane.b32.xlu0 %v5720_v1, %s5650_s14 }
 0x13d   : > { %1241 = vrot.lane.b32.xlu1 %v5731_v4, %s5650_s14 }
 0x13e   : > { %v6090_v16 = vpop.permute.xlu0 %816 }
 0x13f   : > { %v6092_v12 = vpop.permute.xlu1 %814 }
 0x140   : > { %1250 = vrot.lane.b32.xlu0 %v5723_v2, %s5651_s15  ;;  %v881_v60 = vsel %vm876_vm9, %v6092_v12, %v6090_v16 }
 0x141   : > { %1245 = vrot.lane.b32.xlu1 %v5728_v3, %s5650_s14 }
 0x142   : > { %v6098_v13 = vpop.permute.xlu0 %820 }
 0x143   : > { %v6100_v17 = vpop.permute.xlu1 %818 }
 0x144   : > { %1254 = vrot.lane.b32.xlu0 %v5720_v1, %s5651_s15 }
 0x145   : > { %1252 = vrot.lane.b32.xlu1 %v5731_v4, %s5651_s15 }
 0x146   : > { %v6106_v10 = vpop.permute.xlu0 %824 }
 0x147   : > { %v6108_v11 = vpop.permute.xlu1 %822 }
 0x148   : > { %1306 = vrot.lane.b32.xlu0 %v5723_v2, %s5653_s21  ;;  %v884_v54 = vsel %vm876_vm9, %v6108_v11, %v6106_v10  ;;  %v883_v59 = vsel %vm876_vm9, %v6098_v13, %v6108_v11  ;;  %v880_v11 = vsel %vm876_vm9, %v6084_v15, %v6092_v12  ;;  %v877_v15 = vsel %vm876_vm9, %v6064_v62, %v6070_v63 }
 0x149   : > { %1256 = vrot.lane.b32.xlu1 %v5728_v3, %s5651_s15  ;;  %v879_v62 = vsel %vm876_vm9, %v6074_v0, %v6082_v14 }
 0x14a   : > { %v6114_v18 = vpop.permute.xlu0 %828 }
 0x14b   : > { %v6116_v19 = vpop.permute.xlu1 %826 }
 0x14c   : > { %1310 = vrot.lane.b32.xlu0 %v5720_v1, %s5653_s21 }
 0x14d   : > { %1308 = vrot.lane.b32.xlu1 %v5731_v4, %s5653_s21 }
 0x14e   : > { %v6122_v20 = vpop.permute.xlu0 %832 }
 0x14f   : > { %v831_v6 = vpop.permute.xlu1 %830 }
 0x150   : > { %v887_v47 = vsel %vm876_vm9, %v831_v6, %v6122_v20  ;;  %v886_v53 = vsel %vm876_vm9, %v6114_v18, %v831_v6 }
 0x151   : > { %1312 = vrot.lane.b32.xlu1 %v5728_v3, %s5653_s21 }
 0x152   : > { %v837_v2 = vpop.permute.xlu0 %836 }
 0x153   : > { %v6126_v7 = vpop.permute.xlu1 %834 }
 0x154   : > { %v888_v57 = vsel %vm876_vm9, %v6122_v20, %v6126_v7  ;;  %v885_v20 = vsel %vm876_vm9, %v6106_v10, %v6116_v19  ;;  %v882_v19 = vsel %vm876_vm9, %v6090_v16, %v6100_v17  ;;  %v5451_v16 = vld [vmem:[%s9214_s1 + $0x14] ss:$8 sps:$4 sm:$0xff]  }
 0x155   : > { %5166 = vmatprep.mubr.msk.bf16.mxu1 %vm476_vm8, %v5451_v16  ;;  %5162 = vmatprep.mubr.msk.bf16.mxu0 %vm476_vm8, %v5451_v16 }
 0x156   : > { %v841_v8 = vpop.permute.xlu0 %840 }
 0x157   : > { %v839_v9 = vpop.permute.xlu1 %838 }
 0x158   : > { %v890_v42 = vsel %vm876_vm9, %v839_v9, %v841_v8  ;;  %v889_v46 = vsel %vm876_vm9, %v837_v2, %v839_v9  ;;  %v878_v2 = vsel %vm876_vm9, %v6070_v63, %v6074_v0 }
 0x15a   : > { %v845_v21 = vpop.permute.xlu0 %844 }
 0x15b   : > { %v843_v22 = vpop.permute.xlu1 %842 }
 0x15c   : > { %v891_v50 = vsel %vm876_vm9, %v841_v8, %v843_v22  ;;  %v5453_v22 = vld [vmem:[%s9214_s1 + $0x10] ss:$8 sps:$4 sm:$0xff]  }
 0x15d   : > { %603 = vmatmul.mubr.bf16.gmra.mxu1 %v5453_v22  ;;  %532 = vmatmul.mubr.bf16.gmra.mxu0 %v5453_v22 }
 0x15e   : > { %v849_v23 = vpop.permute.xlu0 %848 }
 0x15f   : > { %v847_v24 = vpop.permute.xlu1 %846 }
 0x160   : > { %v893_v37 = vsel %vm876_vm9, %v847_v24, %v849_v23  ;;  %v892_v41 = vsel %vm876_vm9, %v845_v21, %v847_v24 }
 0x162   : > { %v853_v25 = vpop.permute.xlu0 %852 }
 0x163   : > { %v851_v1 = vpop.permute.xlu1 %850 }
 0x164   : > { %v894_v45 = vsel %vm876_vm9, %v849_v23, %v851_v1 }
 0x166   : > { %v857_v26 = vpop.permute.xlu0 %856 }
 0x167   : > { %v855_v27 = vpop.permute.xlu1 %854 }
 0x168   : > { %v896_v32 = vsel %vm876_vm9, %v855_v27, %v857_v26  ;;  %v895_v36 = vsel %vm876_vm9, %v853_v25, %v855_v27  ;;  %v5454_v27 = vld [vmem:[%s9214_s1 + $0x24] ss:$8 sps:$4 sm:$0xff]  }
 0x169   : > { %5167 = vmatprep.mubr.msk.bf16.mxu1 %vm476_vm8, %v5454_v27  ;;  %5163 = vmatprep.mubr.msk.bf16.mxu0 %vm476_vm8, %v5454_v27 }
 0x16a   : > { %v861_v4 = vpop.permute.xlu0 %860 }
 0x16b   : > { %v859_v28 = vpop.permute.xlu1 %858 }
 0x16c   : > { %v897_v40 = vsel %vm876_vm9, %v857_v26, %v859_v28 }
 0x16e   : > { %v865_v29 = vpop.permute.xlu0 %864 }
 0x16f   : > { %v863_v30 = vpop.permute.xlu1 %862 }
 0x170   : > { %v899_v3 = vsel %vm876_vm9, %v863_v30, %v865_v29  ;;  %v898_v31 = vsel %vm876_vm9, %v861_v4, %v863_v30 }
 0x171   : > { %943 = vmatprep.subr.bf16.mxu0 %v899_v3 }
 0x172   : > { %944 = vmatpush1.bf16.msra.mxu0 %v898_v31  ;;  %v6131_v33 = vpop.permute.xlu0 %868 }
 0x173   : > { %v867_v34 = vpop.permute.xlu1 %866  ;;  %945 = vmatprep.subr.bf16.mxu0 %v896_v32 }
 0x174   : > { %v900_v35 = vsel %vm876_vm9, %v865_v29, %v867_v34  ;;  %v5456_v29 = vld [vmem:[%s9214_s1 + $0x20] ss:$8 sps:$4 sm:$0xff]   ;;  %v5457_v34 = vld [vmem:[%s9214_s1 + $0x34] ss:$8 sps:$4 sm:$0xff]  }
 0x175   : > { %1017 = vmatpush1.bf16.msra.mxu1 %v900_v35  ;;  %542 = vmatmul.mubr.bf16.gmra.mxu0 %v5456_v29 }
 0x176   : > { %946 = vmatpush1.bf16.msra.mxu0 %v895_v36  ;;  %v6136_v38 = vpop.permute.xlu0 %872  ;;  %1018 = vmatprep.subr.bf16.mxu1 %v9221_v5 }
 0x177   : > { %v6139_v39 = vpop.permute.xlu1 %870  ;;  %947 = vmatprep.subr.bf16.mxu0 %v893_v37  ;;  %611 = vmatmul.mubr.bf16.gmra.mxu1 %v5456_v29  ;;  %v5459_v37 = vld [vmem:[%s9214_s1 + $0x30] ss:$8 sps:$4 sm:$0xff]  }
 0x178   : > { %v902_v12 = vsel %vm876_vm9, %v6139_v39, %v6136_v38  ;;  %v901_v23 = vsel %vm876_vm9, %v6131_v33, %v6139_v39  ;;  %5168 = vmatprep.mubr.msk.bf16.mxu1 %vm476_vm8, %v5457_v34  ;;  %5164 = vmatprep.mubr.msk.bf16.mxu0 %vm476_vm8, %v5457_v34 }
 0x179   : > { %1019 = vmatpush1.bf16.msra.mxu1 %v897_v40 }
 0x17a   : > { %948 = vmatpush1.bf16.msra.mxu0 %v892_v41  ;;  %v1174_v43 = vpop.permute.xlu0 %1173  ;;  %1020 = vmatprep.subr.bf16.mxu1 %v9221_v5 }
 0x17b   : > { %v6145_v44 = vpop.permute.xlu1 %874  ;;  %949 = vmatprep.subr.bf16.mxu0 %v890_v42 }
 0x17c   : > { %v903_v14 = vsel %vm876_vm9, %v6136_v38, %v6145_v44 }
 0x17d   : > { %1021 = vmatpush1.bf16.msra.mxu1 %v894_v45  ;;  %552 = vmatmul.mubr.bf16.gmra.mxu0 %v5459_v37 }
 0x17e   : > { %950 = vmatpush1.bf16.msra.mxu0 %v889_v46  ;;  %v1178_v48 = vpop.permute.xlu0 %1177  ;;  %1022 = vmatprep.subr.bf16.mxu1 %v9221_v5  ;;  %v5460_v46 = vld [vmem:[%s9214_s1 + $0x40] ss:$8 sps:$4 sm:$0xff]  }
 0x17f   : > { %v1176_v49 = vpop.permute.xlu1 %1175  ;;  %951 = vmatprep.subr.bf16.mxu0 %v887_v47  ;;  %619 = vmatmul.mubr.bf16.gmra.mxu1 %v5459_v37 }
 0x180   : > { %v1181_v51 = vsel %vm320_vm4, %v1174_v43, %v1176_v49  ;;  %v1182_v52 = vsel %vm320_vm4, %v1176_v49, %v1178_v48  ;;  %v5462_v43 = vld [vmem:[%s9214_s1 + $0x44] ss:$8 sps:$4 sm:$0xff]  }
 0x181   : > { %1023 = vmatpush1.bf16.msra.mxu1 %v891_v50  ;;  %1314 = vrot.lane.b32.xlu0 %v1181_v51, %s5653_s21 }
 0x182   : > { %1316 = vrot.lane.b32.xlu1 %v1182_v52, %s5653_s21  ;;  %952 = vmatpush1.bf16.msra.mxu0 %v886_v53  ;;  %v1185_v55 = vpop.permute.xlu0 %1184 }
 0x183   : > { %v1180_v56 = vpop.permute.xlu1 %1179  ;;  %953 = vmatprep.subr.bf16.mxu0 %v884_v54  ;;  %1024 = vmatprep.subr.bf16.mxu1 %v9221_v5 }
 0x184   : > { %v1183_v58 = vsel %vm320_vm4, %v1178_v48, %v1180_v56  ;;  %5193 = vmatprep.mubr.msk.bf16.mxu1 %vm476_vm8, %v5462_v43  ;;  %5189 = vmatprep.mubr.msk.bf16.mxu0 %vm476_vm8, %v5462_v43 }
 0x185   : > { %1025 = vmatpush1.bf16.msra.mxu1 %v888_v57  ;;  %1318 = vrot.lane.b32.xlu0 %v1183_v58, %s5653_s21 }
 0x186   : > { %1320 = vrot.lane.b32.xlu1 %v1180_v56, %s5653_s21  ;;  %954 = vmatpush1.bf16.msra.mxu0 %v883_v59  ;;  %v1189_v61 = vpop.permute.xlu0 %1188 }
 0x187   : > { %v1187_v18 = vpop.permute.xlu1 %1186  ;;  %955 = vmatprep.subr.bf16.mxu0 %v881_v60  ;;  %1026 = vmatprep.subr.bf16.mxu1 %v9221_v5 }
 0x188   : > { %v1192_v6 = vsel %vm335_vm6, %v1185_v55, %v1187_v18  ;;  %v1193_v13 = vsel %vm335_vm6, %v1187_v18, %v1189_v61 }
 0x189   : > { %1027 = vmatpush1.bf16.msra.mxu1 %v885_v20  ;;  %1322 = vrot.lane.b32.xlu0 %v1192_v6, %s5653_s21  ;;  %v6288_v20 = vld [vmem:[%s5717_s30] ss:$20 sps:$4 sm:$0xff]   ;;  %v6292_v6 = vld [vmem:[%s5717_s30 + $0x4] ss:$20 sps:$4 sm:$0xff]  }
 0x18a   : > { %1324 = vrot.lane.b32.xlu1 %v1193_v13, %s5653_s21  ;;  %956 = vmatpush1.bf16.msra.mxu0 %v880_v11  ;;  %v1196_v7 = vpop.permute.xlu0 %1195  ;;  %v6297_v13 = vld [vmem:[%s5717_s30 + $0x8] ss:$20 sps:$4 sm:$0xff]   ;;  %v6302_v11 = vld [vmem:[%s5717_s30 + $0xc] ss:$20 sps:$4 sm:$0xff]  }
 0x18b   : > { %v1191_v10 = vpop.permute.xlu1 %1190  ;;  %957 = vmatprep.subr.bf16.mxu0 %v878_v2  ;;  %1028 = vmatprep.subr.bf16.mxu1 %v9221_v5 }
 0x18c   : > { %v1194_v8 = vsel %vm335_vm6, %v1189_v61, %v1191_v10 }
 0x18d   : > { %1029 = vmatpush1.bf16.msra.mxu1 %v882_v19  ;;  %1326 = vrot.lane.b32.xlu0 %v1194_v8, %s5653_s21 }
 0x18e   : > { %1328 = vrot.lane.b32.xlu1 %v1191_v10, %s5653_s21  ;;  %958 = vmatpush1.bf16.msra.mxu0 %v877_v15  ;;  %v1200_v9 = vpop.permute.xlu0 %1199 }
 0x18f   : > { %v1198_v21 = vpop.permute.xlu1 %1197  ;;  %973 = vmatprep.subr.bf16.mxu0 %v902_v12  ;;  %1030 = vmatprep.subr.bf16.mxu1 %v9221_v5 }
 0x190   : > { %v1203_v63 = vsel %vm350_vm5, %v1196_v7, %v1198_v21  ;;  %v1204_v17 = vsel %vm350_vm5, %v1198_v21, %v1200_v9 }
 0x191   : > { %1031 = vmatpush1.bf16.msra.mxu1 %v879_v62  ;;  %1330 = vrot.lane.b32.xlu0 %v1203_v63, %s5653_s21 }
 0x192   : > { %1332 = vrot.lane.b32.xlu1 %v1204_v17, %s5653_s21  ;;  %974 = vmatpush2.bf16.msra.mxu0 %v901_v23  ;;  %v1207_v24 = vpop.permute.xlu0 %1206 }
 0x193   : > { %v1202_v0 = vpop.permute.xlu1 %1201  ;;  %1046 = vmatprep.subr.bf16.mxu1 %v9221_v5 }
 0x194   : > { %v1205_v25 = vsel %vm350_vm5, %v1200_v9, %v1202_v0 }
 0x195   : > { %1047 = vmatpush2.bf16.msra.mxu1 %v903_v14  ;;  %1334 = vrot.lane.b32.xlu0 %v1205_v25, %s5653_s21 }
 0x196   : > { %1336 = vrot.lane.b32.xlu1 %v1202_v0, %s5653_s21  ;;  %v1211_v1 = vpop.permute.xlu0 %1210  ;;  %1518 = vmatprep.subr.bf16.mxu1 %v9221_v5 }
 0x197   : > { %v1209_v26 = vpop.permute.xlu1 %1208  ;;  %976 = vmatmul.mubr.bf16.vlgmr.msra.gmra.mxu0 %v5460_v46 }
 0x198   : > { %v1214_v4 = vsel %vm365_vm3, %v1207_v24, %v1209_v26  ;;  %v1215_v28 = vsel %vm365_vm3, %v1209_v26, %v1211_v1  ;;  %1049 = vmatmul.mubr.bf16.vlgmr.msra.gmra.mxu1 %v5460_v46 }
 0x199   : > { %1338 = vrot.lane.b32.xlu0 %v1214_v4, %s5653_s21 }
 0x19a   : > { %1340 = vrot.lane.b32.xlu1 %v1215_v28, %s5653_s21  ;;  %v1218_v30 = vpop.permute.xlu0 %1217 }
 0x19b   : > { %v1213_v3 = vpop.permute.xlu1 %1212 }
 0x19c   : > { %v1216_v31 = vsel %vm365_vm3, %v1211_v1, %v1213_v3 }
 0x19d   : > { %1342 = vrot.lane.b32.xlu0 %v1216_v31, %s5653_s21 }
 0x19e   : > { %1344 = vrot.lane.b32.xlu1 %v1213_v3, %s5653_s21  ;;  %v1222_v32 = vpop.permute.xlu0 %1221 }
 0x19f   : > { %v1220_v33 = vpop.permute.xlu1 %1219 }
 0x1a0   : > { %v1225_v35 = vsel %vm380_vm2, %v1218_v30, %v1220_v33  ;;  %v1226_v36 = vsel %vm380_vm2, %v1220_v33, %v1222_v32 }
 0x1a1   : > { %1346 = vrot.lane.b32.xlu0 %v1225_v35, %s5653_s21 }
 0x1a2   : > { %1348 = vrot.lane.b32.xlu1 %v1226_v36, %s5653_s21  ;;  %v1229_v38 = vpop.permute.xlu0 %1228 }
 0x1a3   : > { %v1224_v39 = vpop.permute.xlu1 %1223 }
 0x1a4   : > { %v1227_v40 = vsel %vm380_vm2, %v1222_v32, %v1224_v39 }
 0x1a5   : > { %1350 = vrot.lane.b32.xlu0 %v1227_v40, %s5653_s21 }
 0x1a6   : > { %1352 = vrot.lane.b32.xlu1 %v1224_v39, %s5653_s21  ;;  %v1233_v41 = vpop.permute.xlu0 %1232 }
 0x1a7   : > { %v1231_v42 = vpop.permute.xlu1 %1230 }
 0x1a8   : > { %v1236_v44 = vsel %vm395_vm1, %v1229_v38, %v1231_v42  ;;  %v1237_v45 = vsel %vm395_vm1, %v1231_v42, %v1233_v41 }
 0x1a9   : > { %1354 = vrot.lane.b32.xlu0 %v1236_v44, %s5653_s21 }
 0x1aa   : > { %1356 = vrot.lane.b32.xlu1 %v1237_v45, %s5653_s21  ;;  %v1240_v47 = vpop.permute.xlu0 %1239 }
 0x1ab   : > { %v1235_v48 = vpop.permute.xlu1 %1234 }
 0x1ac   : > { %v1238_v49 = vsel %vm395_vm1, %v1233_v41, %v1235_v48 }
 0x1ad   : > { %1358 = vrot.lane.b32.xlu0 %v1238_v49, %s5653_s21 }
 0x1ae   : > { %1360 = vrot.lane.b32.xlu1 %v1235_v48, %s5653_s21  ;;  %v1244_v50 = vpop.permute.xlu0 %1243 }
 0x1af   : > { %v1242_v51 = vpop.permute.xlu1 %1241 }
 0x1b0   : > { %v1247_v52 = vsel %vm410_vm0, %v1240_v47, %v1242_v51  ;;  %v1248_v53 = vsel %vm410_vm0, %v1242_v51, %v1244_v50 }
 0x1b1   : > { %1362 = vrot.lane.b32.xlu0 %v1247_v52, %s5653_s21 }
 0x1b2   : > { %1364 = vrot.lane.b32.xlu1 %v1248_v53, %s5653_s21  ;;  %v1251_v54 = vpop.permute.xlu0 %1250 }
 0x1b3   : > { %v1246_v55 = vpop.permute.xlu1 %1245 }
 0x1b4   : > { %v1249_v56 = vsel %vm410_vm0, %v1244_v50, %v1246_v55 }
 0x1b5   : > { %1366 = vrot.lane.b32.xlu0 %v1249_v56, %s5653_s21 }
 0x1b6   : > { %1368 = vrot.lane.b32.xlu1 %v1246_v55, %s5653_s21  ;;  %v1255_v57 = vpop.permute.xlu0 %1254 }
 0x1b7   : > { %v1253_v58 = vpop.permute.xlu1 %1252 }
 0x1b8   : > { %v1258_v59 = vsel %vm425_vm7, %v1251_v54, %v1253_v58  ;;  %v1259_v60 = vsel %vm425_vm7, %v1253_v58, %v1255_v57 }
 0x1b9   : > { %1370 = vrot.lane.b32.xlu0 %v1258_v59, %s5653_s21 }
 0x1ba   : > { %1372 = vrot.lane.b32.xlu1 %v1259_v60, %s5653_s21  ;;  %v6340_v2 = vpop.permute.xlu0 %1306 }
 0x1bb   : > { %v1257_v61 = vpop.permute.xlu1 %1256 }
 0x1bc   : > { %v1260_v18 = vsel %vm425_vm7, %v1255_v57, %v1257_v61 }
 0x1bd   : > { %1374 = vrot.lane.b32.xlu0 %v1260_v18, %s5653_s21 }
 0x1be   : > { %1376 = vrot.lane.b32.xlu1 %v1257_v61, %s5653_s21  ;;  %v6350_v10 = vpop.permute.xlu0 %1310  ;;  %s5654_s21 = smov 56  }
 0x1bf   : > { %v6342_v7 = vpop.permute.xlu1 %1308 }
 0x1c1   : > { %1675 = vrot.lane.b32.xlu0 %v6288_v20, %s5643_s8 }
 0x1c2   : > { %1677 = vrot.lane.b32.xlu1 %v6292_v6, %s5643_s8 }
 0x1c3   : > { %v6354_v19 = vpop.permute.xlu1 %1312 }
 0x1c5   : > { %1679 = vrot.lane.b32.xlu0 %v6297_v13, %s5643_s8 }
 0x1c6   : > { %1681 = vrot.lane.b32.xlu1 %v6302_v11, %s5643_s8 }
 0x1c9   : > { %1686 = vrot.lane.b32.xlu0 %v6288_v20, %s5644_s9 }
 0x1ca   : > { %1688 = vrot.lane.b32.xlu1 %v6292_v6, %s5644_s9 }
 0x1cd   : > { %1690 = vrot.lane.b32.xlu0 %v6297_v13, %s5644_s9 }
 0x1ce   : > { %1692 = vrot.lane.b32.xlu1 %v6302_v11, %s5644_s9 }
 0x1d1   : > { %1697 = vrot.lane.b32.xlu0 %v6288_v20, %s5645_s10 }
 0x1d2   : > { %1699 = vrot.lane.b32.xlu1 %v6292_v6, %s5645_s10 }
 0x1d5   : > { %1701 = vrot.lane.b32.xlu0 %v6297_v13, %s5645_s10 }
 0x1d6   : > { %1703 = vrot.lane.b32.xlu1 %v6302_v11, %s5645_s10 }
 0x1d9   : > { %1708 = vrot.lane.b32.xlu0 %v6288_v20, %s5646_s11 }
 0x1da   : > { %1710 = vrot.lane.b32.xlu1 %v6292_v6, %s5646_s11 }
 0x1dd   : > { %1712 = vrot.lane.b32.xlu0 %v6297_v13, %s5646_s11 }
 0x1de   : > { %1714 = vrot.lane.b32.xlu1 %v6302_v11, %s5646_s11 }
 0x1e1   : > { %1719 = vrot.lane.b32.xlu0 %v6288_v20, %s5647_s12 }
 0x1e2   : > { %1721 = vrot.lane.b32.xlu1 %v6292_v6, %s5647_s12 }
 0x1e5   : > { %1723 = vrot.lane.b32.xlu0 %v6297_v13, %s5647_s12 }
 0x1e6   : > { %1725 = vrot.lane.b32.xlu1 %v6302_v11, %s5647_s12 }
 0x1e9   : > { %1730 = vrot.lane.b32.xlu0 %v6288_v20, %s5648_s13 }
 0x1ea   : > { %1732 = vrot.lane.b32.xlu1 %v6292_v6, %s5648_s13 }
 0x1ed   : > { %1734 = vrot.lane.b32.xlu0 %v6297_v13, %s5648_s13 }
 0x1ee   : > { %1736 = vrot.lane.b32.xlu1 %v6302_v11, %s5648_s13 }
 0x1f1   : > { %1741 = vrot.lane.b32.xlu0 %v6288_v20, %s5650_s14 }
 0x1f2   : > { %1743 = vrot.lane.b32.xlu1 %v6292_v6, %s5650_s14 }
 0x1f3   : > { %v6360_v8 = vpop.permute.xlu0 %1314 }
 0x1f4   : > { %v6362_v15 = vpop.permute.xlu1 %1316 }
 0x1f5   : > { %1745 = vrot.lane.b32.xlu0 %v6297_v13, %s5650_s14 }
 0x1f6   : > { %1747 = vrot.lane.b32.xlu1 %v6302_v11, %s5650_s14 }
 0x1f7   : > { %v6368_v12 = vpop.permute.xlu0 %1318 }
 0x1f8   : > { %v6370_v9 = vpop.permute.xlu1 %1320 }
 0x1f9   : > { %1752 = vrot.lane.b32.xlu0 %v6288_v20, %s5651_s15 }
 0x1fa   : > { %1754 = vrot.lane.b32.xlu1 %v6292_v6, %s5651_s15 }
 0x1fb   : > { %v6376_v21 = vpop.permute.xlu0 %1322 }
 0x1fc   : > { %v6378_v16 = vpop.permute.xlu1 %1324 }
 0x1fd   : > { %1756 = vrot.lane.b32.xlu0 %v6297_v13, %s5651_s15 }
 0x1fe   : > { %1758 = vrot.lane.b32.xlu1 %v6302_v11, %s5651_s15 }
 0x1ff   : > { %v6384_v62 = vpop.permute.xlu0 %1326 }
 0x200   : > { %v6386_v63 = vpop.permute.xlu1 %1328  ;;  %v1386_v18 = vsel %vm1378_vm10, %v6378_v16, %v6384_v62 }
 0x201   : > { %1808 = vrot.lane.b32.xlu0 %v6288_v20, %s5654_s21 }
 0x202   : > { %1810 = vrot.lane.b32.xlu1 %v6292_v6, %s5654_s21 }
 0x203   : > { %v6392_v17 = vpop.permute.xlu0 %1330 }
 0x204   : > { %v6394_v22 = vpop.permute.xlu1 %1332 }
 0x205   : > { %1812 = vrot.lane.b32.xlu0 %v6297_v13, %s5654_s21  ;;  %v1388_v61 = vsel %vm1378_vm10, %v6392_v17, %v6394_v22  ;;  %v1385_v17 = vsel %vm1378_vm10, %v6376_v21, %v6378_v16  ;;  %v1382_v16 = vsel %vm1378_vm10, %v6360_v8, %v6362_v15  ;;  %v1379_v8 = vsel %vm1378_vm10, %v6340_v2, %v6342_v7 }
 0x206   : > { %1814 = vrot.lane.b32.xlu1 %v6302_v11, %s5654_s21 }
 0x207   : > { %v1335_v23 = vpop.permute.xlu0 %1334 }
 0x208   : > { %v1337_v24 = vpop.permute.xlu1 %1336  ;;  %v1389_v55 = vsel %vm1378_vm10, %v6394_v22, %v1335_v23  ;;  %v1383_v22 = vsel %vm1378_vm10, %v6362_v15, %v6368_v12 }
 0x209   : > { %v1390_v59 = vsel %vm1378_vm10, %v1335_v23, %v1337_v24 }
 0x20b   : > { %v1339_v0 = vpop.permute.xlu0 %1338 }
 0x20c   : > { %v1341_v14 = vpop.permute.xlu1 %1340 }
 0x20d   : > { %v1391_v54 = vsel %vm1378_vm10, %v1339_v0, %v1341_v14 }
 0x20f   : > { %v1343_v25 = vpop.permute.xlu0 %1342 }
 0x210   : > { %v1345_v1 = vpop.permute.xlu1 %1344  ;;  %v1392_v49 = vsel %vm1378_vm10, %v1341_v14, %v1343_v25  ;;  %v1387_v14 = vsel %vm1378_vm10, %v6384_v62, %v6386_v63  ;;  %v1384_v63 = vsel %vm1378_vm10, %v6368_v12, %v6370_v9 }
 0x211   : > { %v1393_v53 = vsel %vm1378_vm10, %v1343_v25, %v1345_v1 }
 0x213   : > { %v1347_v26 = vpop.permute.xlu0 %1346 }
 0x214   : > { %v1349_v27 = vpop.permute.xlu1 %1348 }
 0x215   : > { %v1394_v47 = vsel %vm1378_vm10, %v1347_v26, %v1349_v27  ;;  %v1380_v26 = vsel %vm1378_vm10, %v6342_v7, %v6350_v10 }
 0x217   : > { %v1351_v4 = vpop.permute.xlu0 %1350 }
 0x218   : > { %v1353_v28 = vpop.permute.xlu1 %1352  ;;  %v1395_v44 = vsel %vm1378_vm10, %v1349_v27, %v1351_v4 }
 0x219   : > { %v1396_v48 = vsel %vm1378_vm10, %v1351_v4, %v1353_v28  ;;  %v1381_v4 = vsel %vm1378_vm10, %v6350_v10, %v6354_v19 }
 0x21b   : > { %v1355_v29 = vpop.permute.xlu0 %1354 }
 0x21c   : > { %v1357_v30 = vpop.permute.xlu1 %1356 }
 0x21d   : > { %v1397_v42 = vsel %vm1378_vm10, %v1355_v29, %v1357_v30 }
 0x21f   : > { %v1359_v3 = vpop.permute.xlu0 %1358 }
 0x220   : > { %v1361_v31 = vpop.permute.xlu1 %1360  ;;  %v1398_v39 = vsel %vm1378_vm10, %v1357_v30, %v1359_v3 }
 0x221   : > { %v1399_v43 = vsel %vm1378_vm10, %v1359_v3, %v1361_v31 }
 0x223   : > { %v1363_v32 = vpop.permute.xlu0 %1362 }
 0x224   : > { %v1365_v33 = vpop.permute.xlu1 %1364 }
 0x225   : > { %v1400_v37 = vsel %vm1378_vm10, %v1363_v32, %v1365_v33 }
 0x227   : > { %v1367_v34 = vpop.permute.xlu0 %1366 }
 0x228   : > { %v1369_v35 = vpop.permute.xlu1 %1368  ;;  %v1401_v36 = vsel %vm1378_vm10, %v1365_v33, %v1367_v34 }
 0x229   : > { %1445 = vmatprep.subr.bf16.mxu0 %v1401_v36  ;;  %v1402_v38 = vsel %vm1378_vm10, %v1367_v34, %v1369_v35 }
 0x22a   : > { %1519 = vmatpush1.bf16.msra.mxu1 %v1402_v38  ;;  %1446 = vmatpush1.bf16.msra.mxu0 %v1400_v37 }
 0x22b   : > { %1447 = vmatprep.subr.bf16.mxu0 %v1398_v39  ;;  %v6404_v40 = vpop.permute.xlu0 %1370  ;;  %1520 = vmatprep.subr.bf16.mxu1 %v9221_v5 }
 0x22c   : > { %v6407_v41 = vpop.permute.xlu1 %1372 }
 0x22d   : > { %v1403_v7 = vsel %vm1378_vm10, %v6404_v40, %v6407_v41 }
 0x22e   : > { %1521 = vmatpush1.bf16.msra.mxu1 %v1399_v43  ;;  %1448 = vmatpush1.bf16.msra.mxu0 %v1397_v42 }
 0x22f   : > { %1449 = vmatprep.subr.bf16.mxu0 %v1395_v44  ;;  %v6412_v45 = vpop.permute.xlu0 %1374  ;;  %1522 = vmatprep.subr.bf16.mxu1 %v9221_v5 }
 0x230   : > { %v6415_v46 = vpop.permute.xlu1 %1376  ;;  %v1404_v15 = vsel %vm1378_vm10, %v6407_v41, %v6412_v45 }
 0x231   : > { %v1405_v19 = vsel %vm1378_vm10, %v6412_v45, %v6415_v46 }
 0x232   : > { %1523 = vmatpush1.bf16.msra.mxu1 %v1396_v48  ;;  %1450 = vmatpush1.bf16.msra.mxu0 %v1394_v47 }
 0x233   : > { %1451 = vmatprep.subr.bf16.mxu0 %v1392_v49  ;;  %v1676_v50 = vpop.permute.xlu0 %1675  ;;  %1524 = vmatprep.subr.bf16.mxu1 %v9221_v5 }
 0x234   : > { %v1678_v51 = vpop.permute.xlu1 %1677 }
 0x235   : > { %v1683_v52 = vsel %vm320_vm4, %v1676_v50, %v1678_v51  ;;  %v5463_v50 = vld [vmem:[%s9214_s1 + $0x54] ss:$8 sps:$4 sm:$0xff]  }
 0x236   : > { %1525 = vmatpush1.bf16.msra.mxu1 %v1393_v53  ;;  %1816 = vrot.lane.b32.xlu0 %v1683_v52, %s5654_s21  ;;  %v5466_v52 = vld [vmem:[%s9214_s1 + $0x64] ss:$8 sps:$4 sm:$0xff]   ;;  %v5468_v53 = vld [vmem:[%s9214_s1 + $0x60] ss:$8 sps:$4 sm:$0xff]  }
 0x237   : > { %1452 = vmatpush1.bf16.msra.mxu0 %v1391_v54  ;;  %v1680_v56 = vpop.permute.xlu0 %1679  ;;  %1526 = vmatprep.subr.bf16.mxu1 %v9221_v5  ;;  %v5469_v54 = vld [vmem:[%s9214_s1 + $0x74] ss:$8 sps:$4 sm:$0xff]  }
 0x238   : > { %v1682_v57 = vpop.permute.xlu1 %1681  ;;  %1453 = vmatprep.subr.bf16.mxu0 %v1389_v55  ;;  %v1684_v58 = vsel %vm320_vm4, %v1678_v51, %v1680_v56  ;;  %v5465_v51 = vld [vmem:[%s9214_s1 + $0x50] ss:$8 sps:$4 sm:$0xff]   ;;  %5190 = vmatprep.mubr.msk.bf16.mxu0 %vm476_vm8, %v5463_v50 }
 0x239   : > { %v1685_v60 = vsel %vm320_vm4, %v1680_v56, %v1682_v57  ;;  %1818 = vrot.lane.b32.xlu1 %v1684_v58, %s5654_s21  ;;  %986 = vmatmul.mubr.bf16.gmra.mxu0 %v5465_v51  ;;  %v5471_v56 = vld [vmem:[%s9214_s1 + $0x70] ss:$8 sps:$4 sm:$0xff]  }
 0x23a   : > { %1527 = vmatpush1.bf16.msra.mxu1 %v1390_v59  ;;  %1820 = vrot.lane.b32.xlu0 %v1685_v60, %s5654_s21  ;;  %v5478_v59 = vld [vmem:[%s9214_s1 + $0x84] ss:$8 sps:$4 sm:$0xff]   ;;  %v5476_v60 = vld [vmem:[%s9214_s1 + $0x80] ss:$8 sps:$4 sm:$0xff]  }
 0x23b   : > { %1454 = vmatpush1.bf16.msra.mxu0 %v1388_v61  ;;  %v1687_v0 = vpop.permute.xlu0 %1686  ;;  %1528 = vmatprep.subr.bf16.mxu1 %v9221_v5 }
 0x23c   : > { %v1689_v23 = vpop.permute.xlu1 %1688  ;;  %1455 = vmatprep.subr.bf16.mxu0 %v1386_v18  ;;  %5194 = vmatprep.mubr.msk.bf16.mxu1 %vm476_vm8, %v5463_v50 }
 0x23d   : > { %v1694_v24 = vsel %vm335_vm6, %v1687_v0, %v1689_v23  ;;  %1822 = vrot.lane.b32.xlu1 %v1682_v57, %s5654_s21  ;;  %1057 = vmatmul.mubr.bf16.gmra.mxu1 %v5465_v51 }
 0x23e   : > { %1529 = vmatpush1.bf16.msra.mxu1 %v1387_v14  ;;  %1824 = vrot.lane.b32.xlu0 %v1694_v24, %s5654_s21 }
 0x23f   : > { %1456 = vmatpush1.bf16.msra.mxu0 %v1385_v17  ;;  %v1691_v25 = vpop.permute.xlu0 %1690  ;;  %1530 = vmatprep.subr.bf16.mxu1 %v9221_v5 }
 0x240   : > { %v1693_v1 = vpop.permute.xlu1 %1692  ;;  %1457 = vmatprep.subr.bf16.mxu0 %v1383_v22  ;;  %v1695_v62 = vsel %vm335_vm6, %v1689_v23, %v1691_v25  ;;  %5191 = vmatprep.mubr.msk.bf16.mxu0 %vm476_vm8, %v5466_v52 }
 0x241   : > { %v1696_v21 = vsel %vm335_vm6, %v1691_v25, %v1693_v1  ;;  %1826 = vrot.lane.b32.xlu1 %v1695_v62, %s5654_s21  ;;  %996 = vmatmul.mubr.bf16.gmra.mxu0 %v5468_v53 }
 0x242   : > { %1531 = vmatpush1.bf16.msra.mxu1 %v1384_v63  ;;  %1828 = vrot.lane.b32.xlu0 %v1696_v21, %s5654_s21 }
 0x243   : > { %1458 = vmatpush1.bf16.msra.mxu0 %v1382_v16  ;;  %v1698_v27 = vpop.permute.xlu0 %1697  ;;  %1532 = vmatprep.subr.bf16.mxu1 %v9221_v5 }
 0x244   : > { %v1700_v12 = vpop.permute.xlu1 %1699  ;;  %1459 = vmatprep.subr.bf16.mxu0 %v1380_v26  ;;  %5195 = vmatprep.mubr.msk.bf16.mxu1 %vm476_vm8, %v5466_v52 }
 0x245   : > { %v1705_v9 = vsel %vm350_vm5, %v1698_v27, %v1700_v12  ;;  %1830 = vrot.lane.b32.xlu1 %v1693_v1, %s5654_s21  ;;  %1065 = vmatmul.mubr.bf16.gmra.mxu1 %v5468_v53 }
 0x246   : > { %1533 = vmatpush1.bf16.msra.mxu1 %v1381_v4  ;;  %1832 = vrot.lane.b32.xlu0 %v1705_v9, %s5654_s21 }
 0x247   : > { %1460 = vmatpush1.bf16.msra.mxu0 %v1379_v8  ;;  %v1702_v28 = vpop.permute.xlu0 %1701  ;;  %1548 = vmatprep.subr.bf16.mxu1 %v9221_v5 }
 0x248   : > { %v1704_v29 = vpop.permute.xlu1 %1703  ;;  %1475 = vmatprep.subr.bf16.mxu0 %v1404_v15  ;;  %v1706_v10 = vsel %vm350_vm5, %v1700_v12, %v1702_v28  ;;  %5192 = vmatprep.mubr.msk.bf16.mxu0 %vm476_vm8, %v5469_v54 }
 0x249   : > { %v1707_v2 = vsel %vm350_vm5, %v1702_v28, %v1704_v29  ;;  %1834 = vrot.lane.b32.xlu1 %v1706_v10, %s5654_s21  ;;  %1006 = vmatmul.mubr.bf16.gmra.mxu0 %v5471_v56 }
 0x24a   : > { %1549 = vmatpush2.bf16.msra.mxu1 %v1405_v19  ;;  %1836 = vrot.lane.b32.xlu0 %v1707_v2, %s5654_s21 }
 0x24b   : > { %1476 = vmatpush2.bf16.msra.mxu0 %v1403_v7  ;;  %v1709_v30 = vpop.permute.xlu0 %1708  ;;  %2020 = vmatprep.subr.bf16.mxu1 %v9221_v5  ;;  %v5482_v7 = vld [vmem:[%s9214_s1 + $0x94] ss:$8 sps:$4 sm:$0xff]  }
 0x24c   : > { %v1711_v3 = vpop.permute.xlu1 %1710  ;;  %5196 = vmatprep.mubr.msk.bf16.mxu1 %vm476_vm8, %v5469_v54  ;;  %5217 = vmatprep.mubr.msk.bf16.mxu0 %vm476_vm8, %v5478_v59 }
 0x24d   : > { %v1716_v31 = vsel %vm365_vm3, %v1709_v30, %v1711_v3  ;;  %1838 = vrot.lane.b32.xlu1 %v1704_v29, %s5654_s21  ;;  %1073 = vmatmul.mubr.bf16.gmra.mxu1 %v5471_v56 }
 0x24e   : > { %1840 = vrot.lane.b32.xlu0 %v1716_v31, %s5654_s21  ;;  %5221 = vmatprep.mubr.msk.bf16.mxu1 %vm476_vm8, %v5478_v59 }
 0x24f   : > { %v1713_v32 = vpop.permute.xlu0 %1712 }
 0x250   : > { %v1715_v33 = vpop.permute.xlu1 %1714  ;;  %v1717_v34 = vsel %vm365_vm3, %v1711_v3, %v1713_v32  ;;  %v5484_v3 = vld [vmem:[%s9214_s1 + $0x90] ss:$8 sps:$4 sm:$0xff]  }
 0x251   : > { %v1718_v35 = vsel %vm365_vm3, %v1713_v32, %v1715_v33  ;;  %1842 = vrot.lane.b32.xlu1 %v1717_v34, %s5654_s21  ;;  %1478 = vmatmul.mubr.bf16.vlgmr.msra.gmra.mxu0 %v5476_v60  ;;  %v5485_v34 = vld [vmem:[%s9214_s1 + $0xa4] ss:$8 sps:$4 sm:$0xff]  }
 0x252   : > { %1844 = vrot.lane.b32.xlu0 %v1718_v35, %s5654_s21  ;;  %5218 = vmatprep.mubr.msk.bf16.mxu0 %vm476_vm8, %v5482_v7 }
 0x253   : > { %v1720_v36 = vpop.permute.xlu0 %1719 }
 0x254   : > { %v1722_v37 = vpop.permute.xlu1 %1721 }
 0x255   : > { %v1727_v38 = vsel %vm380_vm2, %v1720_v36, %v1722_v37  ;;  %1846 = vrot.lane.b32.xlu1 %v1715_v33, %s5654_s21  ;;  %1551 = vmatmul.mubr.bf16.vlgmr.msra.gmra.mxu1 %v5476_v60  ;;  %v5487_v36 = vld [vmem:[%s9214_s1 + $0xa0] ss:$8 sps:$4 sm:$0xff]  }
 0x256   : > { %1848 = vrot.lane.b32.xlu0 %v1727_v38, %s5654_s21  ;;  %5222 = vmatprep.mubr.msk.bf16.mxu1 %vm476_vm8, %v5482_v7 }
 0x257   : > { %v1724_v39 = vpop.permute.xlu0 %1723 }
 0x258   : > { %v1726_v40 = vpop.permute.xlu1 %1725  ;;  %v1728_v41 = vsel %vm380_vm2, %v1722_v37, %v1724_v39 }
 0x259   : > { %v1729_v42 = vsel %vm380_vm2, %v1724_v39, %v1726_v40  ;;  %1850 = vrot.lane.b32.xlu1 %v1728_v41, %s5654_s21  ;;  %1488 = vmatmul.mubr.bf16.gmra.mxu0 %v5484_v3 }
 0x25a   : > { %1852 = vrot.lane.b32.xlu0 %v1729_v42, %s5654_s21  ;;  %5219 = vmatprep.mubr.msk.bf16.mxu0 %vm476_vm8, %v5485_v34  ;;  %v5490_v42 = vld [vmem:[%s9214_s1 + $0xb0] ss:$8 sps:$4 sm:$0xff]  }
 0x25b   : > { %v1731_v43 = vpop.permute.xlu0 %1730 }
 0x25c   : > { %v1733_v44 = vpop.permute.xlu1 %1732 }
 0x25d   : > { %v1738_v45 = vsel %vm395_vm1, %v1731_v43, %v1733_v44  ;;  %1854 = vrot.lane.b32.xlu1 %v1726_v40, %s5654_s21  ;;  %1559 = vmatmul.mubr.bf16.gmra.mxu1 %v5484_v3  ;;  %v5488_v40 = vld [vmem:[%s9214_s1 + $0xb4] ss:$8 sps:$4 sm:$0xff]  }
 0x25e   : > { %1856 = vrot.lane.b32.xlu0 %v1738_v45, %s5654_s21  ;;  %5223 = vmatprep.mubr.msk.bf16.mxu1 %vm476_vm8, %v5485_v34 }
 0x25f   : > { %v1735_v46 = vpop.permute.xlu0 %1734 }
 0x260   : > { %v6508_v47 = vpop.permute.xlu1 %1736  ;;  %v1739_v48 = vsel %vm395_vm1, %v1733_v44, %v1735_v46 }
 0x261   : > { %v1740_v49 = vsel %vm395_vm1, %v1735_v46, %v6508_v47  ;;  %1858 = vrot.lane.b32.xlu1 %v1739_v48, %s5654_s21  ;;  %1498 = vmatmul.mubr.bf16.gmra.mxu0 %v5487_v36 }
 0x262   : > { %1860 = vrot.lane.b32.xlu0 %v1740_v49, %s5654_s21  ;;  %5220 = vmatprep.mubr.msk.bf16.mxu0 %vm476_vm8, %v5488_v40  ;;  %v5493_v49 = vld [vmem:[%s9214_s1 + $0xc4] ss:$8 sps:$4 sm:$0xff]  }
 0x263   : > { %v1742_v55 = vpop.permute.xlu0 %1741 }
 0x264   : > { %v1744_v57 = vpop.permute.xlu1 %1743 }
 0x265   : > { %2245 = vrot.lane.b32.xlu1 %v6292_v6, %s5650_s14  ;;  %v1749_v17 = vsel %vm410_vm0, %v1742_v55, %v1744_v57  ;;  %1567 = vmatmul.mubr.bf16.gmra.mxu1 %v5487_v36 }
 0x266   : > { %2247 = vrot.lane.b32.xlu0 %v6297_v13, %s5650_s14  ;;  %5224 = vmatprep.mubr.msk.bf16.mxu1 %vm476_vm8, %v5488_v40 }
 0x267   : > { %v1746_v58 = vpop.permute.xlu0 %1745 }
 0x268   : > { %v1748_v61 = vpop.permute.xlu1 %1747  ;;  %v1750_v0 = vsel %vm410_vm0, %v1744_v57, %v1746_v58 }
 0x269   : > { %2249 = vrot.lane.b32.xlu1 %v6302_v11, %s5650_s14  ;;  %v1751_v23 = vsel %vm410_vm0, %v1746_v58, %v1748_v61  ;;  %1508 = vmatmul.mubr.bf16.gmra.mxu0 %v5490_v42 }
 0x26a   : > { %2243 = vrot.lane.b32.xlu0 %v6288_v20, %s5650_s14  ;;  %5245 = vmatprep.mubr.msk.bf16.mxu0 %vm476_vm8, %v5493_v49 }
 0x26b   : > { %v6591_v18 = vpop.permute.xlu0 %1752 }
 0x26c   : > { %v6599_v24 = vpop.permute.xlu1 %1754 }
 0x26d   : > { %2234 = vrot.lane.b32.xlu1 %v6292_v6, %s5648_s13  ;;  %1575 = vmatmul.mubr.bf16.gmra.mxu1 %v5490_v42  ;;  %v6815_v42 = vld [vmem:[%s5717_s30 + $0x4] ss:$20 sps:$4 sm:$0xff]  }
 0x26e   : > { %2236 = vrot.lane.b32.xlu0 %v6297_v13, %s5648_s13  ;;  %5249 = vmatprep.mubr.msk.bf16.mxu1 %vm476_vm8, %v5493_v49 }
 0x26f   : > { %v6603_v14 = vpop.permute.xlu0 %1756 }
 0x270   : > { %v6607_v22 = vpop.permute.xlu1 %1758  ;;  %v1761_v43 = vsel %vm425_vm7, %v6599_v24, %v6603_v14 }
 0x271   : > { %2238 = vrot.lane.b32.xlu1 %v6302_v11, %s5648_s13  ;;  %v1762_v46 = vsel %vm425_vm7, %v6603_v14, %v6607_v22 }
 0x272   : > { %2232 = vrot.lane.b32.xlu0 %v6288_v20, %s5648_s13 }
 0x273   : > { %v6611_v25 = vpop.permute.xlu0 %1808 }
 0x274   : > { %v6617_v1 = vpop.permute.xlu1 %1810 }
 0x275   : > { %2223 = vrot.lane.b32.xlu1 %v6292_v6, %s5647_s12 }
 0x276   : > { %2225 = vrot.lane.b32.xlu0 %v6297_v13, %s5647_s12 }
 0x277   : > { %v6622_v62 = vpop.permute.xlu0 %1812 }
 0x278   : > { %v6626_v63 = vpop.permute.xlu1 %1814 }
 0x279   : > { %2227 = vrot.lane.b32.xlu1 %v6302_v11, %s5647_s12 }
 0x27a   : > { %2221 = vrot.lane.b32.xlu0 %v6288_v20, %s5647_s12 }
 0x27d   : > { %2212 = vrot.lane.b32.xlu1 %v6292_v6, %s5646_s11 }
 0x27e   : > { %2214 = vrot.lane.b32.xlu0 %v6297_v13, %s5646_s11 }
 0x281   : > { %2216 = vrot.lane.b32.xlu1 %v6302_v11, %s5646_s11 }
 0x282   : > { %2210 = vrot.lane.b32.xlu0 %v6288_v20, %s5646_s11 }
 0x285   : > { %2201 = vrot.lane.b32.xlu1 %v6292_v6, %s5645_s10 }
 0x286   : > { %2203 = vrot.lane.b32.xlu0 %v6297_v13, %s5645_s10 }
 0x289   : > { %2205 = vrot.lane.b32.xlu1 %v6302_v11, %s5645_s10 }
 0x28a   : > { %2199 = vrot.lane.b32.xlu0 %v6288_v20, %s5645_s10 }
 0x28d   : > { %2190 = vrot.lane.b32.xlu1 %v6292_v6, %s5644_s9 }
 0x28e   : > { %2192 = vrot.lane.b32.xlu0 %v6297_v13, %s5644_s9 }
 0x291   : > { %2194 = vrot.lane.b32.xlu1 %v6302_v11, %s5644_s9 }
 0x292   : > { %2188 = vrot.lane.b32.xlu0 %v6288_v20, %s5644_s9 }
 0x295   : > { %1866 = vrot.lane.b32.xlu1 %v1750_v0, %s5654_s21 }
 0x296   : > { %1868 = vrot.lane.b32.xlu0 %v1751_v23, %s5654_s21 }
 0x299   : > { %1864 = vrot.lane.b32.xlu1 %v1749_v17, %s5654_s21 }
 0x29a   : > { %2179 = vrot.lane.b32.xlu0 %v6292_v6, %s5643_s8 }
 0x29d   : > { %2181 = vrot.lane.b32.xlu1 %v6297_v13, %s5643_s8 }
 0x29e   : > { %2183 = vrot.lane.b32.xlu0 %v6302_v11, %s5643_s8 }
 0x2a1   : > { %2177 = vrot.lane.b32.xlu1 %v6288_v20, %s5643_s8 }
 0x2a2   : > { %1870 = vrot.lane.b32.xlu0 %v1748_v61, %s5654_s21 }
 0x2a5   : > { %1862 = vrot.lane.b32.xlu1 %v6508_v47, %s5654_s21  ;;  %v1760_v47 = vsel %vm425_vm7, %v6591_v18, %v6599_v24 }
 0x2a6   : > { %2256 = vrot.lane.b32.xlu0 %v6292_v6, %s5651_s15 }
 0x2a8   : > { %v6630_v21 = vpop.permute.xlu0 %1816 }
 0x2a9   : > { %2258 = vrot.lane.b32.xlu1 %v6297_v13, %s5651_s15 }
 0x2aa   : > { %2260 = vrot.lane.b32.xlu0 %v6302_v11, %s5651_s15 }
 0x2ab   : > { %v6636_v16 = vpop.permute.xlu1 %1818 }
 0x2ac   : > { %v6638_v26 = vpop.permute.xlu0 %1820 }
 0x2ad   : > { %2254 = vrot.lane.b32.xlu1 %v6288_v20, %s5651_s15 }
 0x2ae   : > { %2751 = vrot.lane.b32.xlu0 %v6292_v6, %s5650_s14 }
 0x2af   : > { %v6644_v27 = vpop.permute.xlu1 %1822 }
 0x2b0   : > { %v6646_v12 = vpop.permute.xlu0 %1824 }
 0x2b1   : > { %2753 = vrot.lane.b32.xlu1 %v6297_v13, %s5650_s14 }
 0x2b2   : > { %2755 = vrot.lane.b32.xlu0 %v6302_v11, %s5650_s14 }
 0x2b3   : > { %v6652_v9 = vpop.permute.xlu1 %1826 }
 0x2b4   : > { %v6654_v4 = vpop.permute.xlu0 %1828 }
 0x2b5   : > { %2749 = vrot.lane.b32.xlu1 %v6288_v20, %s5650_s14 }
 0x2b6   : > { %2740 = vrot.lane.b32.xlu0 %v6292_v6, %s5648_s13 }
 0x2b7   : > { %v6660_v8 = vpop.permute.xlu1 %1830 }
 0x2b8   : > { %v6662_v15 = vpop.permute.xlu0 %1832 }
 0x2b9   : > { %2742 = vrot.lane.b32.xlu1 %v6297_v13, %s5648_s13 }
 0x2ba   : > { %2744 = vrot.lane.b32.xlu0 %v6302_v11, %s5648_s13 }
 0x2bb   : > { %v6668_v28 = vpop.permute.xlu1 %1834 }
 0x2bc   : > { %v6670_v29 = vpop.permute.xlu0 %1836 }
 0x2bd   : > { %2738 = vrot.lane.b32.xlu1 %v6288_v20, %s5648_s13 }
 0x2be   : > { %2729 = vrot.lane.b32.xlu0 %v6292_v6, %s5647_s12 }
 0x2bf   : > { %v6676_v10 = vpop.permute.xlu1 %1838 }
 0x2c0   : > { %v6678_v19 = vpop.permute.xlu0 %1840 }
 0x2c1   : > { %2731 = vrot.lane.b32.xlu1 %v6297_v13, %s5647_s12 }
 0x2c2   : > { %2733 = vrot.lane.b32.xlu0 %v6302_v11, %s5647_s12 }
 0x2c3   : > { %v6684_v2 = vpop.permute.xlu1 %1842 }
 0x2c4   : > { %v6689_v30 = vpop.permute.xlu0 %1844 }
 0x2c5   : > { %2727 = vrot.lane.b32.xlu1 %v6288_v20, %s5647_s12 }
 0x2c6   : > { %2718 = vrot.lane.b32.xlu0 %v6292_v6, %s5646_s11 }
 0x2c7   : > { %v6699_v31 = vpop.permute.xlu1 %1846 }
 0x2c8   : > { %v6702_v32 = vpop.permute.xlu0 %1848 }
 0x2c9   : > { %2720 = vrot.lane.b32.xlu1 %v6297_v13, %s5646_s11 }
 0x2ca   : > { %2722 = vrot.lane.b32.xlu0 %v6302_v11, %s5646_s11 }
 0x2cb   : > { %v6708_v33 = vpop.permute.xlu1 %1850 }
 0x2cc   : > { %v6713_v35 = vpop.permute.xlu0 %1852 }
 0x2cd   : > { %2716 = vrot.lane.b32.xlu1 %v6288_v20, %s5646_s11 }
 0x2ce   : > { %2707 = vrot.lane.b32.xlu0 %v6292_v6, %s5645_s10 }
 0x2cf   : > { %v6723_v37 = vpop.permute.xlu1 %1854 }
 0x2d0   : > { %v6726_v38 = vpop.permute.xlu0 %1856 }
 0x2d1   : > { %2709 = vrot.lane.b32.xlu1 %v6297_v13, %s5645_s10 }
 0x2d2   : > { %2711 = vrot.lane.b32.xlu0 %v6302_v11, %s5645_s10 }
 0x2d3   : > { %v6732_v39 = vpop.permute.xlu1 %1858 }
 0x2d4   : > { %v6737_v41 = vpop.permute.xlu0 %1860 }
 0x2d5   : > { %2705 = vrot.lane.b32.xlu1 %v6288_v20, %s5645_s10 }
 0x2d6   : > { %1874 = vrot.lane.b32.xlu0 %v1761_v43, %s5654_s21  ;;  %v6819_v43 = vld [vmem:[%s5717_s30 + $0x8] ss:$20 sps:$4 sm:$0xff]  }
 0x2d7   : > { %v2246_v44 = vpop.permute.xlu1 %2245 }
 0x2d8   : > { %v2248_v45 = vpop.permute.xlu0 %2247 }
 0x2d9   : > { %1876 = vrot.lane.b32.xlu1 %v1762_v46, %s5654_s21  ;;  %v2252_v55 = vsel %vm410_vm0, %v2246_v44, %v2248_v45  ;;  %v5475_v46 = vld [vmem:[%s5717_s30 + $0xc] ss:$20 sps:$4 sm:$0xff]  }
 0x2da   : > { %1872 = vrot.lane.b32.xlu0 %v1760_v47, %s5654_s21 }
 0x2db   : > { %v2250_v48 = vpop.permute.xlu1 %2249 }
 0x2dc   : > { %v2244_v50 = vpop.permute.xlu0 %2243  ;;  %v2253_v56 = vsel %vm410_vm0, %v2248_v45, %v2250_v48 }
 0x2dd   : > { %2696 = vrot.lane.b32.xlu1 %v6292_v6, %s5644_s9  ;;  %v2251_v59 = vsel %vm410_vm0, %v2244_v50, %v2246_v44 }
 0x2de   : > { %2698 = vrot.lane.b32.xlu0 %v6297_v13, %s5644_s9 }
 0x2df   : > { %v2235_v51 = vpop.permute.xlu1 %2234 }
 0x2e0   : > { %v2237_v52 = vpop.permute.xlu0 %2236 }
 0x2e1   : > { %2700 = vrot.lane.b32.xlu1 %v6302_v11, %s5644_s9  ;;  %v2241_v14 = vsel %vm395_vm1, %v2235_v51, %v2237_v52 }
 0x2e2   : > { %2694 = vrot.lane.b32.xlu0 %v6288_v20, %s5644_s9 }
 0x2e3   : > { %v2239_v53 = vpop.permute.xlu1 %2238 }
 0x2e4   : > { %v2233_v54 = vpop.permute.xlu0 %2232  ;;  %v2242_v17 = vsel %vm395_vm1, %v2237_v52, %v2239_v53 }
 0x2e5   : > { %2368 = vrot.lane.b32.xlu1 %v2252_v55, %s5655_s19 }
 0x2e6   : > { %2370 = vrot.lane.b32.xlu0 %v2253_v56, %s5655_s19  ;;  %v1900_v56 = vsel %vm1880_vm11, %v6732_v39, %v6737_v41 }
 0x2e7   : > { %v2224_v57 = vpop.permute.xlu1 %2223 }
 0x2e8   : > { %v2226_v58 = vpop.permute.xlu0 %2225 }
 0x2e9   : > { %1878 = vrot.lane.b32.xlu1 %v6607_v22, %s5654_s21  ;;  %v2230_v7 = vsel %vm380_vm2, %v2224_v57, %v2226_v58 }
 0x2ea   : > { %2366 = vrot.lane.b32.xlu0 %v2251_v59, %s5655_s19  ;;  %v1899_v59 = vsel %vm1880_vm11, %v6726_v38, %v6732_v39  ;;  %v1896_v38 = vsel %vm1880_vm11, %v6702_v32, %v6708_v33 }
 0x2eb   : > { %v2228_v60 = vpop.permute.xlu1 %2227 }
 0x2ec   : > { %v2222_v61 = vpop.permute.xlu0 %2221  ;;  %v2231_v3 = vsel %vm380_vm2, %v2226_v58, %v2228_v60 }
 0x2ed   : > { %2685 = vrot.lane.b32.xlu1 %v6292_v6, %s5643_s8  ;;  %v2229_v36 = vsel %vm380_vm2, %v2222_v61, %v2224_v57  ;;  %v1897_v61 = vsel %vm1880_vm11, %v6708_v33, %v6713_v35 }
 0x2ee   : > { %2687 = vrot.lane.b32.xlu0 %v6297_v13, %s5643_s8  ;;  %v2240_v13 = vsel %vm395_vm1, %v2233_v54, %v2235_v51 }
 0x2ef   : > { %v2213_v18 = vpop.permute.xlu1 %2212 }
 0x2f0   : > { %v2215_v0 = vpop.permute.xlu0 %2214 }
 0x2f1   : > { %2689 = vrot.lane.b32.xlu1 %v6302_v11, %s5643_s8  ;;  %v2219_v49 = vsel %vm365_vm3, %v2213_v18, %v2215_v0 }
 0x2f2   : > { %2683 = vrot.lane.b32.xlu0 %v6288_v20, %s5643_s8 }
 0x2f3   : > { %v6787_v23 = vpop.permute.xlu1 %2216 }
 0x2f4   : > { %v2211_v24 = vpop.permute.xlu0 %2210  ;;  %v2220_v54 = vsel %vm365_vm3, %v2215_v0, %v6787_v23  ;;  %v6862_v0 = vld [vmem:[%s5717_s30 + $0x10] ss:$20 sps:$4 sm:$0xff]  }
 0x2f5   : > { %2360 = vrot.lane.b32.xlu1 %v2241_v14, %s5655_s19  ;;  %v2218_v55 = vsel %vm365_vm3, %v2211_v24, %v2213_v18  ;;  %v6857_v18 = vld [vmem:[%s5717_s30 + $0xc] ss:$20 sps:$4 sm:$0xff]  }
 0x2f6   : > { %2362 = vrot.lane.b32.xlu0 %v2242_v17, %s5655_s19 }
 0x2f7   : > { %v6793_v6 = vpop.permute.xlu1 %2201 }
 0x2f8   : > { %v6796_v11 = vpop.permute.xlu0 %2203 }
 0x2f9   : > { %2358 = vrot.lane.b32.xlu1 %v2240_v13, %s5655_s19  ;;  %v1893_v13 = vsel %vm1880_vm11, %v6678_v19, %v6684_v2 }
 0x2fa   : > { %2372 = vrot.lane.b32.xlu0 %v2250_v48, %s5655_s19 }
 0x2fb   : > { %v6800_v20 = vpop.permute.xlu1 %2205 }
 0x2fc   : > { %v6802_v22 = vpop.permute.xlu0 %2199 }
 0x2fd   : > { %2352 = vrot.lane.b32.xlu1 %v2230_v7, %s5655_s19  ;;  %v2208_v7 = vsel %vm350_vm5, %v6793_v6, %v6796_v11 }
 0x2fe   : > { %2354 = vrot.lane.b32.xlu0 %v2231_v3, %s5655_s19 }
 0x2ff   : > { %v6808_v34 = vpop.permute.xlu1 %2190 }
 0x300   : > { %v6811_v40 = vpop.permute.xlu0 %2192 }
 0x301   : > { %2350 = vrot.lane.b32.xlu1 %v2229_v36, %s5655_s19  ;;  %v1890_v36 = vsel %vm1880_vm11, %v6662_v15, %v6668_v28 }
 0x302   : > { %2364 = vrot.lane.b32.xlu0 %v2239_v53, %s5655_s19 }
 0x303   : > { %v6821_v44 = vpop.permute.xlu1 %2194 }
 0x304   : > { %v6823_v45 = vpop.permute.xlu0 %2188 }
 0x305   : > { %2773 = vrot.lane.b32.xlu1 %v6815_v42, %s5651_s15 }
 0x306   : > { %2775 = vrot.lane.b32.xlu0 %v6819_v43, %s5651_s15 }
 0x307   : > { %v1867_v47 = vpop.permute.xlu1 %1866 }
 0x308   : > { %v1869_v48 = vpop.permute.xlu0 %1868 }
 0x309   : > { %2777 = vrot.lane.b32.xlu1 %v5475_v46, %s5651_s15  ;;  %v1903_v50 = vsel %vm1880_vm11, %v1867_v47, %v1869_v48  ;;  %v1898_v46 = vsel %vm1880_vm11, %v6713_v35, %v6723_v37  ;;  %v1887_v35 = vsel %vm1880_vm11, %v6646_v12, %v6652_v9  ;;  %v1895_v37 = vsel %vm1880_vm11, %v6689_v30, %v6699_v31 }
 0x30a   : > { %2344 = vrot.lane.b32.xlu0 %v2219_v49, %s5655_s19  ;;  %1947 = vmatprep.subr.bf16.mxu0 %v1903_v50  ;;  %v1882_v31 = vsel %vm1880_vm11, %v6617_v1, %v6622_v62 }
 0x30b   : > { %v1865_v51 = vpop.permute.xlu1 %1864 }
 0x30c   : > { %v1902_v52 = vsel %vm1880_vm11, %v1865_v51, %v1867_v47  ;;  %v6835_v53 = vpop.permute.xlu0 %2179  ;;  %v2207_v47 = vsel %vm350_vm5, %v6802_v22, %v6793_v6  ;;  %v1885_v6 = vsel %vm1880_vm11, %v6636_v16, %v6638_v26 }
 0x30d   : > { %2346 = vrot.lane.b32.xlu1 %v2220_v54, %s5655_s19  ;;  %1948 = vmatpush1.bf16.msra.mxu0 %v1902_v52 }
 0x30e   : > { %2342 = vrot.lane.b32.xlu0 %v2218_v55, %s5655_s19  ;;  %1949 = vmatprep.subr.bf16.mxu0 %v1900_v56 }
 0x30f   : > { %v6845_v57 = vpop.permute.xlu1 %2181 }
 0x310   : > { %v6847_v58 = vpop.permute.xlu0 %2183 }
 0x311   : > { %2356 = vrot.lane.b32.xlu1 %v2228_v60, %s5655_s19  ;;  %1950 = vmatpush1.bf16.msra.mxu0 %v1899_v59  ;;  %v1894_v60 = vsel %vm1880_vm11, %v6684_v2, %v6689_v30  ;;  %v2209_v2 = vsel %vm350_vm5, %v6796_v11, %v6800_v20  ;;  %v1888_v11 = vsel %vm1880_vm11, %v6652_v9, %v6654_v4 }
 0x312   : > { %3263 = vrot.lane.b32.xlu0 %v6819_v43, %s5650_s14  ;;  %1951 = vmatprep.subr.bf16.mxu0 %v1897_v61  ;;  %v1884_v9 = vsel %vm1880_vm11, %v6630_v21, %v6636_v16  ;;  %v1892_v30 = vsel %vm1880_vm11, %v6670_v29, %v6676_v10  ;;  %v1881_v16 = vsel %vm1880_vm11, %v6611_v25, %v6617_v1 }
 0x313   : > { %v6864_v24 = vpop.permute.xlu1 %2177  ;;  %v2197_v10 = vsel %vm335_vm6, %v6808_v34, %v6811_v40  ;;  %v2198_v1 = vsel %vm335_vm6, %v6811_v40, %v6821_v44  ;;  %v1883_v40 = vsel %vm1880_vm11, %v6622_v62, %v6626_v63  ;;  %v2187_v51 = vsel %vm320_vm4, %v6845_v57, %v6847_v58 }
 0x314   : > { %v1871_v14 = vpop.permute.xlu0 %1870  ;;  %v2185_v52 = vsel %vm320_vm4, %v6864_v24, %v6835_v53 }
 0x315   : > { %v1904_v39 = vsel %vm1880_vm11, %v1869_v48, %v1871_v14  ;;  %3265 = vrot.lane.b32.xlu1 %v6857_v18, %s5650_s14  ;;  %1952 = vmatpush1.bf16.msra.mxu0 %v1896_v38 }
 0x316   : > { %3267 = vrot.lane.b32.xlu0 %v6862_v0, %s5650_s14  ;;  %2021 = vmatpush1.bf16.msra.mxu1 %v1904_v39  ;;  %v7056_v39 = vld [vmem:[%s5717_s30 + $0x8] ss:$20 sps:$4 sm:$0xff]  }
 0x317   : > { %1953 = vmatprep.subr.bf16.mxu0 %v1894_v60  ;;  %v1863_v17 = vpop.permute.xlu1 %1862  ;;  %2022 = vmatprep.subr.bf16.mxu1 %v9221_v5  ;;  %v5491_v60 = vld [vmem:[%s9214_s1 + $0xc0] ss:$8 sps:$4 sm:$0xff]  }
 0x318   : > { %v1901_v32 = vsel %vm1880_vm11, %v6737_v41, %v1863_v17  ;;  %v6880_v33 = vpop.permute.xlu0 %2256  ;;  %v1891_v41 = vsel %vm1880_vm11, %v6668_v28, %v6670_v29  ;;  %v1889_v29 = vsel %vm1880_vm11, %v6654_v4, %v6660_v8  ;;  %v1886_v4 = vsel %vm1880_vm11, %v6638_v26, %v6644_v27  ;;  %v7064_v17 = vld [vmem:[%s5717_s30] ss:$20 sps:$4 sm:$0xff]  }
 0x319   : > { %3261 = vrot.lane.b32.xlu1 %v6815_v42, %s5650_s14  ;;  %1954 = vmatpush1.bf16.msra.mxu0 %v1893_v13  ;;  %v2196_v8 = vsel %vm335_vm6, %v6823_v45, %v6808_v34 }
 0x31a   : > { %2336 = vrot.lane.b32.xlu0 %v2208_v7, %s5655_s19  ;;  %2023 = vmatpush1.bf16.msra.mxu1 %v1901_v32  ;;  %v5494_v32 = vld [vmem:[%s9214_s1 + $0xd4] ss:$8 sps:$4 sm:$0xff]  }
 0x31b   : > { %1955 = vmatprep.subr.bf16.mxu0 %v1891_v41  ;;  %v6894_v3 = vpop.permute.xlu1 %2258  ;;  %2024 = vmatprep.subr.bf16.mxu1 %v9221_v5 }
 0x31c   : > { %v6897_v19 = vpop.permute.xlu0 %2260 }
 0x31d   : > { %2338 = vrot.lane.b32.xlu1 %v2209_v2, %s5655_s19  ;;  %1956 = vmatpush1.bf16.msra.mxu0 %v1890_v36  ;;  %v5496_v36 = vld [vmem:[%s9214_s1 + $0xd0] ss:$8 sps:$4 sm:$0xff]  }
 0x31e   : > { %2334 = vrot.lane.b32.xlu0 %v2207_v47, %s5655_s19  ;;  %2025 = vmatpush1.bf16.msra.mxu1 %v1898_v46  ;;  %v5497_v46 = vld [vmem:[%s9214_s1 + $0xe4] ss:$8 sps:$4 sm:$0xff]  }
 0x31f   : > { %1957 = vmatprep.subr.bf16.mxu0 %v1888_v11  ;;  %v6916_v15 = vpop.permute.xlu1 %2254  ;;  %2026 = vmatprep.subr.bf16.mxu1 %v9221_v5  ;;  %v2263_v11 = vsel %vm425_vm7, %v6880_v33, %v6894_v3 }
 0x320   : > { %v6919_v28 = vpop.permute.xlu0 %2751 }
 0x321   : > { %2348 = vrot.lane.b32.xlu1 %v6787_v23, %s5655_s19  ;;  %1958 = vmatpush1.bf16.msra.mxu0 %v1887_v35 }
 0x322   : > { %3252 = vrot.lane.b32.xlu0 %v6819_v43, %s5648_s13  ;;  %2027 = vmatpush1.bf16.msra.mxu1 %v1895_v37 }
 0x323   : > { %1959 = vmatprep.subr.bf16.mxu0 %v1885_v6  ;;  %v6934_v22 = vpop.permute.xlu1 %2753  ;;  %2028 = vmatprep.subr.bf16.mxu1 %v9221_v5  ;;  %v2264_v6 = vsel %vm425_vm7, %v6894_v3, %v6897_v19  ;;  %v5500_v3 = vld [vmem:[%s9214_s1 + $0xf4] ss:$8 sps:$4 sm:$0xff]  }
 0x324   : > { %v6937_v12 = vpop.permute.xlu0 %2755 }
 0x325   : > { %3254 = vrot.lane.b32.xlu1 %v6857_v18, %s5648_s13  ;;  %1960 = vmatpush1.bf16.msra.mxu0 %v1884_v9 }
 0x326   : > { %3256 = vrot.lane.b32.xlu0 %v6862_v0, %s5648_s13  ;;  %2029 = vmatpush1.bf16.msra.mxu1 %v1892_v30 }
 0x327   : > { %1961 = vmatprep.subr.bf16.mxu0 %v1882_v31  ;;  %v6952_v23 = vpop.permute.xlu1 %2749  ;;  %2030 = vmatprep.subr.bf16.mxu1 %v9221_v5 }
 0x328   : > { %v6955_v21 = vpop.permute.xlu0 %2740 }
 0x329   : > { %3250 = vrot.lane.b32.xlu1 %v6815_v42, %s5648_s13  ;;  %1962 = vmatpush1.bf16.msra.mxu0 %v1881_v16  ;;  %v5499_v16 = vld [vmem:[%s9214_s1 + $0xe0] ss:$8 sps:$4 sm:$0xff]  }
 0x32a   : > { %2328 = vrot.lane.b32.xlu0 %v2197_v10, %s5655_s19  ;;  %2031 = vmatpush1.bf16.msra.mxu1 %v1889_v29  ;;  %v7112_v29 = vld [vmem:[%s5717_s30 + $0xc] ss:$20 sps:$4 sm:$0xff]  }
 0x32b   : > { %v6969_v48 = vpop.permute.xlu1 %2742  ;;  %2032 = vmatprep.subr.bf16.mxu1 %v9221_v5 }
 0x32c   : > { %v6972_v25 = vpop.permute.xlu0 %2744 }
 0x32d   : > { %2330 = vrot.lane.b32.xlu1 %v2198_v1, %s5655_s19  ;;  %v2262_v1 = vsel %vm425_vm7, %v6916_v15, %v6880_v33  ;;  %v5502_v33 = vld [vmem:[%s9214_s1 + $0xf0] ss:$8 sps:$4 sm:$0xff]  }
 0x32e   : > { %2326 = vrot.lane.b32.xlu0 %v2196_v8, %s5655_s19  ;;  %2033 = vmatpush1.bf16.msra.mxu1 %v1886_v4 }
 0x32f   : > { %v6985_v49 = vpop.permute.xlu1 %2738  ;;  %2034 = vmatprep.subr.bf16.mxu1 %v9221_v5 }
 0x330   : > { %v6988_v50 = vpop.permute.xlu0 %2729 }
 0x331   : > { %2340 = vrot.lane.b32.xlu1 %v6800_v20, %s5655_s19  ;;  %v2186_v20 = vsel %vm320_vm4, %v6835_v53, %v6845_v57 }
 0x332   : > { %3241 = vrot.lane.b32.xlu0 %v6819_v43, %s5647_s12  ;;  %2035 = vmatpush1.bf16.msra.mxu1 %v1883_v40 }
 0x333   : > { %v6997_v26 = vpop.permute.xlu1 %2731  ;;  %2050 = vmatprep.subr.bf16.mxu1 %v9221_v5 }
 0x334   : > { %v7000_v27 = vpop.permute.xlu0 %2733 }
 0x335   : > { %3243 = vrot.lane.b32.xlu1 %v6857_v18, %s5647_s12 }
 0x336   : > { %3245 = vrot.lane.b32.xlu0 %v6862_v0, %s5647_s12 }
 0x337   : > { %v7006_v62 = vpop.permute.xlu1 %2727 }
 0x338   : > { %v7008_v63 = vpop.permute.xlu0 %2718 }
 0x339   : > { %3239 = vrot.lane.b32.xlu1 %v6815_v42, %s5647_s12 }
 0x33a   : > { %2320 = vrot.lane.b32.xlu0 %v2186_v20, %s5655_s19  ;;  %v5505_v20 = vld [vmem:[%s9214_s1 + $0x104] ss:$8 sps:$4 sm:$0xff]  }
 0x33b   : > { %v7016_v34 = vpop.permute.xlu1 %2720 }
 0x33c   : > { %v7018_v45 = vpop.permute.xlu0 %2722 }
 0x33d   : > { %2322 = vrot.lane.b32.xlu1 %v2187_v51, %s5655_s19 }
 0x33e   : > { %2318 = vrot.lane.b32.xlu0 %v2185_v52, %s5655_s19  ;;  %v2758_v52 = vsel %vm410_vm0, %v6919_v28, %v6934_v22 }
 0x33f   : > { %v7028_v54 = vpop.permute.xlu1 %2716 }
 0x340   : > { %v7030_v55 = vpop.permute.xlu0 %2707 }
 0x341   : > { %2332 = vrot.lane.b32.xlu1 %v6821_v44, %s5655_s19  ;;  %v7049_v44 = vld [vmem:[%s5717_s30 + $0x4] ss:$20 sps:$4 sm:$0xff]  }
 0x342   : > { %3230 = vrot.lane.b32.xlu0 %v6819_v43, %s5646_s11 }
 0x343   : > { %v7036_v56 = vpop.permute.xlu1 %2709 }
 0x344   : > { %v7038_v57 = vpop.permute.xlu0 %2711 }
 0x345   : > { %3232 = vrot.lane.b32.xlu1 %v6857_v18, %s5646_s11 }
 0x346   : > { %3234 = vrot.lane.b32.xlu0 %v6862_v0, %s5646_s11 }
 0x347   : > { %v7044_v53 = vpop.permute.xlu1 %2705 }
 0x348   : > { %v1875_v59 = vpop.permute.xlu0 %1874 }
 0x349   : > { %3228 = vrot.lane.b32.xlu1 %v6815_v42, %s5646_s11 }
 0x34a   : > { %2312 = vrot.lane.b32.xlu0 %v7049_v44, %s5655_s19 }
 0x34b   : > { %v1877_v61 = vpop.permute.xlu1 %1876 }
 0x34c   : > { %v1873_v24 = vpop.permute.xlu0 %1872  ;;  %v1906_v14 = vsel %vm1880_vm11, %v1875_v59, %v1877_v61 }
 0x34d   : > { %v1905_v38 = vsel %vm1880_vm11, %v1873_v24, %v1875_v59  ;;  %2314 = vrot.lane.b32.xlu1 %v7056_v39, %s5655_s19  ;;  %1977 = vmatprep.subr.bf16.mxu0 %v1906_v14 }
 0x34e   : > { %2310 = vrot.lane.b32.xlu0 %v7064_v17, %s5655_s19  ;;  %1978 = vmatpush2.bf16.msra.mxu0 %v1905_v38  ;;  %v2759_v38 = vsel %vm410_vm0, %v6934_v22, %v6937_v12 }
 0x34f   : > { %v7071_v13 = vpop.permute.xlu1 %2696 }
 0x350   : > { %v7073_v7 = vpop.permute.xlu0 %2698 }
 0x351   : > { %2324 = vrot.lane.b32.xlu1 %v6847_v58, %s5655_s19  ;;  %1980 = vmatmul.mubr.bf16.vlgmr.msra.gmra.mxu0 %v5491_v60 }
 0x352   : > { %3219 = vrot.lane.b32.xlu0 %v6819_v43, %s5645_s10  ;;  %5246 = vmatprep.mubr.msk.bf16.mxu0 %vm476_vm8, %v5494_v32 }
 0x353   : > { %v7080_v41 = vpop.permute.xlu1 %2700 }
 0x354   : > { %v7082_v2 = vpop.permute.xlu0 %2694 }
 0x355   : > { %3221 = vrot.lane.b32.xlu1 %v6857_v18, %s5645_s10 }
 0x356   : > { %3223 = vrot.lane.b32.xlu0 %v6862_v0, %s5645_s10 }
 0x357   : > { %v2369_v58 = vpop.permute.xlu1 %2368 }
 0x358   : > { %v2371_v47 = vpop.permute.xlu0 %2370 }
 0x359   : > { %3217 = vrot.lane.b32.xlu1 %v6815_v42, %s5645_s10  ;;  %v2405_v35 = vsel %vm2382_vm12, %v2369_v58, %v2371_v47  ;;  %1990 = vmatmul.mubr.bf16.gmra.mxu0 %v5496_v36 }
 0x35a   : > { %2376 = vrot.lane.b32.xlu0 %v2263_v11, %s5655_s19  ;;  %2449 = vmatprep.subr.bf16.mxu0 %v2405_v35  ;;  %v2747_v35 = vsel %vm395_vm1, %v6955_v21, %v6969_v48 }
 0x35b   : > { %v1879_v37 = vpop.permute.xlu1 %1878  ;;  %5247 = vmatprep.mubr.msk.bf16.mxu0 %vm476_vm8, %v5497_v46 }
 0x35c   : > { %v1907_v9 = vsel %vm1880_vm11, %v1877_v61, %v1879_v37  ;;  %v2367_v30 = vpop.permute.xlu0 %2366 }
 0x35d   : > { %v2404_v31 = vsel %vm2382_vm12, %v2367_v30, %v2369_v58  ;;  %2051 = vmatpush2.bf16.msra.mxu1 %v1907_v9  ;;  %2378 = vrot.lane.b32.xlu1 %v2264_v6, %s5655_s19  ;;  %v2748_v9 = vsel %vm395_vm1, %v6969_v48, %v6972_v25  ;;  %v2746_v30 = vsel %vm395_vm1, %v6985_v49, %v6955_v21 }
 0x35e   : > { %2316 = vrot.lane.b32.xlu0 %v7112_v29, %s5655_s19  ;;  %2450 = vmatpush1.bf16.msra.mxu0 %v2404_v31  ;;  %v2736_v48 = vsel %vm380_vm2, %v6988_v50, %v6997_v26 }
 0x35f   : > { %v7119_v10 = vpop.permute.xlu1 %2685  ;;  %2522 = vmatprep.subr.bf16.mxu1 %v9221_v5 }
 0x360   : > { %v7125_v4 = vpop.permute.xlu0 %2687  ;;  %2053 = vmatmul.mubr.bf16.vlgmr.msra.gmra.mxu1 %v5491_v60 }
 0x361   : > { %2374 = vrot.lane.b32.xlu1 %v2262_v1, %s5655_s19  ;;  %2000 = vmatmul.mubr.bf16.gmra.mxu0 %v5499_v16 }
 0x362   : > { %3208 = vrot.lane.b32.xlu0 %v6819_v43, %s5644_s9  ;;  %5248 = vmatprep.mubr.msk.bf16.mxu0 %vm476_vm8, %v5500_v3 }
 0x363   : > { %v7131_v8 = vpop.permute.xlu1 %2689  ;;  %5250 = vmatprep.mubr.msk.bf16.mxu1 %vm476_vm8, %v5494_v32 }
 0x364   : > { %v7134_v40 = vpop.permute.xlu0 %2683 }
 0x365   : > { %3210 = vrot.lane.b32.xlu1 %v6857_v18, %s5644_s9 }
 0x366   : > { %3212 = vrot.lane.b32.xlu0 %v6862_v0, %s5644_s9 }
 0x367   : > { %v2361_v15 = vpop.permute.xlu1 %2360 }
 0x368   : > { %v2363_v51 = vpop.permute.xlu0 %2362  ;;  %2061 = vmatmul.mubr.bf16.gmra.mxu1 %v5496_v36  ;;  %v2757_v36 = vsel %vm410_vm0, %v6952_v23, %v6919_v28 }
 0x369   : > { %3206 = vrot.lane.b32.xlu1 %v6815_v42, %s5644_s9  ;;  %v2402_v59 = vsel %vm2382_vm12, %v2361_v15, %v2363_v51  ;;  %2010 = vmatmul.mubr.bf16.gmra.mxu0 %v5502_v33 }
 0x36a   : > { %2884 = vrot.lane.b32.xlu0 %v2758_v52, %s5656_s24  ;;  %2451 = vmatprep.subr.bf16.mxu0 %v2402_v59 }
 0x36b   : > { %v2359_v61 = vpop.permute.xlu1 %2358  ;;  %5251 = vmatprep.mubr.msk.bf16.mxu1 %vm476_vm8, %v5497_v46  ;;  %5273 = vmatprep.mubr.msk.bf16.mxu0 %vm476_vm8, %v5505_v20 }
 0x36c   : > { %v2401_v24 = vsel %vm2382_vm12, %v2359_v61, %v2361_v15  ;;  %v2373_v14 = vpop.permute.xlu0 %2372  ;;  %v2737_v15 = vsel %vm380_vm2, %v6997_v26, %v7000_v27 }
 0x36d   : > { %v2406_v60 = vsel %vm2382_vm12, %v2371_v47, %v2373_v14  ;;  %2886 = vrot.lane.b32.xlu1 %v2759_v38, %s5656_s24  ;;  %2452 = vmatpush1.bf16.msra.mxu0 %v2401_v24 }
 0x36e   : > { %2380 = vrot.lane.b32.xlu0 %v6897_v19, %s5655_s19  ;;  %2523 = vmatpush1.bf16.msra.mxu1 %v2406_v60  ;;  %v2726_v60 = vsel %vm365_vm3, %v7016_v34, %v7018_v45 }
 0x36f   : > { %v2353_v32 = vpop.permute.xlu1 %2352  ;;  %2524 = vmatprep.subr.bf16.mxu1 %v9221_v5 }
 0x370   : > { %v2355_v58 = vpop.permute.xlu0 %2354  ;;  %2069 = vmatmul.mubr.bf16.gmra.mxu1 %v5499_v16 }
 0x371   : > { %2882 = vrot.lane.b32.xlu1 %v2757_v36, %s5656_s24  ;;  %v2399_v22 = vsel %vm2382_vm12, %v2353_v32, %v2355_v58  ;;  %5252 = vmatprep.mubr.msk.bf16.mxu1 %vm476_vm8, %v5500_v3 }
 0x372   : > { %3197 = vrot.lane.b32.xlu0 %v6819_v43, %s5643_s8  ;;  %2453 = vmatprep.subr.bf16.mxu0 %v2399_v22 }
 0x373   : > { %v2351_v19 = vpop.permute.xlu1 %2350 }
 0x374   : > { %v2398_v46 = vsel %vm2382_vm12, %v2351_v19, %v2353_v32  ;;  %v2365_v47 = vpop.permute.xlu0 %2364  ;;  %v2724_v32 = vsel %vm365_vm3, %v7028_v54, %v7008_v63 }
 0x375   : > { %v2403_v11 = vsel %vm2382_vm12, %v2363_v51, %v2365_v47  ;;  %3199 = vrot.lane.b32.xlu1 %v6857_v18, %s5643_s8  ;;  %2454 = vmatpush1.bf16.msra.mxu0 %v2398_v46 }
 0x376   : > { %3201 = vrot.lane.b32.xlu0 %v6862_v0, %s5643_s8  ;;  %2525 = vmatpush1.bf16.msra.mxu1 %v2403_v11 }
 0x377   : > { %v7178_v28 = vpop.permute.xlu1 %2773  ;;  %2526 = vmatprep.subr.bf16.mxu1 %v9221_v5 }
 0x378   : > { %v7181_v23 = vpop.permute.xlu0 %2775  ;;  %2077 = vmatmul.mubr.bf16.gmra.mxu1 %v5502_v33 }
 0x379   : > { %3195 = vrot.lane.b32.xlu1 %v6815_v42, %s5643_s8  ;;  %5277 = vmatprep.mubr.msk.bf16.mxu1 %vm476_vm8, %v5505_v20 }
 0x37a   : > { %2876 = vrot.lane.b32.xlu0 %v2747_v35, %s5656_s24 }
 0x37b   : > { %v7190_v37 = vpop.permute.xlu1 %2777 }
 0x37c   : > { %v2345_v6 = vpop.permute.xlu0 %2344 }
 0x37d   : > { %2878 = vrot.lane.b32.xlu1 %v2748_v9, %s5656_s24  ;;  %v2713_v9 = vsel %vm350_vm5, %v7044_v53, %v7030_v55 }
 0x37e   : > { %2874 = vrot.lane.b32.xlu0 %v2746_v30, %s5656_s24 }
 0x37f   : > { %v2347_v31 = vpop.permute.xlu1 %2346 }
 0x380   : > { %v2343_v16 = vpop.permute.xlu0 %2342  ;;  %v2396_v3 = vsel %vm2382_vm12, %v2345_v6, %v2347_v31 }
 0x381   : > { %v2395_v1 = vsel %vm2382_vm12, %v2343_v16, %v2345_v6  ;;  %2888 = vrot.lane.b32.xlu1 %v6937_v12, %s5656_s24  ;;  %2455 = vmatprep.subr.bf16.mxu0 %v2396_v3  ;;  %v2735_v12 = vsel %vm380_vm2, %v7006_v62, %v6988_v50  ;;  %v2715_v6 = vsel %vm350_vm5, %v7036_v56, %v7038_v57 }
 0x382   : > { %2868 = vrot.lane.b32.xlu0 %v2736_v48, %s5656_s24  ;;  %2456 = vmatpush1.bf16.msra.mxu0 %v2395_v1 }
 0x383   : > { %v2357_v21 = vpop.permute.xlu1 %2356 }
 0x384   : > { %v2400_v49 = vsel %vm2382_vm12, %v2355_v58, %v2357_v21  ;;  %v7209_v33 = vpop.permute.xlu0 %3263 }
 0x385   : > { %2870 = vrot.lane.b32.xlu1 %v2737_v15, %s5656_s24  ;;  %2527 = vmatpush1.bf16.msra.mxu1 %v2400_v49  ;;  %v2704_v15 = vsel %vm335_vm6, %v7073_v7, %v7080_v41 }
 0x386   : > { %2866 = vrot.lane.b32.xlu0 %v2735_v12, %s5656_s24  ;;  %2528 = vmatprep.subr.bf16.mxu1 %v9221_v5  ;;  %v2702_v12 = vsel %vm335_vm6, %v7082_v2, %v7071_v13 }
 0x387   : > { %v7220_v20 = vpop.permute.xlu1 %3265 }
 0x388   : > { %v7222_v51 = vpop.permute.xlu0 %3267 }
 0x389   : > { %2880 = vrot.lane.b32.xlu1 %v6972_v25, %s5656_s24  ;;  %v2725_v25 = vsel %vm365_vm3, %v7008_v63, %v7016_v34 }
 0x38a   : > { %3274 = vrot.lane.b32.xlu0 %v6819_v43, %s5651_s15 }
 0x38b   : > { %v7228_v26 = vpop.permute.xlu1 %3261 }
 0x38c   : > { %v2337_v50 = vpop.permute.xlu0 %2336 }
 0x38d   : > { %3276 = vrot.lane.b32.xlu1 %v6857_v18, %s5651_s15 }
 0x38e   : > { %3278 = vrot.lane.b32.xlu0 %v6862_v0, %s5651_s15 }
 0x38f   : > { %v2339_v62 = vpop.permute.xlu1 %2338 }
 0x390   : > { %v2335_v52 = vpop.permute.xlu0 %2334  ;;  %v2393_v59 = vsel %vm2382_vm12, %v2337_v50, %v2339_v62 }
 0x391   : > { %v2392_v61 = vsel %vm2382_vm12, %v2335_v52, %v2337_v50  ;;  %3272 = vrot.lane.b32.xlu1 %v6815_v42, %s5651_s15  ;;  %2457 = vmatprep.subr.bf16.mxu0 %v2393_v59 }
 0x392   : > { %2860 = vrot.lane.b32.xlu0 %v2725_v25, %s5656_s24  ;;  %2458 = vmatpush1.bf16.msra.mxu0 %v2392_v61 }
 0x393   : > { %v2349_v24 = vpop.permute.xlu1 %2348 }
 0x394   : > { %v2397_v14 = vsel %vm2382_vm12, %v2347_v31, %v2349_v24  ;;  %v7243_v38 = vpop.permute.xlu0 %3252 }
 0x395   : > { %2862 = vrot.lane.b32.xlu1 %v2726_v60, %s5656_s24  ;;  %2529 = vmatpush1.bf16.msra.mxu1 %v2397_v14  ;;  %v2693_v60 = vsel %vm320_vm4, %v7125_v4, %v7131_v8 }
 0x396   : > { %2858 = vrot.lane.b32.xlu0 %v2724_v32, %s5656_s24  ;;  %2530 = vmatprep.subr.bf16.mxu1 %v9221_v5  ;;  %v2691_v32 = vsel %vm320_vm4, %v7134_v40, %v7119_v10 }
 0x397   : > { %v7254_v36 = vpop.permute.xlu1 %3254 }
 0x398   : > { %v7256_v58 = vpop.permute.xlu0 %3256 }
 0x399   : > { %2872 = vrot.lane.b32.xlu1 %v7000_v27, %s5656_s24  ;;  %v2714_v27 = vsel %vm350_vm5, %v7030_v55, %v7036_v56 }
 0x39a   : > { %3765 = vrot.lane.b32.xlu0 %v6819_v43, %s5650_s14 }
 0x39b   : > { %v7262_v34 = vpop.permute.xlu1 %3250 }
 0x39c   : > { %v2329_v63 = vpop.permute.xlu0 %2328 }
 0x39d   : > { %3767 = vrot.lane.b32.xlu1 %v6857_v18, %s5650_s14 }
 0x39e   : > { %3769 = vrot.lane.b32.xlu0 %v6862_v0, %s5650_s14 }
 0x39f   : > { %v2331_v54 = vpop.permute.xlu1 %2330 }
 0x3a0   : > { %v2327_v22 = vpop.permute.xlu0 %2326  ;;  %v2390_v19 = vsel %vm2382_vm12, %v2329_v63, %v2331_v54 }
 0x3a1   : > { %v2389_v46 = vsel %vm2382_vm12, %v2327_v22, %v2329_v63  ;;  %3763 = vrot.lane.b32.xlu1 %v6815_v42, %s5650_s14  ;;  %2459 = vmatprep.subr.bf16.mxu0 %v2390_v19 }
 0x3a2   : > { %2852 = vrot.lane.b32.xlu0 %v2714_v27, %s5656_s24  ;;  %2460 = vmatpush1.bf16.msra.mxu0 %v2389_v46 }
 0x3a3   : > { %v2341_v47 = vpop.permute.xlu1 %2340 }
 0x3a4   : > { %v2394_v11 = vsel %vm2382_vm12, %v2339_v62, %v2341_v47  ;;  %v7277_v35 = vpop.permute.xlu0 %3241 }
 0x3a5   : > { %2854 = vrot.lane.b32.xlu1 %v2715_v6, %s5656_s24  ;;  %2531 = vmatpush1.bf16.msra.mxu1 %v2394_v11  ;;  %v5503_v11 = vld [vmem:[%s9214_s1 + $0x100] ss:$8 sps:$4 sm:$0xff]  }
 0x3a6   : > { %2850 = vrot.lane.b32.xlu0 %v2713_v9, %s5656_s24  ;;  %2532 = vmatprep.subr.bf16.mxu1 %v9221_v5 }
 0x3a7   : > { %v7288_v30 = vpop.permute.xlu1 %3243 }
 0x3a8   : > { %v7290_v31 = vpop.permute.xlu0 %3245 }
 0x3a9   : > { %2864 = vrot.lane.b32.xlu1 %v7018_v45, %s5656_s24  ;;  %v2703_v45 = vsel %vm335_vm6, %v7071_v13, %v7073_v7 }
 0x3aa   : > { %3754 = vrot.lane.b32.xlu0 %v6819_v43, %s5648_s13 }
 0x3ab   : > { %v7296_v56 = vpop.permute.xlu1 %3239 }
 0x3ac   : > { %v2321_v55 = vpop.permute.xlu0 %2320 }
 0x3ad   : > { %3756 = vrot.lane.b32.xlu1 %v6857_v18, %s5648_s13 }
 0x3ae   : > { %3758 = vrot.lane.b32.xlu0 %v6862_v0, %s5648_s13 }
 0x3af   : > { %v2323_v53 = vpop.permute.xlu1 %2322 }
 0x3b0   : > { %v2319_v16 = vpop.permute.xlu0 %2318  ;;  %v2387_v3 = vsel %vm2382_vm12, %v2321_v55, %v2323_v53 }
 0x3b1   : > { %v2386_v1 = vsel %vm2382_vm12, %v2319_v16, %v2321_v55  ;;  %3752 = vrot.lane.b32.xlu1 %v6815_v42, %s5648_s13  ;;  %2461 = vmatprep.subr.bf16.mxu0 %v2387_v3 }
 0x3b2   : > { %2844 = vrot.lane.b32.xlu0 %v2703_v45, %s5656_s24  ;;  %2462 = vmatpush1.bf16.msra.mxu0 %v2386_v1  ;;  %v2779_v45 = vsel %vm425_vm7, %v7178_v28, %v7181_v23 }
 0x3b3   : > { %v2333_v48 = vpop.permute.xlu1 %2332 }
 0x3b4   : > { %v2391_v21 = vsel %vm2382_vm12, %v2331_v54, %v2333_v48  ;;  %v7311_v49 = vpop.permute.xlu0 %3230 }
 0x3b5   : > { %2846 = vrot.lane.b32.xlu1 %v2704_v15, %s5656_s24  ;;  %2533 = vmatpush1.bf16.msra.mxu1 %v2391_v21 }
 0x3b6   : > { %2842 = vrot.lane.b32.xlu0 %v2702_v12, %s5656_s24  ;;  %2534 = vmatprep.subr.bf16.mxu1 %v9221_v5  ;;  %v2780_v12 = vsel %vm425_vm7, %v7181_v23, %v7190_v37 }
 0x3b7   : > { %v7322_v50 = vpop.permute.xlu1 %3232 }
 0x3b8   : > { %v7324_v62 = vpop.permute.xlu0 %3234 }
 0x3b9   : > { %2856 = vrot.lane.b32.xlu1 %v7038_v57, %s5656_s24  ;;  %v2692_v57 = vsel %vm320_vm4, %v7119_v10, %v7125_v4 }
 0x3ba   : > { %3743 = vrot.lane.b32.xlu0 %v6819_v43, %s5647_s12 }
 0x3bb   : > { %v7330_v7 = vpop.permute.xlu1 %3228 }
 0x3bc   : > { %v2313_v13 = vpop.permute.xlu0 %2312 }
 0x3bd   : > { %3745 = vrot.lane.b32.xlu1 %v6857_v18, %s5647_s12 }
 0x3be   : > { %3747 = vrot.lane.b32.xlu0 %v6862_v0, %s5647_s12 }
 0x3bf   : > { %v2315_v2 = vpop.permute.xlu1 %2314 }
 0x3c0   : > { %v2311_v52 = vpop.permute.xlu0 %2310  ;;  %v2384_v59 = vsel %vm2382_vm12, %v2313_v13, %v2315_v2 }
 0x3c1   : > { %v2383_v61 = vsel %vm2382_vm12, %v2311_v52, %v2313_v13  ;;  %3741 = vrot.lane.b32.xlu1 %v6815_v42, %s5647_s12  ;;  %2463 = vmatprep.subr.bf16.mxu0 %v2384_v59  ;;  %v5517_v13 = vld [vmem:[%s9214_s1 + $0x120] ss:$8 sps:$4 sm:$0xff]  }
 0x3c2   : > { %2836 = vrot.lane.b32.xlu0 %v2692_v57, %s5656_s24  ;;  %2464 = vmatpush1.bf16.msra.mxu0 %v2383_v61  ;;  %v5523_v57 = vld [vmem:[%s9214_s1 + $0x144] ss:$8 sps:$4 sm:$0xff]  }
 0x3c3   : > { %v2325_v25 = vpop.permute.xlu1 %2324 }
 0x3c4   : > { %v2388_v24 = vsel %vm2382_vm12, %v2323_v53, %v2325_v25  ;;  %v7345_v14 = vpop.permute.xlu0 %3219  ;;  %v5515_v53 = vld [vmem:[%s9214_s1 + $0x124] ss:$8 sps:$4 sm:$0xff]  }
 0x3c5   : > { %2838 = vrot.lane.b32.xlu1 %v2693_v60, %s5656_s24  ;;  %2535 = vmatpush1.bf16.msra.mxu1 %v2388_v24 }
 0x3c6   : > { %2834 = vrot.lane.b32.xlu0 %v2691_v32, %s5656_s24  ;;  %2536 = vmatprep.subr.bf16.mxu1 %v9221_v5  ;;  %v3270_v32 = vsel %vm410_vm0, %v7209_v33, %v7220_v20 }
 0x3c7   : > { %v7356_v63 = vpop.permute.xlu1 %3221 }
 0x3c8   : > { %v7358_v54 = vpop.permute.xlu0 %3223 }
 0x3c9   : > { %2848 = vrot.lane.b32.xlu1 %v7080_v41, %s5656_s24 }
 0x3ca   : > { %3732 = vrot.lane.b32.xlu0 %v6819_v43, %s5646_s11 }
 0x3cb   : > { %v7364_v4 = vpop.permute.xlu1 %3217 }
 0x3cc   : > { %v2377_v10 = vpop.permute.xlu0 %2376 }
 0x3cd   : > { %3734 = vrot.lane.b32.xlu1 %v6857_v18, %s5646_s11 }
 0x3ce   : > { %3736 = vrot.lane.b32.xlu0 %v6862_v0, %s5646_s11 }
 0x3cf   : > { %v2379_v40 = vpop.permute.xlu1 %2378 }
 0x3d0   : > { %v2317_v22 = vpop.permute.xlu0 %2316  ;;  %v2408_v19 = vsel %vm2382_vm12, %v2377_v10, %v2379_v40 }
 0x3d1   : > { %v2385_v46 = vsel %vm2382_vm12, %v2315_v2, %v2317_v22  ;;  %3730 = vrot.lane.b32.xlu1 %v6815_v42, %s5646_s11  ;;  %2479 = vmatprep.subr.bf16.mxu0 %v2408_v19  ;;  %v5518_v2 = vld [vmem:[%s9214_s1 + $0x134] ss:$8 sps:$4 sm:$0xff]   ;;  %v3271_v19 = vsel %vm410_vm0, %v7220_v20, %v7222_v51 }
 0x3d2   : > { %2828 = vrot.lane.b32.xlu0 %v7049_v44, %s5656_s24  ;;  %2537 = vmatpush1.bf16.msra.mxu1 %v2385_v46  ;;  %v5512_v44 = vld [vmem:[%s9214_s1 + $0x114] ss:$8 sps:$4 sm:$0xff]  }
 0x3d3   : > { %v2375_v41 = vpop.permute.xlu1 %2374  ;;  %2552 = vmatprep.subr.bf16.mxu1 %v9221_v5 }
 0x3d4   : > { %v2407_v27 = vsel %vm2382_vm12, %v2375_v41, %v2377_v10  ;;  %v7378_v47 = vpop.permute.xlu0 %3208  ;;  %v3269_v41 = vsel %vm410_vm0, %v7228_v26, %v7209_v33 }
 0x3d5   : > { %2830 = vrot.lane.b32.xlu1 %v7056_v39, %s5656_s24  ;;  %2480 = vmatpush2.bf16.msra.mxu0 %v2407_v27 }
 0x3d6   : > { %2826 = vrot.lane.b32.xlu0 %v7064_v17, %s5656_s24  ;;  %v5514_v17 = vld [vmem:[%s9214_s1 + $0x110] ss:$8 sps:$4 sm:$0xff]  }
 0x3d7   : > { %v7390_v6 = vpop.permute.xlu1 %3210 }
 0x3d8   : > { %v7392_v9 = vpop.permute.xlu0 %3212  ;;  %2482 = vmatmul.mubr.bf16.vlgmr.msra.gmra.mxu0 %v5503_v11 }
 0x3d9   : > { %2840 = vrot.lane.b32.xlu1 %v7131_v8, %s5656_s24  ;;  %5274 = vmatprep.mubr.msk.bf16.mxu0 %vm476_vm8, %v5512_v44 }
 0x3da   : > { %3721 = vrot.lane.b32.xlu0 %v6819_v43, %s5645_s10 }
 0x3db   : > { %v7399_v39 = vpop.permute.xlu1 %3206 }
 0x3dc   : > { %v2885_v55 = vpop.permute.xlu0 %2884 }
 0x3dd   : > { %3723 = vrot.lane.b32.xlu1 %v6857_v18, %s5645_s10 }
 0x3de   : > { %3725 = vrot.lane.b32.xlu0 %v6862_v0, %s5645_s10 }
 0x3df   : > { %v2887_v8 = vpop.permute.xlu1 %2886 }
 0x3e0   : > { %v2381_v16 = vpop.permute.xlu0 %2380  ;;  %v2921_v3 = vsel %vm2898_vm13, %v2885_v55, %v2887_v8  ;;  %2492 = vmatmul.mubr.bf16.gmra.mxu0 %v5514_v17 }
 0x3e1   : > { %v2409_v1 = vsel %vm2382_vm12, %v2379_v40, %v2381_v16  ;;  %3719 = vrot.lane.b32.xlu1 %v6815_v42, %s5645_s10  ;;  %2965 = vmatprep.subr.bf16.mxu0 %v2921_v3  ;;  %v3258_v16 = vsel %vm395_vm1, %v7262_v34, %v7243_v38 }
 0x3e2   : > { %2892 = vrot.lane.b32.xlu0 %v2779_v45, %s5656_s24  ;;  %2553 = vmatpush2.bf16.msra.mxu1 %v2409_v1 }
 0x3e3   : > { %v2883_v48 = vpop.permute.xlu1 %2882  ;;  %3038 = vmatprep.subr.bf16.mxu1 %v9221_v5  ;;  %5275 = vmatprep.mubr.msk.bf16.mxu0 %vm476_vm8, %v5515_v53 }
 0x3e4   : > { %v2920_v21 = vsel %vm2898_vm13, %v2883_v48, %v2885_v55  ;;  %v7422_v15 = vpop.permute.xlu0 %3197 }
 0x3e5   : > { %2894 = vrot.lane.b32.xlu1 %v2780_v12, %s5656_s24  ;;  %2966 = vmatpush1.bf16.msra.mxu0 %v2920_v21  ;;  %v3249_v21 = vsel %vm380_vm2, %v7288_v30, %v7290_v31 }
 0x3e6   : > { %2832 = vrot.lane.b32.xlu0 %v7112_v29, %s5656_s24  ;;  %2555 = vmatmul.mubr.bf16.vlgmr.msra.gmra.mxu1 %v5503_v11  ;;  %v5520_v29 = vld [vmem:[%s9214_s1 + $0x130] ss:$8 sps:$4 sm:$0xff]  }
 0x3e7   : > { %v7436_v52 = vpop.permute.xlu1 %3199  ;;  %5278 = vmatprep.mubr.msk.bf16.mxu1 %vm476_vm8, %v5512_v44 }
 0x3e8   : > { %v7439_v23 = vpop.permute.xlu0 %3201  ;;  %2502 = vmatmul.mubr.bf16.gmra.mxu0 %v5517_v13 }
 0x3e9   : > { %2890 = vrot.lane.b32.xlu1 %v7178_v28, %s5656_s24  ;;  %5276 = vmatprep.mubr.msk.bf16.mxu0 %vm476_vm8, %v5518_v2 }
 0x3ea   : > { %3710 = vrot.lane.b32.xlu0 %v6819_v43, %s5644_s9 }
 0x3eb   : > { %v7446_v59 = vpop.permute.xlu1 %3195 }
 0x3ec   : > { %v2877_v61 = vpop.permute.xlu0 %2876 }
 0x3ed   : > { %3712 = vrot.lane.b32.xlu1 %v6857_v18, %s5644_s9 }
 0x3ee   : > { %3714 = vrot.lane.b32.xlu0 %v6862_v0, %s5644_s9  ;;  %2563 = vmatmul.mubr.bf16.gmra.mxu1 %v5514_v17 }
 0x3ef   : > { %v2879_v28 = vpop.permute.xlu1 %2878  ;;  %5279 = vmatprep.mubr.msk.bf16.mxu1 %vm476_vm8, %v5515_v53  ;;  %v3260_v53 = vsel %vm395_vm1, %v7254_v36, %v7256_v58 }
 0x3f0   : > { %v2875_v25 = vpop.permute.xlu0 %2874  ;;  %v2918_v24 = vsel %vm2898_vm13, %v2877_v61, %v2879_v28  ;;  %2512 = vmatmul.mubr.bf16.gmra.mxu0 %v5520_v29 }
 0x3f1   : > { %v2917_v60 = vsel %vm2898_vm13, %v2875_v25, %v2877_v61  ;;  %3708 = vrot.lane.b32.xlu1 %v6815_v42, %s5644_s9  ;;  %2967 = vmatprep.subr.bf16.mxu0 %v2918_v24  ;;  %v7560_v24 = vld [vmem:[%s5717_s30 + $0x4] ss:$20 sps:$4 sm:$0xff]  }
 0x3f2   : > { %3386 = vrot.lane.b32.xlu0 %v3270_v32, %s5657_s29  ;;  %2968 = vmatpush1.bf16.msra.mxu0 %v2917_v60  ;;  %v7570_v60 = vpop.f32.mrf.mxu1 }
 0x3f3   : > { %v2889_v10 = vpop.permute.xlu1 %2888  ;;  %5304 = vmatprep.mubr.msk.bf16.mxu0 %vm476_vm8, %v5523_v57 }
 0x3f4   : > { %v2922_v40 = vsel %vm2898_vm13, %v2887_v8, %v2889_v10  ;;  %v2869_v22 = vpop.permute.xlu0 %2868 }
 0x3f5   : > { %3388 = vrot.lane.b32.xlu1 %v3271_v19, %s5657_s29  ;;  %3039 = vmatpush1.bf16.msra.mxu1 %v2922_v40 }
 0x3f6   : > { %2896 = vrot.lane.b32.xlu0 %v7190_v37, %s5656_s24  ;;  %3040 = vmatprep.subr.bf16.mxu1 %v9221_v5 }
 0x3f7   : > { %v2871_v46 = vpop.permute.xlu1 %2870  ;;  %2571 = vmatmul.mubr.bf16.gmra.mxu1 %v5517_v13 }
 0x3f8   : > { %v2867_v27 = vpop.permute.xlu0 %2866  ;;  %v2915_v11 = vsel %vm2898_vm13, %v2869_v22, %v2871_v46  ;;  %5280 = vmatprep.mubr.msk.bf16.mxu1 %vm476_vm8, %v5518_v2  ;;  %v7547_v2 = vpop.f32.mrf.mxu0 }
 0x3f9   : > { %v2914_v20 = vsel %vm2898_vm13, %v2867_v27, %v2869_v22  ;;  %3384 = vrot.lane.b32.xlu1 %v3269_v41, %s5657_s29  ;;  %2969 = vmatprep.subr.bf16.mxu0 %v2915_v11  ;;  %v3238_v22 = vsel %vm365_vm3, %v7322_v50, %v7324_v62  ;;  %v598_v41 = vpop.f32.mrf.mxu1  ;;  %v7586_v27 = vld [vmem:[%s5717_s30 + $0x8] ss:$20 sps:$4 sm:$0xff]  }
 0x3fa   : > { %3699 = vrot.lane.b32.xlu0 %v6819_v43, %s5643_s8  ;;  %2970 = vmatpush1.bf16.msra.mxu0 %v2914_v20  ;;  %v3259_v43 = vsel %vm395_vm1, %v7243_v38, %v7254_v36  ;;  %v3248_v36 = vsel %vm380_vm2, %v7277_v35, %v7288_v30  ;;  %v7541_v30 = vld [vmem:[%s5717_s30 + $0x8] ss:$20 sps:$4 sm:$0xff]   ;;  %v7553_v61 = vpop.f32.mrf.mxu0 }
 0x3fb   : > { %v2881_v37 = vpop.permute.xlu1 %2880  ;;  %v7593_v20 = vpop.f32.mrf.mxu1 }
 0x3fc   : > { %v2919_v44 = vsel %vm2898_vm13, %v2879_v28, %v2881_v37  ;;  %v7486_v55 = vpop.permute.xlu0 %3274 }
 0x3fd   : > { %3701 = vrot.lane.b32.xlu1 %v6857_v18, %s5643_s8  ;;  %3041 = vmatpush1.bf16.msra.mxu1 %v2919_v44  ;;  %v601_v44 = vpop.f32.mrf.mxu1 }
 0x3fe   : > { %3703 = vrot.lane.b32.xlu0 %v6862_v0, %s5643_s8  ;;  %3042 = vmatprep.subr.bf16.mxu1 %v9221_v5  ;;  %v3225_v44 = vsel %vm350_vm5, %v7364_v4, %v7345_v14 }
 0x3ff   : > { %v7493_v33 = vpop.permute.xlu1 %3276  ;;  %2579 = vmatmul.mubr.bf16.gmra.mxu1 %v5520_v29 }
 0x400   : > { %v7495_v26 = vpop.permute.xlu0 %3278  ;;  %5308 = vmatprep.mubr.msk.bf16.mxu1 %vm476_vm8, %v5523_v57  ;;  %v7556_v57 = vpop.f32.mrf.mxu0 }
 0x401   : > { %3697 = vrot.lane.b32.xlu1 %v6815_v42, %s5643_s8 }
 0x402   : > { %3378 = vrot.lane.b32.xlu0 %v3259_v43, %s5657_s29  ;;  %v7607_v43 = vld [vmem:[%s5717_s30 + $0x10] ss:$20 sps:$4 sm:$0xff]  }
 0x403   : > { %v7504_v17 = vpop.permute.xlu1 %3272 }
 0x404   : > { %v2861_v8 = vpop.permute.xlu0 %2860 }
 0x405   : > { %3380 = vrot.lane.b32.xlu1 %v3260_v53, %s5657_s29 }
 0x406   : > { %3376 = vrot.lane.b32.xlu0 %v3258_v16, %s5657_s29  ;;  %v7613_v16 = vpop.f32.mrf.mxu1 }
 0x407   : > { %v2863_v42 = vpop.permute.xlu1 %2862 }
 0x408   : > { %v2859_v3 = vpop.permute.xlu0 %2858  ;;  %v2912_v1 = vsel %vm2898_vm13, %v2861_v8, %v2863_v42 }
 0x409   : > { %v2911_v45 = vsel %vm2898_vm13, %v2859_v3, %v2861_v8  ;;  %3390 = vrot.lane.b32.xlu1 %v7222_v51, %s5657_s29  ;;  %2971 = vmatprep.subr.bf16.mxu0 %v2912_v1  ;;  %v3247_v51 = vsel %vm380_vm2, %v7296_v56, %v7277_v35  ;;  %v606_v1 = vpop.f32.mrf.mxu1 }
 0x40a   : > { %3370 = vrot.lane.b32.xlu0 %v3248_v36, %s5657_s29  ;;  %2972 = vmatpush1.bf16.msra.mxu0 %v2911_v45 }
 0x40b   : > { %v2873_v38 = vpop.permute.xlu1 %2872 }
 0x40c   : > { %v2916_v34 = vsel %vm2898_vm13, %v2871_v46, %v2873_v38  ;;  %v7523_v48 = vpop.permute.xlu0 %3765  ;;  %v3236_v46 = vsel %vm365_vm3, %v7330_v7, %v7311_v49  ;;  %v7602_v7 = vld [vmem:[%s5717_s30 + $0xc] ss:$20 sps:$4 sm:$0xff]   ;;  %v7626_v38 = vpop.f32.mrf.mxu1 }
 0x40d   : > { %3372 = vrot.lane.b32.xlu1 %v3249_v21, %s5657_s29  ;;  %3043 = vmatpush1.bf16.msra.mxu1 %v2916_v34 }
 0x40e   : > { %3368 = vrot.lane.b32.xlu0 %v3247_v51, %s5657_s29  ;;  %3044 = vmatprep.subr.bf16.mxu1 %v9221_v5 }
 0x40f   : > { %v7534_v12 = vpop.permute.xlu1 %3767 }
 0x410   : > { %v7536_v13 = vpop.permute.xlu0 %3769 }
 0x411   : > { %3382 = vrot.lane.b32.xlu1 %v7256_v58, %s5657_s29 }
 0x412   : > { %3776 = vrot.lane.b32.xlu0 %v7541_v30, %s5651_s15 }
 0x413   : > { %v7545_v35 = vpop.permute.xlu1 %3763 }
 0x414   : > { %v2853_v56 = vpop.permute.xlu0 %2852 }
 0x415   : > { %3778 = vrot.lane.b32.xlu1 %v6857_v18, %s5651_s15  ;;  %v3237_v18 = vsel %vm365_vm3, %v7311_v49, %v7322_v50 }
 0x416   : > { %3780 = vrot.lane.b32.xlu0 %v6862_v0, %s5651_s15  ;;  %v7568_v0 = vpop.f32.mrf.mxu0 }
 0x417   : > { %v2855_v29 = vpop.permute.xlu1 %2854  ;;  %9245 = vst [vmem:[#allocation3_spill] sm:$0xff] %v7568_v0 }
 0x418   : > { %v2851_v58 = vpop.permute.xlu0 %2850  ;;  %v2909_v28 = vsel %vm2898_vm13, %v2853_v56, %v2855_v29  ;;  %v7578_v19 = vpop.f32.mrf.mxu0 }
 0x419   : > { %v2908_v25 = vsel %vm2898_vm13, %v2851_v58, %v2853_v56  ;;  %3774 = vrot.lane.b32.xlu1 %v7560_v24, %s5651_s15  ;;  %2973 = vmatprep.subr.bf16.mxu0 %v2909_v28  ;;  %v3226_v58 = vsel %vm350_vm5, %v7345_v14, %v7356_v63  ;;  %v609_v28 = vpop.f32.mrf.mxu1 }
 0x41a   : > { %3362 = vrot.lane.b32.xlu0 %v3237_v18, %s5657_s29  ;;  %2974 = vmatpush1.bf16.msra.mxu0 %v2908_v25  ;;  %v7589_v11 = vpop.f32.mrf.mxu0 }
 0x41b   : > { %v2865_v32 = vpop.permute.xlu1 %2864 }
 0x41c   : > { %v2913_v10 = vsel %vm2898_vm13, %v2863_v42, %v2865_v32  ;;  %v7573_v40 = vpop.permute.xlu0 %3754  ;;  %v7597_v49 = vpop.f32.mrf.mxu0 }
 0x41d   : > { %3364 = vrot.lane.b32.xlu1 %v3238_v22, %s5657_s29  ;;  %3045 = vmatpush1.bf16.msra.mxu1 %v2913_v10  ;;  %v7640_v32 = vpop.f32.mrf.mxu1 }
 0x41e   : > { %3360 = vrot.lane.b32.xlu0 %v3236_v46, %s5657_s29  ;;  %3046 = vmatprep.subr.bf16.mxu1 %v9221_v5  ;;  %v7609_v8 = vpop.f32.mrf.mxu0  ;;  %9250 = vst [vmem:[#allocation8_spill] sm:$0xff] %v7640_v32  ;;  %v3227_v46 = vsel %vm350_vm5, %v7356_v63, %v7358_v54 }
 0x41f   : > { %v7591_v50 = vpop.permute.xlu1 %3756  ;;  %9247 = vst [vmem:[#allocation5_spill] sm:$0xff] %v7609_v8 }
 0x420   : > { %v7595_v37 = vpop.permute.xlu0 %3758  ;;  %v7615_v3 = vpop.f32.mrf.mxu0 }
 0x421   : > { %9246 = vst [vmem:[#allocation4_spill] sm:$0xff] %v7595_v37  ;;  %3374 = vrot.lane.b32.xlu1 %v7290_v31, %s5657_s29  ;;  %v7620_v31 = vld [vmem:[%s5717_s30 + $0x4] ss:$20 sps:$4 sm:$0xff]  }
 0x422   : > { %4267 = vrot.lane.b32.xlu0 %v7586_v27, %s5650_s14  ;;  %v7624_v45 = vpop.f32.mrf.mxu0 }
 0x423   : > { %v7611_v53 = vpop.permute.xlu1 %3752 }
 0x424   : > { %9248 = vst [vmem:[#allocation6_spill] sm:$0xff] %v7611_v53  ;;  %v2845_v42 = vpop.permute.xlu0 %2844  ;;  %v7629_v51 = vpop.f32.mrf.mxu0 }
 0x425   : > { %4269 = vrot.lane.b32.xlu1 %v7602_v7, %s5650_s14 }
 0x426   : > { %4271 = vrot.lane.b32.xlu0 %v7607_v43, %s5650_s14  ;;  %v7638_v25 = vpop.f32.mrf.mxu0 }
 0x427   : > { %v2847_v36 = vpop.permute.xlu1 %2846  ;;  %9249 = vst [vmem:[#allocation7_spill] sm:$0xff] %v7638_v25 }
 0x428   : > { %v2843_v34 = vpop.permute.xlu0 %2842  ;;  %v2906_v21 = vsel %vm2898_vm13, %v2845_v42, %v2847_v36  ;;  %v7648_v41 = vpop.f32.mrf.mxu0 }
 0x429   : > { %v2905_v56 = vsel %vm2898_vm13, %v2843_v34, %v2845_v42  ;;  %4265 = vrot.lane.b32.xlu1 %v7620_v31, %s5650_s14  ;;  %2975 = vmatprep.subr.bf16.mxu0 %v2906_v21  ;;  %9252 = vst [vmem:[#allocation10_spill] sm:$0xff] %v7648_v41  ;;  %v614_v42 = vpop.f32.mrf.mxu1 }
 0x42a   : > { %3354 = vrot.lane.b32.xlu0 %v3226_v58, %s5657_s29  ;;  %2976 = vmatpush1.bf16.msra.mxu0 %v2905_v56 }
 0x42b   : > { %v2857_v18 = vpop.permute.xlu1 %2856  ;;  %v7660_v34 = vpop.f32.mrf.mxu1 }
 0x42c   : > { %v2910_v10 = vsel %vm2898_vm13, %v2855_v29, %v2857_v18  ;;  %v7643_v22 = vpop.permute.xlu0 %3743  ;;  %v7656_v29 = vpop.f32.mrf.mxu0  ;;  %9255 = vst [vmem:[#allocation13_spill] sm:$0xff] %v7660_v34 }
 0x42d   : > { %9251 = vst [vmem:[#allocation9_spill] sm:$0xff] %v7643_v22  ;;  %3356 = vrot.lane.b32.xlu1 %v3227_v46, %s5657_s29  ;;  %3047 = vmatpush1.bf16.msra.mxu1 %v2910_v10  ;;  %9253 = vst [vmem:[#allocation11_spill] sm:$0xff] %v7656_v29  ;;  %v617_v14 = vpop.f32.mrf.mxu1 }
 0x42e   : > { %3352 = vrot.lane.b32.xlu0 %v3225_v44, %s5657_s29  ;;  %3048 = vmatprep.subr.bf16.mxu1 %v9221_v5  ;;  %v7664_v21 = vpop.f32.mrf.mxu0 }
 0x42f   : > { %v7658_v1 = vpop.permute.xlu1 %3745  ;;  %9257 = vst [vmem:[#allocation15_spill] sm:$0xff] %v7664_v21  ;;  %v7674_v58 = vpop.f32.mrf.mxu1 }
 0x430   : > { %9254 = vst [vmem:[#allocation12_spill] sm:$0xff] %v7658_v1  ;;  %v7662_v63 = vpop.permute.xlu0 %3747  ;;  %v7670_v4 = vpop.f32.mrf.mxu0  ;;  %9260 = vst [vmem:[#allocation18_spill] sm:$0xff] %v7674_v58 }
 0x431   : > { %9256 = vst [vmem:[#allocation14_spill] sm:$0xff] %v7662_v63  ;;  %3366 = vrot.lane.b32.xlu1 %v7324_v62, %s5657_s29  ;;  %9258 = vst [vmem:[#allocation16_spill] sm:$0xff] %v7670_v4  ;;  %v622_v10 = vpop.f32.mrf.mxu1 }
 0x432   : > { %4256 = vrot.lane.b32.xlu0 %v7586_v27, %s5648_s13  ;;  %v7676_v18 = vpop.f32.mrf.mxu0  ;;  %v3215_v10 = vsel %vm335_vm6, %v7378_v47, %v7390_v6 }
 0x433   : > { %v7672_v56 = vpop.permute.xlu1 %3741  ;;  %v7684_v44 = vpop.f32.mrf.mxu1 }
 0x434   : > { %9259 = vst [vmem:[#allocation17_spill] sm:$0xff] %v7672_v56  ;;  %v2837_v28 = vpop.permute.xlu0 %2836  ;;  %v7682_v62 = vpop.f32.mrf.mxu0  ;;  %9261 = vst [vmem:[#allocation19_spill] sm:$0xff] %v7684_v44 }
 0x435   : > { %4258 = vrot.lane.b32.xlu1 %v7602_v7, %s5648_s13  ;;  %v625_v25 = vpop.f32.mrf.mxu1 }
 0x436   : > { %4260 = vrot.lane.b32.xlu0 %v7607_v43, %s5648_s13  ;;  %v7687_v5 = vpop.f32.mrf.mxu0  ;;  %v3214_v25 = vsel %vm335_vm6, %v7399_v39, %v7378_v47 }
 0x437   : > { %v2839_v46 = vpop.permute.xlu1 %2838  ;;  %v7698_v44 = vpop.f32.mrf.mxu1 }
 0x438   : > { %v2835_v42 = vpop.permute.xlu0 %2834  ;;  %v2903_v14 = vsel %vm2898_vm13, %v2837_v28, %v2839_v46  ;;  %v7696_v8 = vpop.f32.mrf.mxu0 }
 0x439   : > { %v2902_v4 = vsel %vm2898_vm13, %v2835_v42, %v2837_v28  ;;  %4254 = vrot.lane.b32.xlu1 %v7620_v31, %s5648_s13  ;;  %2977 = vmatprep.subr.bf16.mxu0 %v2903_v14  ;;  %9262 = vst [vmem:[#allocation20_spill] sm:$0xff] %v7696_v8  ;;  %v3216_v42 = vsel %vm335_vm6, %v7390_v6, %v7392_v9  ;;  %v9264_v14 = vmov 0  }
 0x43a   : > { %3346 = vrot.lane.b32.xlu0 %v3215_v10, %s5657_s29  ;;  %2978 = vmatpush1.bf16.msra.mxu0 %v2902_v4  ;;  %v7706_v56 = vpop.f32.mrf.mxu0  ;;  %v1052_v4 = vpop.f32.mrf.mxu1 }
 0x43b   : > { %v2849_v0 = vpop.permute.xlu1 %2848 }
 0x43c   : > { %v2907_v58 = vsel %vm2898_vm13, %v2847_v36, %v2849_v0  ;;  %v7701_v28 = vpop.permute.xlu0 %3732  ;;  %v7714_v0 = vpop.f32.mrf.mxu0 }
 0x43d   : > { %9263 = vst [vmem:[#allocation21_spill] sm:$0xff] %v7701_v28  ;;  %3348 = vrot.lane.b32.xlu1 %v3216_v42, %s5657_s29  ;;  %3049 = vmatpush1.bf16.msra.mxu1 %v2907_v58  ;;  %v7718_v10 = vpop.f32.mrf.mxu1 }
 0x43e   : > { %3344 = vrot.lane.b32.xlu0 %v3214_v25, %s5657_s29  ;;  %3050 = vmatprep.subr.bf16.mxu1 %v9264_v14  ;;  %v7722_v28 = vpop.f32.mrf.mxu0 }
 0x43f   : > { %v7716_v36 = vpop.permute.xlu1 %3734  ;;  %v1055_v47 = vpop.f32.mrf.mxu1 }
 0x440   : > { %9265 = vst [vmem:[#allocation22_spill] sm:$0xff] %v7716_v36  ;;  %v7720_v6 = vpop.permute.xlu0 %3736  ;;  %v7728_v39 = vpop.f32.mrf.mxu0 }
 0x441   : > { %9266 = vst [vmem:[#allocation23_spill] sm:$0xff] %v7720_v6  ;;  %3358 = vrot.lane.b32.xlu1 %v7358_v54, %s5657_s29  ;;  %9267 = vst [vmem:[#allocation24_spill] sm:$0xff] %v7728_v39  ;;  %v7732_v42 = vpop.f32.mrf.mxu1 }
 0x442   : > { %4245 = vrot.lane.b32.xlu0 %v7586_v27, %s5647_s12  ;;  %v7734_v4 = vpop.f32.mrf.mxu0 }
 0x443   : > { %v7730_v58 = vpop.permute.xlu1 %3730  ;;  %v1060_v6 = vpop.f32.mrf.mxu1 }
 0x444   : > { %9268 = vst [vmem:[#allocation25_spill] sm:$0xff] %v7730_v58  ;;  %v2829_v25 = vpop.permute.xlu0 %2828  ;;  %v7740_v54 = vpop.f32.mrf.mxu0  ;;  %v3204_v6 = vsel %vm320_vm4, %v7422_v15, %v7436_v52 }
 0x445   : > { %4247 = vrot.lane.b32.xlu1 %v7602_v7, %s5647_s12  ;;  %v7742_v36 = vpop.f32.mrf.mxu1 }
 0x446   : > { %4249 = vrot.lane.b32.xlu0 %v7607_v43, %s5647_s12  ;;  %v7745_v8 = vpop.f32.mrf.mxu0 }
 0x447   : > { %v2831_v47 = vpop.permute.xlu1 %2830  ;;  %9269 = vst [vmem:[#allocation26_spill] sm:$0xff] %v7745_v8  ;;  %v1063_v21 = vpop.f32.mrf.mxu1 }
 0x448   : > { %v2827_v39 = vpop.permute.xlu0 %2826  ;;  %v2900_v58 = vsel %vm2898_vm13, %v2829_v25, %v2831_v47  ;;  %v7754_v22 = vpop.f32.mrf.mxu0  ;;  %v3203_v21 = vsel %vm320_vm4, %v7446_v59, %v7422_v15 }
 0x449   : > { %v2899_v63 = vsel %vm2898_vm13, %v2827_v39, %v2829_v25  ;;  %4243 = vrot.lane.b32.xlu1 %v7620_v31, %s5647_s12  ;;  %2979 = vmatprep.subr.bf16.mxu0 %v2900_v58  ;;  %9270 = vst [vmem:[#allocation27_spill] sm:$0xff] %v7754_v22  ;;  %v7756_v34 = vpop.f32.mrf.mxu1  ;;  %v3205_v25 = vsel %vm320_vm4, %v7436_v52, %v7439_v23 }
 0x44a   : > { %3338 = vrot.lane.b32.xlu0 %v3204_v6, %s5657_s29  ;;  %2980 = vmatpush1.bf16.msra.mxu0 %v2899_v63  ;;  %9271 = vst [vmem:[#allocation28_spill] sm:$0xff] %v7756_v34  ;;  %v7764_v41 = vpop.f32.mrf.mxu0 }
 0x44b   : > { %v2841_v1 = vpop.permute.xlu1 %2840  ;;  %9273 = vst [vmem:[#allocation30_spill] sm:$0xff] %v7764_v41  ;;  %v1068_v63 = vpop.f32.mrf.mxu1 }
 0x44c   : > { %v2904_v29 = vsel %vm2898_vm13, %v2839_v46, %v2841_v1  ;;  %v7759_v39 = vpop.permute.xlu0 %3721  ;;  %v7772_v1 = vpop.f32.mrf.mxu0 }
 0x44d   : > { %9272 = vst [vmem:[#allocation29_spill] sm:$0xff] %v7759_v39  ;;  %3051 = vmatpush1.bf16.msra.mxu1 %v2904_v29  ;;  %3340 = vrot.lane.b32.xlu1 %v3205_v25, %s5657_s29  ;;  %9274 = vst [vmem:[#allocation31_spill] sm:$0xff] %v7772_v1  ;;  %v7776_v58 = vpop.f32.mrf.mxu1 }
 0x44e   : > { %3336 = vrot.lane.b32.xlu0 %v3203_v21, %s5657_s29  ;;  %3052 = vmatprep.subr.bf16.mxu1 %v9264_v14  ;;  %9276 = vst [vmem:[#allocation33_spill] sm:$0xff] %v7776_v58  ;;  %v7780_v6 = vpop.f32.mrf.mxu0 }
 0x44f   : > { %v7774_v46 = vpop.permute.xlu1 %3723  ;;  %9278 = vst [vmem:[#allocation35_spill] sm:$0xff] %v7780_v6  ;;  %v1071_v15 = vpop.f32.mrf.mxu1 }
 0x450   : > { %9275 = vst [vmem:[#allocation32_spill] sm:$0xff] %v7774_v46  ;;  %v7778_v52 = vpop.permute.xlu0 %3725  ;;  %v7786_v59 = vpop.f32.mrf.mxu0 }
 0x451   : > { %9277 = vst [vmem:[#allocation34_spill] sm:$0xff] %v7778_v52  ;;  %3350 = vrot.lane.b32.xlu1 %v7392_v9, %s5657_s29  ;;  %9279 = vst [vmem:[#allocation36_spill] sm:$0xff] %v7786_v59  ;;  %v7790_v25 = vpop.f32.mrf.mxu1 }
 0x452   : > { %4234 = vrot.lane.b32.xlu0 %v7586_v27, %s5646_s11  ;;  %9281 = vst [vmem:[#allocation38_spill] sm:$0xff] %v7790_v25  ;;  %v7792_v63 = vpop.f32.mrf.mxu0 }
 0x453   : > { %v7788_v29 = vpop.permute.xlu1 %3719  ;;  %v1076_v52 = vpop.f32.mrf.mxu1 }
 0x454   : > { %9280 = vst [vmem:[#allocation37_spill] sm:$0xff] %v7788_v29  ;;  %v2893_v21 = vpop.permute.xlu0 %2892  ;;  %v7798_v9 = vpop.f32.mrf.mxu0 }
 0x455   : > { %4236 = vrot.lane.b32.xlu1 %v7602_v7, %s5646_s11  ;;  %v7800_v22 = vpop.f32.mrf.mxu1 }
 0x456   : > { %4238 = vrot.lane.b32.xlu0 %v7607_v43, %s5646_s11  ;;  %9282 = vst [vmem:[#allocation39_spill] sm:$0xff] %v7800_v22  ;;  %v7803_v39 = vpop.f32.mrf.mxu0 }
 0x457   : > { %v2895_v15 = vpop.permute.xlu1 %2894  ;;  %v1079_v52 = vpop.f32.mrf.mxu1 }
 0x458   : > { %v2833_v59 = vpop.permute.xlu0 %2832  ;;  %v2924_v29 = vsel %vm2898_vm13, %v2893_v21, %v2895_v15  ;;  %v7810_v25 = vpop.f32.mrf.mxu0 }
 0x459   : > { %v2901_v46 = vsel %vm2898_vm13, %v2831_v47, %v2833_v59  ;;  %4232 = vrot.lane.b32.xlu1 %v7620_v31, %s5646_s11  ;;  %2995 = vmatprep.subr.bf16.mxu0 %v2924_v29  ;;  %9283 = vst [vmem:[#allocation40_spill] sm:$0xff] %v7810_v25  ;;  %v7813_v6 = vpop.f32.mrf.mxu1  ;;  %v5521_v47 = vld [vmem:[%s9214_s1 + $0x140] ss:$8 sps:$4 sm:$0xff]  }
 0x45a   : > { %3330 = vrot.lane.b32.xlu0 %v7541_v30, %s5657_s29  ;;  %3053 = vmatpush1.bf16.msra.mxu1 %v2901_v46  ;;  %v7821_v59 = vpop.f32.mrf.mxu0  ;;  %v7824_v29 = vld [vmem:[%s5717_s30 + $0xc] ss:$20 sps:$4 sm:$0xff]   ;;  %v5524_v30 = vld [vmem:[%s9214_s1 + $0x154] ss:$8 sps:$4 sm:$0xff]  }
 0x45b   : > { %v2891_v22 = vpop.permute.xlu1 %2890  ;;  %3068 = vmatprep.subr.bf16.mxu1 %v9264_v14  ;;  %9285 = vst [vmem:[#allocation42_spill] sm:$0xff] %v7824_v29  ;;  %v1554_v46 = vpop.f32.mrf.mxu1 }
 0x45c   : > { %v2923_v58 = vsel %vm2898_vm13, %v2891_v22, %v2893_v21  ;;  %v7816_v1 = vpop.permute.xlu0 %3710  ;;  %v7833_v22 = vpop.f32.mrf.mxu0 }
 0x45d   : > { %9284 = vst [vmem:[#allocation41_spill] sm:$0xff] %v7816_v1  ;;  %3332 = vrot.lane.b32.xlu1 %v7824_v29, %s5657_s29  ;;  %2996 = vmatpush2.bf16.msra.mxu0 %v2923_v58  ;;  %v7837_v52 = vpop.f32.mrf.mxu1 }
 0x45e   : > { %3328 = vrot.lane.b32.xlu0 %v7560_v24, %s5657_s29  ;;  %v7841_v25 = vpop.f32.mrf.mxu0 }
 0x45f   : > { %v7835_v21 = vpop.permute.xlu1 %3712  ;;  %v1557_v58 = vpop.f32.mrf.mxu1 }
 0x460   : > { %9286 = vst [vmem:[#allocation43_spill] sm:$0xff] %v7835_v21  ;;  %v7839_v1 = vpop.permute.xlu0 %3714  ;;  %2998 = vmatmul.mubr.bf16.vlgmr.msra.gmra.mxu0 %v5521_v47  ;;  %v7848_v24 = vpop.f32.mrf.mxu0 }
 0x461   : > { %9287 = vst [vmem:[#allocation44_spill] sm:$0xff] %v7839_v1  ;;  %3342 = vrot.lane.b32.xlu1 %v7439_v23, %s5657_s29  ;;  %5305 = vmatprep.mubr.msk.bf16.mxu0 %vm476_vm8, %v5524_v30  ;;  %9288 = vst [vmem:[#allocation45_spill] sm:$0xff] %v7848_v24  ;;  %v7852_v29 = vpop.f32.mrf.mxu1  ;;  %v5526_v1 = vld [vmem:[%s9214_s1 + $0x150] ss:$8 sps:$4 sm:$0xff]   ;;  %v5527_v24 = vld [vmem:[%s9214_s1 + $0x164] ss:$8 sps:$4 sm:$0xff]  }
 0x462   : > { %4223 = vrot.lane.b32.xlu0 %v7586_v27, %s5645_s10  ;;  %v7857_v41 = vpop.f32.mrf.mxu0 }
 0x463   : > { %v7850_v46 = vpop.permute.xlu1 %3708  ;;  %9290 = vst [vmem:[#allocation47_spill] sm:$0xff] %v7857_v41  ;;  %v1562_v23 = vpop.f32.mrf.mxu1 }
 0x464   : > { %9289 = vst [vmem:[#allocation46_spill] sm:$0xff] %v7850_v46  ;;  %v3387_v21 = vpop.permute.xlu0 %3386  ;;  %v7863_v58 = vpop.f32.mrf.mxu0 }
 0x465   : > { %4225 = vrot.lane.b32.xlu1 %v7602_v7, %s5645_s10  ;;  %9291 = vst [vmem:[#allocation48_spill] sm:$0xff] %v7863_v58  ;;  %v7870_v34 = vpop.f32.mrf.mxu1  ;;  %v3281_v58 = vsel %vm425_vm7, %v7486_v55, %v7493_v33 }
 0x466   : > { %4227 = vrot.lane.b32.xlu0 %v7607_v43, %s5645_s10  ;;  %9292 = vst [vmem:[#allocation49_spill] sm:$0xff] %v7870_v34  ;;  %v7874_v37 = vpop.f32.mrf.mxu0 }
 0x467   : > { %v7865_v46 = vpop.permute.xlu1 %3388  ;;  %9293 = vst [vmem:[#allocation50_spill] sm:$0xff] %v7874_v37  ;;  %v1565_v41 = vpop.f32.mrf.mxu1 }
 0x468   : > { %v2897_v32 = vpop.permute.xlu0 %2896  ;;  %v3423_v53 = vsel %vm3400_vm14, %v3387_v21, %v7865_v46  ;;  %3008 = vmatmul.mubr.bf16.gmra.mxu0 %v5526_v1  ;;  %v7883_v34 = vpop.f32.mrf.mxu0  ;;  %v7898_v41 = vld [vmem:[%s9214_s1 + $0x160] ss:$8 sps:$4 sm:$0xff]  }
 0x469   : > { %v2925_v23 = vsel %vm2898_vm13, %v2895_v15, %v2897_v32  ;;  %4221 = vrot.lane.b32.xlu1 %v7620_v31, %s5645_s10  ;;  %3467 = vmatprep.subr.bf16.mxu0 %v3423_v53  ;;  %9294 = vst [vmem:[#allocation51_spill] sm:$0xff] %v7883_v34  ;;  %v7887_v32 = vpop.f32.mrf.mxu1  ;;  %v3282_v53 = vsel %vm425_vm7, %v7493_v33, %v7495_v26 }
 0x46a   : > { %3394 = vrot.lane.b32.xlu0 %v3281_v58, %s5657_s29  ;;  %3069 = vmatpush2.bf16.msra.mxu1 %v2925_v23  ;;  %v7900_v58 = vpop.f32.mrf.mxu0  ;;  %v7909_v23 = vld [vmem:[%s5717_s30 + $0x10] ss:$20 sps:$4 sm:$0xff]  }
 0x46b   : > { %v3385_v8 = vpop.permute.xlu1 %3384  ;;  %3540 = vmatprep.subr.bf16.mxu1 %v9264_v14  ;;  %5306 = vmatprep.mubr.msk.bf16.mxu0 %vm476_vm8, %v5527_v24  ;;  %9296 = vst [vmem:[#allocation53_spill] sm:$0xff] %v7909_v23 }
 0x46c   : > { %v3422_v15 = vsel %vm3400_vm14, %v3385_v8, %v3387_v21  ;;  %v7890_v37 = vpop.permute.xlu0 %3699  ;;  %v7906_v8 = vld [vmem:[%s9214_s1 + $0x174] ss:$8 sps:$4 sm:$0xff]   ;;  %v1570_v21 = vpop.f32.mrf.mxu1 }
 0x46d   : > { %9295 = vst [vmem:[#allocation52_spill] sm:$0xff] %v7890_v37  ;;  %3396 = vrot.lane.b32.xlu1 %v3282_v53, %s5657_s29  ;;  %3468 = vmatpush1.bf16.msra.mxu0 %v3422_v15  ;;  %v7913_v33 = vpop.f32.mrf.mxu0  ;;  %v3280_v15 = vsel %vm425_vm7, %v7504_v17, %v7486_v55 }
 0x46e   : > { %3334 = vrot.lane.b32.xlu0 %v7909_v23, %s5657_s29  ;;  %3071 = vmatmul.mubr.bf16.vlgmr.msra.gmra.mxu1 %v5521_v47  ;;  %v7918_v53 = vpop.f32.mrf.mxu1 }
 0x46f   : > { %v7915_v37 = vpop.permute.xlu1 %3701  ;;  %5309 = vmatprep.mubr.msk.bf16.mxu1 %vm476_vm8, %v5524_v30  ;;  %v7926_v21 = vpop.f32.mrf.mxu0 }
 0x470   : > { %9297 = vst [vmem:[#allocation54_spill] sm:$0xff] %v7915_v37  ;;  %v7923_v34 = vpop.permute.xlu0 %3703  ;;  %3018 = vmatmul.mubr.bf16.gmra.mxu0 %v7898_v41  ;;  %9299 = vst [vmem:[#allocation56_spill] sm:$0xff] %v7926_v21  ;;  %v1573_v47 = vpop.f32.mrf.mxu1 }
 0x471   : > { %9298 = vst [vmem:[#allocation55_spill] sm:$0xff] %v7923_v34  ;;  %3392 = vrot.lane.b32.xlu1 %v3280_v15, %s5657_s29  ;;  %5307 = vmatprep.mubr.msk.bf16.mxu0 %vm476_vm8, %v7906_v8  ;;  %v7933_v30 = vpop.f32.mrf.mxu0  ;;  %v7942_v34 = vld [vmem:[%s9214_s1 + $0x170] ss:$8 sps:$4 sm:$0xff]  }
 0x472   : > { %4212 = vrot.lane.b32.xlu0 %v7586_v27, %s5644_s9  ;;  %9300 = vst [vmem:[#allocation57_spill] sm:$0xff] %v7933_v30  ;;  %v7937_v55 = vpop.f32.mrf.mxu1 }
 0x473   : > { %v7935_v23 = vpop.permute.xlu1 %3697  ;;  %9302 = vst [vmem:[#allocation59_spill] sm:$0xff] %v7937_v55  ;;  %v7944_v15 = vpop.f32.mrf.mxu0 }
 0x474   : > { %9301 = vst [vmem:[#allocation58_spill] sm:$0xff] %v7935_v23  ;;  %v3379_v17 = vpop.permute.xlu0 %3378  ;;  %9303 = vst [vmem:[#allocation60_spill] sm:$0xff] %v7944_v15  ;;  %v1578_v47 = vpop.f32.mrf.mxu1  ;;  %v1105_v23 = vadd.f32 %v7676_v18, %v7547_v2  ;;  %v7958_v15 = vld [vmem:[%s9214_s1 + $0x184] ss:$8 sps:$4 sm:$0xff]   ;;  %v3772_v18 = vsel %vm410_vm0, %v7523_v48, %v7534_v12 }
 0x475   : > { %4214 = vrot.lane.b32.xlu1 %v7602_v7, %s5644_s9  ;;  %v7952_v37 = vpop.f32.mrf.mxu0 }
 0x476   : > { %4216 = vrot.lane.b32.xlu0 %v7607_v43, %s5644_s9  ;;  %3079 = vmatmul.mubr.bf16.gmra.mxu1 %v5526_v1  ;;  %9304 = vst [vmem:[#allocation61_spill] sm:$0xff] %v7952_v37  ;;  %v7960_v55 = vpop.f32.mrf.mxu1 }
 0x477   : > { %v3381_v30 = vpop.permute.xlu1 %3380  ;;  %5310 = vmatprep.mubr.msk.bf16.mxu1 %vm476_vm8, %v5527_v24  ;;  %9305 = vst [vmem:[#allocation62_spill] sm:$0xff] %v7960_v55  ;;  %v7964_v1 = vpop.f32.mrf.mxu0  ;;  %v1106_v24 = vadd.f32 %v7682_v62, %v7553_v61  ;;  %v3773_v62 = vsel %vm410_vm0, %v7534_v12, %v7536_v13  ;;  %v1111_v12 = vadd.f32 %v7706_v56, %v7578_v19 }
 0x478   : > { %v3377_v47 = vpop.permute.xlu0 %3376  ;;  %v3420_v21 = vsel %vm3400_vm14, %v3379_v17, %v3381_v30  ;;  %3028 = vmatmul.mubr.bf16.gmra.mxu0 %v7942_v34  ;;  %9306 = vst [vmem:[#allocation63_spill] sm:$0xff] %v7964_v1  ;;  %v1581_v37 = vpop.f32.mrf.mxu1  ;;  %v1108_v1 = vadd.f32 %v7687_v5, %v7556_v57  ;;  %v1107_v57 = vadd.f32 %v7698_v44, %v7570_v60 }
 0x479   : > { %v3419_v2 = vsel %vm3400_vm14, %v3377_v47, %v3379_v17  ;;  %4210 = vrot.lane.b32.xlu1 %v7620_v31, %s5644_s9  ;;  %3469 = vmatprep.subr.bf16.mxu0 %v3420_v21  ;;  %v7978_v17 = vadd.f32 %v7792_v63, %v1105_v23  ;;  %v7980_v47 = vpop.f32.mrf.mxu0  ;;  %v7997_v63 = vadd.f32 %v7798_v9, %v1106_v24 }
 0x47a   : > { %3888 = vrot.lane.b32.xlu0 %v3772_v18, %s5658_s28  ;;  %3470 = vmatpush1.bf16.msra.mxu0 %v3419_v2  ;;  %v7984_v21 = vpop.f32.mrf.mxu1  ;;  %v1112_v19 = vadd.f32 %v7714_v0, %v7589_v11  ;;  %v1114_v11 = vadd.f32 %v7722_v28, %v7597_v49  ;;  %v8037_v0 = vadd.f32 %v7821_v59, %v1111_v12 }
 0x47b   : > { %v3391_v55 = vpop.permute.xlu1 %3390  ;;  %5332 = vmatprep.mubr.msk.bf16.mxu0 %vm476_vm8, %v7958_v15  ;;  %v7991_v5 = vpop.f32.mrf.mxu0  ;;  %v1113_v49 = vadd.f32 %v7732_v42, %v7613_v16 }
 0x47c   : > { %v3424_v61 = vsel %vm3400_vm14, %v7865_v46, %v3391_v55  ;;  %v3371_v37 = vpop.permute.xlu0 %3370  ;;  %v2056_v23 = vpop.f32.mrf.mxu1  ;;  %v8005_v46 = vadd.f32 %v7803_v39, %v1108_v1  ;;  %v8053_v28 = vadd.f32 %v7833_v22, %v1112_v19  ;;  %v9313_v19 = vld [vmem:[#allocation8_spill] sm:$0xff] }
 0x47d   : > { %3890 = vrot.lane.b32.xlu1 %v3773_v62, %s5658_s28  ;;  %3541 = vmatpush1.bf16.msra.mxu1 %v3424_v61  ;;  %v8007_v55 = vpop.f32.mrf.mxu0  ;;  %v8064_v61 = vadd.f32 %v7841_v25, %v1114_v11  ;;  %v8089_v25 = vadd.f32 %v7852_v29, %v1113_v49  ;;  %v9309_v23 = vld [vmem:[#allocation47_spill] sm:$0xff] }
 0x47e   : > { %3398 = vrot.lane.b32.xlu0 %v7495_v26, %s5657_s29  ;;  %3542 = vmatprep.subr.bf16.mxu1 %v9264_v14  ;;  %v8012_v60 = vpop.f32.mrf.mxu1  ;;  %v3771_v26 = vsel %vm410_vm0, %v7545_v35, %v7523_v48  ;;  %v1110_v48 = vadd.f32 %v7718_v10, %v7593_v20  ;;  %v8030_v35 = vadd.f32 %v7813_v6, %v1107_v57 }
 0x47f   : > { %v8009_v2 = vpop.permute.xlu1 %3372  ;;  %3087 = vmatmul.mubr.bf16.gmra.mxu1 %v7898_v41  ;;  %v8023_v56 = vpop.f32.mrf.mxu0 }
 0x480   : > { %v3369_v44 = vpop.permute.xlu0 %3368  ;;  %v3417_v9 = vsel %vm3400_vm14, %v3371_v37, %v8009_v2  ;;  %5311 = vmatprep.mubr.msk.bf16.mxu1 %vm476_vm8, %v7906_v8  ;;  %v2059_v41 = vpop.f32.mrf.mxu1  ;;  %v8056_v59 = vadd.f32 %v7837_v52, %v1110_v48 }
 0x481   : > { %v3416_v39 = vsel %vm3400_vm14, %v3369_v44, %v3371_v37  ;;  %3886 = vrot.lane.b32.xlu1 %v3771_v26, %s5658_s28  ;;  %3471 = vmatprep.subr.bf16.mxu0 %v3417_v9  ;;  %v8039_v8 = vpop.f32.mrf.mxu0  ;;  %v9312_v9 = vld [vmem:[#allocation6_spill] sm:$0xff]  ;;  %v9315_v41 = vld [vmem:[#allocation48_spill] sm:$0xff] }
 0x482   : > { %4201 = vrot.lane.b32.xlu0 %v7586_v27, %s5643_s8  ;;  %3472 = vmatpush1.bf16.msra.mxu0 %v3416_v39  ;;  %v8041_v18 = vpop.f32.mrf.mxu1  ;;  %v9314_v39 = vld [vmem:[#allocation28_spill] sm:$0xff] }
 0x483   : > { %v3383_v1 = vpop.permute.xlu1 %3382  ;;  %v8046_v6 = vpop.f32.mrf.mxu0  ;;  %v1119_v48 = vadd.f32 %v9314_v39, %v9313_v19  ;;  %v9323_v39 = vld [vmem:[#allocation33_spill] sm:$0xff] }
 0x484   : > { %v3421_v20 = vsel %vm3400_vm14, %v3381_v30, %v3383_v1  ;;  %v8044_v10 = vpop.permute.xlu0 %3776  ;;  %v2064_v24 = vpop.f32.mrf.mxu1  ;;  %v1117_v30 = vadd.f32 %v7734_v4, %v7615_v3  ;;  %v3761_v3 = vsel %vm395_vm1, %v7573_v40, %v7591_v50  ;;  %v1118_v4 = vadd.f32 %v7740_v54, %v7624_v45  ;;  %v9316_v1 = vld [vmem:[#allocation49_spill] sm:$0xff] }
 0x485   : > { %4203 = vrot.lane.b32.xlu1 %v7602_v7, %s5643_s8  ;;  %3543 = vmatpush1.bf16.msra.mxu1 %v3421_v20  ;;  %v8066_v37 = vpop.f32.mrf.mxu0  ;;  %v9318_v24 = vld [vmem:[#allocation30_spill] sm:$0xff] }
 0x486   : > { %4205 = vrot.lane.b32.xlu0 %v7607_v43, %s5643_s8  ;;  %3544 = vmatprep.subr.bf16.mxu1 %v9264_v14  ;;  %v8071_v42 = vpop.f32.mrf.mxu1  ;;  %v8095_v12 = vadd.f32 %v9309_v23, %v1117_v30  ;;  %v8115_v11 = vadd.f32 %v9315_v41, %v1118_v4 }
 0x487   : > { %v8068_v16 = vpop.permute.xlu1 %3778  ;;  %3095 = vmatmul.mubr.bf16.gmra.mxu1 %v7942_v34  ;;  %v8077_v52 = vpop.f32.mrf.mxu0  ;;  %v1116_v34 = vadd.f32 %v7742_v36, %v7626_v38  ;;  %v9311_v38 = vld [vmem:[#allocation4_spill] sm:$0xff] }
 0x488   : > { %v8073_v22 = vpop.permute.xlu0 %3780  ;;  %5336 = vmatprep.mubr.msk.bf16.mxu1 %vm476_vm8, %v7958_v15  ;;  %v2067_v62 = vpop.f32.mrf.mxu1  ;;  %v9308_v15 = vld [vmem:[#allocation26_spill] sm:$0xff]  ;;  %v3762_v36 = vsel %vm395_vm1, %v7591_v50, %v9311_v38 }
 0x489   : > { %9307 = vst [vmem:[#allocation64_spill] sm:$0xff] %v8073_v22  ;;  %4199 = vrot.lane.b32.xlu1 %v7620_v31, %s5643_s8  ;;  %v1120_v57 = vadd.f32 %v9308_v15, %v7629_v51  ;;  %v8097_v26 = vpop.f32.mrf.mxu0  ;;  %v3760_v51 = vsel %vm395_vm1, %v9312_v9, %v7573_v40  ;;  %v8118_v20 = vadd.f32 %v9316_v1, %v1116_v34  ;;  %v9317_v50 = vld [vmem:[#allocation10_spill] sm:$0xff]  ;;  %v9321_v9 = vld [vmem:[#allocation31_spill] sm:$0xff]  ;;  %s5659_s8 = smov 64  }
 0x48a   : > { %3880 = vrot.lane.b32.xlu0 %v3761_v3, %s5658_s28  ;;  %v8101_v45 = vpop.f32.mrf.mxu1  ;;  %v1123_v30 = vadd.f32 %v9318_v24, %v9317_v50  ;;  %v9319_v3 = vld [vmem:[#allocation50_spill] sm:$0xff]  ;;  %v8145_v24 = vadd.f32 %v7887_v32, %v1119_v48  ;;  %v8248_v22 = vadd.f32 %v7991_v5, %v8037_v0  ;;  %v8265_v5 = vadd.f32 %v8012_v60, %v8056_v59  ;;  %v9352_v0 = vld [vmem:[#allocation25_spill] sm:$0xff] }
 0x48b   : > { %v8099_v44 = vpop.permute.xlu1 %3774  ;;  %v8106_v29 = vpop.f32.mrf.mxu0  ;;  %v8124_v62 = vadd.f32 %v9319_v3, %v1120_v57  ;;  %v9324_v57 = vld [vmem:[#allocation12_spill] sm:$0xff]  ;;  %v9329_v48 = vld [vmem:[#allocation14_spill] sm:$0xff] }
 0x48c   : > { %9310 = vst [vmem:[#allocation26_spill] sm:$0xff] %v8099_v44  ;;  %v3363_v54 = vpop.permute.xlu0 %3362  ;;  %v2072_v49 = vpop.f32.mrf.mxu1 }
 0x48d   : > { %3882 = vrot.lane.b32.xlu1 %v3762_v36, %s5658_s28  ;;  %v8126_v40 = vpop.f32.mrf.mxu0  ;;  %v9320_v36 = vld [vmem:[#allocation11_spill] sm:$0xff]  ;;  %v9325_v49 = vld [vmem:[#allocation9_spill] sm:$0xff] }
 0x48e   : > { %3878 = vrot.lane.b32.xlu0 %v3760_v51, %s5658_s28  ;;  %v8130_v23 = vpop.f32.mrf.mxu1  ;;  %v1124_v19 = vadd.f32 %v9321_v9, %v9320_v36  ;;  %v9322_v51 = vld [vmem:[#allocation13_spill] sm:$0xff]  ;;  %v3750_v50 = vsel %vm380_vm2, %v9325_v49, %v9324_v57  ;;  %v9326_v36 = vld [vmem:[#allocation15_spill] sm:$0xff] }
 0x48f   : > { %v8128_v15 = vpop.permute.xlu1 %3364  ;;  %v1122_v41 = vadd.f32 %v9323_v39, %v9322_v51  ;;  %v9327_v9 = vld [vmem:[#allocation35_spill] sm:$0xff] }
 0x490   : > { %v3361_v4 = vpop.permute.xlu0 %3360  ;;  %v3414_v34 = vsel %vm3400_vm14, %v3363_v54, %v8128_v15  ;;  %v2075_v3 = vpop.f32.mrf.mxu1  ;;  %v1126_v51 = vadd.f32 %v9327_v9, %v9326_v36  ;;  %v9332_v36 = vld [vmem:[#allocation38_spill] sm:$0xff] }
 0x491   : > { %v3413_v1 = vsel %vm3400_vm14, %v3361_v4, %v3363_v54  ;;  %3892 = vrot.lane.b32.xlu1 %v7536_v13, %s5658_s28  ;;  %3473 = vmatprep.subr.bf16.mxu0 %v3414_v34  ;;  %v8151_v54 = vadd.f32 %v7900_v58, %v1123_v30  ;;  %v8153_v4 = vpop.f32.mrf.mxu0  ;;  %v8168_v58 = vadd.f32 %v7918_v53, %v1122_v41  ;;  %v9330_v30 = vld [vmem:[#allocation17_spill] sm:$0xff] }
 0x492   : > { %3872 = vrot.lane.b32.xlu0 %v3750_v50, %s5658_s28  ;;  %3474 = vmatpush1.bf16.msra.mxu0 %v3413_v1  ;;  %v8155_v39 = vpop.f32.mrf.mxu1  ;;  %v3751_v1 = vsel %vm380_vm2, %v9324_v57, %v9329_v48  ;;  %v8165_v50 = vadd.f32 %v7913_v33, %v1124_v19  ;;  %v3749_v3 = vsel %vm380_vm2, %v9330_v30, %v9325_v49  ;;  %v9333_v33 = vld [vmem:[#allocation56_spill] sm:$0xff] }
 0x493   : > { %v3375_v13 = vpop.permute.xlu1 %3374  ;;  %v8179_v19 = vadd.f32 %v9333_v33, %v1126_v51  ;;  %v8181_v53 = vpop.f32.mrf.mxu0 }
 0x494   : > { %v3418_v34 = vsel %vm3400_vm14, %v8009_v2, %v3375_v13  ;;  %v8159_v32 = vpop.permute.xlu0 %4267  ;;  %v9331_v2 = vld [vmem:[#allocation18_spill] sm:$0xff]  ;;  %v2080_v13 = vpop.f32.mrf.mxu1 }
 0x495   : > { %9328 = vst [vmem:[#allocation47_spill] sm:$0xff] %v8159_v32  ;;  %3874 = vrot.lane.b32.xlu1 %v3751_v1, %s5658_s28  ;;  %3545 = vmatpush1.bf16.msra.mxu1 %v3418_v34  ;;  %v1125_v9 = vadd.f32 %v9332_v36, %v9331_v2  ;;  %v9336_v34 = vld [vmem:[#allocation19_spill] sm:$0xff]  ;;  %v9339_v2 = vld [vmem:[#allocation20_spill] sm:$0xff] }
 0x496   : > { %3870 = vrot.lane.b32.xlu0 %v3749_v3, %s5658_s28  ;;  %3546 = vmatprep.subr.bf16.mxu1 %v9264_v14  ;;  %v8185_v57 = vpop.f32.mrf.mxu1  ;;  %v9337_v1 = vld [vmem:[#allocation39_spill] sm:$0xff]  ;;  %v9341_v32 = vld [vmem:[#allocation60_spill] sm:$0xff] }
 0x497   : > { %v8183_v41 = vpop.permute.xlu1 %4269  ;;  %v1128_v30 = vadd.f32 %v9337_v1, %v9336_v34  ;;  %v9338_v3 = vld [vmem:[#allocation3_spill] sm:$0xff] }
 0x498   : > { %9334 = vst [vmem:[#allocation4_spill] sm:$0xff] %v8183_v41  ;;  %v8187_v49 = vpop.permute.xlu0 %4271  ;;  %v1109_v36 = vadd.f32 %v9339_v2, %v9338_v3  ;;  %v9340_v13 = vld [vmem:[#allocation59_spill] sm:$0xff]  ;;  %v2083_v33 = vpop.f32.mrf.mxu1  ;;  %v8202_v41 = vadd.f32 %v9341_v32, %v7978_v17  ;;  %v9344_v3 = vld [vmem:[#allocation61_spill] sm:$0xff] }
 0x499   : > { %9335 = vst [vmem:[#allocation6_spill] sm:$0xff] %v8187_v49  ;;  %3884 = vrot.lane.b32.xlu1 %v9311_v38, %s5658_s28  ;;  %v8196_v51 = vadd.f32 %v9340_v13, %v1125_v9  ;;  %v8206_v34 = vpop.f32.mrf.mxu0  ;;  %v9343_v38 = vld [vmem:[#allocation62_spill] sm:$0xff]  ;;  %v8213_v9 = vadd.f32 %v9344_v3, %v7997_v63  ;;  %v9346_v17 = vld [vmem:[#allocation63_spill] sm:$0xff]  ;;  %v9348_v63 = vld [vmem:[#allocation21_spill] sm:$0xff] }
 0x49a   : > { %4278 = vrot.lane.b32.xlu0 %v7586_v27, %s5651_s15  ;;  %v8209_v44 = vadd.f32 %v9343_v38, %v1128_v30  ;;  %v9345_v27 = vld [vmem:[#allocation40_spill] sm:$0xff]  ;;  %v8220_v32 = vadd.f32 %v9346_v17, %v8005_v46  ;;  %v9347_v38 = vld [vmem:[#allocation22_spill] sm:$0xff]  ;;  %v8243_v17 = vadd.f32 %v7984_v21, %v8030_v35  ;;  %v8261_v35 = vadd.f32 %v8007_v55, %v8053_v28 }
 0x49b   : > { %v8204_v49 = vpop.permute.xlu1 %4265  ;;  %v1611_v2 = vadd.f32 %v9345_v27, %v1109_v36  ;;  %v8226_v30 = vpop.f32.mrf.mxu0  ;;  %v3739_v3 = vsel %vm365_vm3, %v9348_v63, %v9347_v38  ;;  %v9349_v36 = vld [vmem:[#allocation5_spill] sm:$0xff]  ;;  %v9350_v27 = vld [vmem:[#allocation24_spill] sm:$0xff] }
 0x49c   : > { %9342 = vst [vmem:[#allocation8_spill] sm:$0xff] %v8204_v49  ;;  %v3355_v1 = vpop.permute.xlu0 %3354  ;;  %v1115_v49 = vadd.f32 %v9350_v27, %v9349_v36  ;;  %v9357_v27 = vld [vmem:[#allocation27_spill] sm:$0xff] }
 0x49d   : > { %4280 = vrot.lane.b32.xlu1 %v7602_v7, %s5651_s15 }
 0x49e   : > { %4282 = vrot.lane.b32.xlu0 %v7607_v43, %s5651_s15  ;;  %v8239_v43 = vadd.f32 %v7980_v47, %v1611_v2  ;;  %v9351_v47 = vld [vmem:[#allocation23_spill] sm:$0xff]  ;;  %v3738_v2 = vsel %vm365_vm3, %v9352_v0, %v9348_v63 }
 0x49f   : > { %v8224_v13 = vpop.permute.xlu1 %3356  ;;  %v3740_v21 = vsel %vm365_vm3, %v9347_v38, %v9351_v47  ;;  %v8274_v38 = vadd.f32 %v8023_v56, %v8064_v61  ;;  %v9356_v61 = vld [vmem:[#allocation7_spill] sm:$0xff] }
 0x4a0   : > { %v3353_v33 = vpop.permute.xlu0 %3352  ;;  %v3411_v7 = vsel %vm3400_vm14, %v3355_v1, %v8224_v13 }
 0x4a1   : > { %v3410_v46 = vsel %vm3400_vm14, %v3353_v33, %v3355_v1  ;;  %4276 = vrot.lane.b32.xlu1 %v7620_v31, %s5651_s15  ;;  %3475 = vmatprep.subr.bf16.mxu0 %v3411_v7  ;;  %v8250_v1 = vpop.f32.mrf.mxu0  ;;  %v9355_v7 = vld [vmem:[#allocation29_spill] sm:$0xff] }
 0x4a2   : > { %3864 = vrot.lane.b32.xlu0 %v3739_v3, %s5658_s28  ;;  %3476 = vmatpush1.bf16.msra.mxu0 %v3410_v46  ;;  %v1121_v46 = vadd.f32 %v9357_v27, %v9356_v61  ;;  %v9362_v27 = vld [vmem:[#allocation43_spill] sm:$0xff] }
 0x4a3   : > { %v3367_v36 = vpop.permute.xlu1 %3366  ;;  %v8282_v28 = vpop.f32.mrf.mxu0 }
 0x4a4   : > { %v3415_v31 = vsel %vm3400_vm14, %v8128_v15, %v3367_v36  ;;  %v8254_v33 = vpop.permute.xlu0 %4256  ;;  %v9353_v15 = vld [vmem:[#allocation45_spill] sm:$0xff] }
 0x4a5   : > { %3866 = vrot.lane.b32.xlu1 %v3740_v21, %s5658_s28  ;;  %3547 = vmatpush1.bf16.msra.mxu1 %v3415_v31  ;;  %v1617_v3 = vadd.f32 %v9353_v15, %v1115_v49  ;;  %v9354_v49 = vld [vmem:[#allocation32_spill] sm:$0xff]  ;;  %v8298_v31 = vadd.f32 %v8041_v18, %v8089_v25  ;;  %v8303_v21 = vadd.f32 %v8046_v6, %v8095_v12  ;;  %v9360_v12 = vld [vmem:[#allocation37_spill] sm:$0xff] }
 0x4a6   : > { %3862 = vrot.lane.b32.xlu0 %v3738_v2, %s5658_s28  ;;  %3548 = vmatprep.subr.bf16.mxu1 %v9264_v14  ;;  %v8278_v55 = vpop.f32.mrf.mxu1  ;;  %v3728_v56 = vsel %vm350_vm5, %v9355_v7, %v9354_v49  ;;  %v8309_v2 = vpop.f32.mrf.mxu0  ;;  %v8316_v18 = vadd.f32 %v8066_v37, %v8115_v11  ;;  %v8320_v25 = vadd.f32 %v8071_v42, %v8118_v20 }
 0x4a7   : > { %v8280_v60 = vpop.permute.xlu1 %4258  ;;  %v8294_v36 = vadd.f32 %v8039_v8, %v1617_v3  ;;  %v3727_v3 = vsel %vm350_vm5, %v9360_v12, %v9355_v7  ;;  %v9365_v12 = vld [vmem:[#allocation36_spill] sm:$0xff] }
 0x4a8   : > { %v8284_v59 = vpop.permute.xlu0 %4260  ;;  %v2558_v63 = vpop.f32.mrf.mxu1 }
 0x4a9   : > { %3876 = vrot.lane.b32.xlu1 %v9329_v48, %s5658_s28  ;;  %v9359_v63 = vld [vmem:[#allocation34_spill] sm:$0xff]  ;;  %v8336_v42 = vpop.f32.mrf.mxu0 }
 0x4aa   : > { %3856 = vrot.lane.b32.xlu0 %v3728_v56, %s5658_s28  ;;  %v8305_v48 = vpop.f32.mrf.mxu1  ;;  %v3729_v8 = vsel %vm350_vm5, %v9354_v49, %v9359_v63  ;;  %v9361_v56 = vld [vmem:[#allocation51_spill] sm:$0xff]  ;;  %v8329_v49 = vadd.f32 %v8077_v52, %v8124_v62 }
 0x4ab   : > { %v8307_v0 = vpop.permute.xlu1 %4254  ;;  %v1623_v61 = vadd.f32 %v9361_v56, %v1121_v46 }
 0x4ac   : > { %9358 = vst [vmem:[#allocation28_spill] sm:$0xff] %v8307_v0  ;;  %v3347_v15 = vpop.permute.xlu0 %3346  ;;  %v2561_v6 = vpop.f32.mrf.mxu1  ;;  %v8353_v0 = vadd.f32 %v8101_v45, %v8145_v24  ;;  %v8371_v24 = vadd.f32 %v8126_v40, %v8165_v50 }
 0x4ad   : > { %3858 = vrot.lane.b32.xlu1 %v3729_v8, %s5658_s28  ;;  %v9363_v6 = vld [vmem:[#allocation41_spill] sm:$0xff]  ;;  %v9364_v8 = vld [vmem:[#allocation16_spill] sm:$0xff]  ;;  %v8349_v56 = vadd.f32 %v8097_v26, %v1623_v61 }
 0x4ae   : > { %3854 = vrot.lane.b32.xlu0 %v3727_v3, %s5658_s28  ;;  %v8332_v37 = vpop.f32.mrf.mxu1  ;;  %v3717_v7 = vsel %vm335_vm6, %v9363_v6, %v9362_v27  ;;  %v1127_v52 = vadd.f32 %v9365_v12, %v9364_v8  ;;  %v8358_v8 = vadd.f32 %v8106_v29, %v8151_v54  ;;  %v9366_v61 = vld [vmem:[#allocation44_spill] sm:$0xff]  ;;  %v8375_v29 = vadd.f32 %v8130_v23, %v8168_v58 }
 0x4af   : > { %v8334_v11 = vpop.permute.xlu1 %3348  ;;  %v3718_v45 = vsel %vm335_vm6, %v9362_v27, %v9366_v61  ;;  %v8384_v27 = vadd.f32 %v8153_v4, %v8179_v19  ;;  %v8404_v19 = vadd.f32 %v8155_v39, %v8196_v51 }
 0x4b0   : > { %v3345_v20 = vpop.permute.xlu0 %3344  ;;  %v3408_v46 = vsel %vm3400_vm14, %v3347_v15, %v8334_v11  ;;  %v2566_v62 = vpop.f32.mrf.mxu1 }
 0x4b1   : > { %v3407_v3 = vsel %vm3400_vm14, %v3345_v20, %v3347_v15  ;;  %3868 = vrot.lane.b32.xlu1 %v9351_v47, %s5658_s28  ;;  %3477 = vmatprep.subr.bf16.mxu0 %v3408_v46  ;;  %v2497_v20 = vpop.f32.mrf.mxu0 }
 0x4b2   : > { %3848 = vrot.lane.b32.xlu0 %v3717_v7, %s5658_s28  ;;  %3478 = vmatpush1.bf16.msra.mxu0 %v3407_v3  ;;  %v8360_v12 = vpop.f32.mrf.mxu1  ;;  %v9367_v7 = vld [vmem:[#allocation46_spill] sm:$0xff] }
 0x4b3   : > { %v3359_v15 = vpop.permute.xlu1 %3358  ;;  %v3716_v46 = vsel %vm335_vm6, %v9367_v7, %v9363_v6  ;;  %v2499_v58 = vpop.f32.mrf.mxu0  ;;  %v9369_v6 = vld [vmem:[#allocation54_spill] sm:$0xff] }
 0x4b4   : > { %v3412_v47 = vsel %vm3400_vm14, %v8224_v13, %v3359_v15  ;;  %v8364_v26 = vpop.permute.xlu0 %4245  ;;  %v2569_v54 = vpop.f32.mrf.mxu1  ;;  %v9368_v13 = vld [vmem:[#allocation57_spill] sm:$0xff]  ;;  %v8408_v15 = vadd.f32 %v8206_v34, %v8202_v41  ;;  %v9371_v34 = vld [vmem:[#allocation55_spill] sm:$0xff] }
 0x4b5   : > { %3850 = vrot.lane.b32.xlu1 %v3718_v45, %s5658_s28  ;;  %3549 = vmatpush1.bf16.msra.mxu1 %v3412_v47  ;;  %v1629_v62 = vadd.f32 %v9368_v13, %v1127_v52  ;;  %v9370_v52 = vld [vmem:[#allocation52_spill] sm:$0xff]  ;;  %v8417_v45 = vadd.f32 %v8250_v1, %v8220_v32  ;;  %v3707_v54 = vsel %vm320_vm4, %v9369_v6, %v9371_v34  ;;  %v9372_v32 = vld [vmem:[#allocation58_spill] sm:$0xff] }
 0x4b6   : > { %3846 = vrot.lane.b32.xlu0 %v3716_v46, %s5658_s28  ;;  %3550 = vmatprep.subr.bf16.mxu1 %v9264_v14  ;;  %v3706_v3 = vsel %vm320_vm4, %v9370_v52, %v9369_v6  ;;  %v8440_v1 = vadd.f32 %v8278_v55, %v8243_v17  ;;  %v8457_v55 = vadd.f32 %v8309_v2, %v8248_v22 }
 0x4b7   : > { %v8388_v40 = vpop.permute.xlu1 %4247  ;;  %v8390_v23 = vpop.f32.mrf.mxu1  ;;  %v8400_v4 = vadd.f32 %v8181_v53, %v1629_v62  ;;  %v8421_v53 = vadd.f32 %v8282_v28, %v8239_v43  ;;  %v3705_v43 = vsel %vm320_vm4, %v9372_v32, %v9370_v52  ;;  %v8444_v28 = vadd.f32 %v8305_v48, %v8265_v5  ;;  %v5629_v5 = vld [vmem:[%s5717_s30 + $0x8] ss:$20 sps:$4 sm:$0xff]  }
 0x4b8   : > { %v8392_v50 = vpop.permute.xlu0 %4249  ;;  %v8472_v22 = vadd.f32 %v2497_v20, %v8274_v38  ;;  %v8475_v2 = vadd.f32 %v2499_v58, %v8294_v36  ;;  %v3783_v38 = vsel %vm425_vm7, %v8044_v10, %v8068_v16  ;;  %v8491_v36 = vadd.f32 %v8332_v37, %v8298_v31 }
 0x4b9   : > { %3860 = vrot.lane.b32.xlu1 %v9359_v63, %s5658_s28  ;;  %v2574_v47 = vpop.f32.mrf.mxu1  ;;  %v8413_v63 = vadd.f32 %v8226_v30, %v8213_v9  ;;  %v8432_v9 = vadd.f32 %v8185_v57, %v8209_v44  ;;  %v2503_v30 = vpop.f32.mrf.mxu0  ;;  %v8495_v20 = vadd.f32 %v8360_v12, %v8320_v25 }
 0x4ba   : > { %3840 = vrot.lane.b32.xlu0 %v3706_v3, %s5658_s28  ;;  %v8499_v58 = vadd.f32 %v2503_v30, %v8303_v21  ;;  %v9375_v21 = vld [vmem:[#allocation53_spill] sm:$0xff]  ;;  %v9376_v30 = vld [vmem:[#allocation26_spill] sm:$0xff] }
 0x4bb   : > { %v8423_v39 = vpop.permute.xlu1 %4243  ;;  %v8425_v51 = vpop.f32.mrf.mxu1 }
 0x4bc   : > { %v3339_v41 = vpop.permute.xlu0 %3338  ;;  %v2505_v62 = vpop.f32.mrf.mxu0 }
 0x4bd   : > { %3842 = vrot.lane.b32.xlu1 %v3707_v54, %s5658_s28  ;;  %v2577_v7 = vpop.f32.mrf.mxu1  ;;  %v9373_v54 = vld [vmem:[#allocation42_spill] sm:$0xff]  ;;  %v8508_v31 = vadd.f32 %v2505_v62, %v8316_v18 }
 0x4be   : > { %3838 = vrot.lane.b32.xlu0 %v3705_v43, %s5658_s28  ;;  %v5630_v43 = vld [vmem:[%s5717_s30 + $0x4] ss:$20 sps:$4 sm:$0xff]  }
 0x4bf   : > { %v3341_v44 = vpop.permute.xlu1 %3340  ;;  %v8447_v57 = vpop.f32.mrf.mxu1 }
 0x4c0   : > { %v3337_v46 = vpop.permute.xlu0 %3336  ;;  %v3405_v13 = vsel %vm3400_vm14, %v3339_v41, %v3341_v44 }
 0x4c1   : > { %v3404_v6 = vsel %vm3400_vm14, %v3337_v46, %v3339_v41  ;;  %3852 = vrot.lane.b32.xlu1 %v9366_v61, %s5658_s28  ;;  %3479 = vmatprep.subr.bf16.mxu0 %v3405_v13  ;;  %v2582_v17 = vpop.f32.mrf.mxu1  ;;  %v8467_v61 = vadd.f32 %v8336_v42, %v8261_v35  ;;  %v2507_v41 = vpop.f32.mrf.mxu0  ;;  %v9374_v46 = vld [vmem:[#allocation64_spill] sm:$0xff] }
 0x4c2   : > { %3832 = vrot.lane.b32.xlu0 %v5629_v5, %s5658_s28  ;;  %3480 = vmatpush1.bf16.msra.mxu0 %v3404_v6  ;;  %v3784_v13 = vsel %vm425_vm7, %v8068_v16, %v9374_v46  ;;  %v8511_v25 = vadd.f32 %v2507_v41, %v8329_v49  ;;  %v3782_v16 = vsel %vm425_vm7, %v9376_v30, %v8044_v10  ;;  %v9377_v5 = vld [vmem:[#allocation4_spill] sm:$0xff] }
 0x4c3   : > { %v3351_v48 = vpop.permute.xlu1 %3350  ;;  %v8459_v52 = vpop.f32.mrf.mxu1  ;;  %v8533_v10 = vadd.f32 %v8425_v51, %v8375_v29  ;;  %v9381_v30 = vld [vmem:[#allocation28_spill] sm:$0xff] }
 0x4c4   : > { %v3409_v3 = vsel %vm3400_vm14, %v8334_v11, %v3351_v48  ;;  %v8463_v47 = vpop.permute.xlu0 %4234  ;;  %v2509_v42 = vpop.f32.mrf.mxu0  ;;  %v9378_v48 = vld [vmem:[#allocation47_spill] sm:$0xff] }
 0x4c5   : > { %3551 = vmatpush1.bf16.msra.mxu1 %v3409_v3  ;;  %3834 = vrot.lane.b32.xlu1 %v9373_v54, %s5658_s28  ;;  %v2585_v32 = vpop.f32.mrf.mxu1  ;;  %v8514_v37 = vadd.f32 %v2509_v42, %v8349_v56  ;;  %v4274_v18 = vsel %vm410_vm0, %v9378_v48, %v9377_v5  ;;  %v8529_v56 = vadd.f32 %v8390_v23, %v8353_v0  ;;  %v9379_v42 = vld [vmem:[#allocation6_spill] sm:$0xff] }
 0x4c6   : > { %3830 = vrot.lane.b32.xlu0 %v5630_v43, %s5658_s28  ;;  %3552 = vmatprep.subr.bf16.mxu1 %v9264_v14  ;;  %v2513_v6 = vpop.f32.mrf.mxu0  ;;  %v4275_v0 = vsel %vm410_vm0, %v9377_v5, %v9379_v42 }
 0x4c7   : > { %v8480_v11 = vpop.permute.xlu1 %4236  ;;  %v8537_v41 = vadd.f32 %v2513_v6, %v8358_v8 }
 0x4c8   : > { %v8482_v35 = vpop.permute.xlu0 %4238  ;;  %v2515_v49 = vpop.f32.mrf.mxu0 }
 0x4c9   : > { %3844 = vrot.lane.b32.xlu1 %v9371_v34, %s5658_s28  ;;  %v8547_v29 = vadd.f32 %v2515_v49, %v8371_v24  ;;  %v4263_v24 = vsel %vm395_vm1, %v8254_v33, %v8280_v60 }
 0x4ca   : > { %3896 = vrot.lane.b32.xlu0 %v3783_v38, %s5658_s28  ;;  %v2517_v23 = vpop.f32.mrf.mxu0 }
 0x4cb   : > { %v8501_v7 = vpop.permute.xlu1 %4232  ;;  %v8550_v51 = vadd.f32 %v2517_v23, %v8384_v27  ;;  %v8568_v27 = vadd.f32 %v8447_v57, %v8404_v19 }
 0x4cc   : > { %v3331_v34 = vpop.permute.xlu0 %3330 }
 0x4cd   : > { %3898 = vrot.lane.b32.xlu1 %v3784_v13, %s5658_s28 }
 0x4ce   : > { %3836 = vrot.lane.b32.xlu0 %v9375_v21, %s5658_s28  ;;  %v4264_v21 = vsel %vm395_vm1, %v8280_v60, %v8284_v59  ;;  %v4252_v60 = vsel %vm380_vm2, %v8364_v26, %v8388_v40 }
 0x4cf   : > { %v3333_v12 = vpop.permute.xlu1 %3332 }
 0x4d0   : > { %v3329_v17 = vpop.permute.xlu0 %3328  ;;  %v3402_v62 = vsel %vm3400_vm14, %v3331_v34, %v3333_v12 }
 0x4d1   : > { %v3401_v3 = vsel %vm3400_vm14, %v3329_v17, %v3331_v34  ;;  %3894 = vrot.lane.b32.xlu1 %v3782_v16, %s5658_s28  ;;  %3481 = vmatprep.subr.bf16.mxu0 %v3402_v62  ;;  %v4262_v16 = vsel %vm395_vm1, %v9381_v30, %v8254_v33  ;;  %v5536_v62 = vld [vmem:[%s9214_s1 + $0x194] ss:$8 sps:$4 sm:$0xff]   ;;  %vm4729_vm1 = vcmask 7168  }
 0x4d2   : > { %4390 = vrot.lane.b32.xlu0 %v4274_v18, %s5659_s8  ;;  %3482 = vmatpush1.bf16.msra.mxu0 %v3401_v3  ;;  %v4251_v18 = vsel %vm380_vm2, %v8423_v39, %v8364_v26  ;;  %v4241_v26 = vsel %vm365_vm3, %v8463_v47, %v8480_v11  ;;  %v5542_v30 = vld [vmem:[%s9214_s1 + $0x1b4] ss:$8 sps:$4 sm:$0xff]  }
 0x4d3   : > { %v3343_v54 = vpop.permute.xlu1 %3342 }
 0x4d4   : > { %v3406_v32 = vsel %vm3400_vm14, %v3341_v44, %v3343_v54  ;;  %v8540_v43 = vpop.permute.xlu0 %4223  ;;  %v9380_v44 = vld [vmem:[#allocation8_spill] sm:$0xff]  ;;  %v4242_v54 = vsel %vm365_vm3, %v8480_v11, %v8482_v35 }
 0x4d5   : > { %3553 = vmatpush1.bf16.msra.mxu1 %v3406_v32  ;;  %4392 = vrot.lane.b32.xlu1 %v4275_v0, %s5659_s8  ;;  %v4273_v38 = vsel %vm410_vm0, %v9380_v44, %v9378_v48  ;;  %v5533_v48 = vld [vmem:[%s9214_s1 + $0x180] ss:$8 sps:$4 sm:$0xff]   ;;  %v5538_v32 = vld [vmem:[%s9214_s1 + $0x190] ss:$8 sps:$4 sm:$0xff]   ;;  %v5539_v0 = vld [vmem:[%s9214_s1 + $0x1a4] ss:$8 sps:$4 sm:$0xff]  }
 0x4d6   : > { %3900 = vrot.lane.b32.xlu0 %v9374_v46, %s5658_s28  ;;  %3554 = vmatprep.subr.bf16.mxu1 %v9264_v14  ;;  %v8572_v46 = vadd.f32 %v8459_v52, %v8432_v9  ;;  %vm4404_vm0 = vcmask 523264  }
 0x4d7   : > { %v8555_v8 = vpop.permute.xlu1 %4225 }
 0x4d8   : > { %v8560_v34 = vpop.permute.xlu0 %4227 }
 0x4d9   : > { %4388 = vrot.lane.b32.xlu1 %v4273_v38, %s5659_s8 }
 0x4da   : > { %4382 = vrot.lane.b32.xlu0 %v4263_v24, %s5659_s8 }
 0x4db   : > { %v4222_v13 = vpop.permute.xlu1 %4221 }
 0x4dc   : > { %v3395_v6 = vpop.permute.xlu0 %3394 }
 0x4dd   : > { %4384 = vrot.lane.b32.xlu1 %v4264_v21, %s5659_s8  ;;  %v4229_v21 = vsel %vm350_vm5, %v4222_v13, %v8540_v43 }
 0x4de   : > { %4380 = vrot.lane.b32.xlu0 %v4262_v16, %s5659_s8 }
 0x4df   : > { %v3397_v19 = vpop.permute.xlu1 %3396 }
 0x4e0   : > { %v3335_v57 = vpop.permute.xlu0 %3334  ;;  %v3426_v9 = vsel %vm3400_vm14, %v3395_v6, %v3397_v19 }
 0x4e1   : > { %v3403_v52 = vsel %vm3400_vm14, %v3333_v12, %v3335_v57  ;;  %4394 = vrot.lane.b32.xlu1 %v9379_v42, %s5659_s8  ;;  %3497 = vmatprep.subr.bf16.mxu0 %v3426_v9  ;;  %v4253_v12 = vsel %vm380_vm2, %v8388_v40, %v8392_v50  ;;  %v5544_v9 = vld [vmem:[%s9214_s1 + $0x1b0] ss:$8 sps:$4 sm:$0xff]  }
 0x4e2   : > { %4374 = vrot.lane.b32.xlu0 %v4252_v60, %s5659_s8  ;;  %3555 = vmatpush1.bf16.msra.mxu1 %v3403_v52  ;;  %v5547_v60 = vld [vmem:[%s9214_s1 + $0x1c4] ss:$8 sps:$4 sm:$0xff]  }
 0x4e3   : > { %v3393_v33 = vpop.permute.xlu1 %3392  ;;  %3570 = vmatprep.subr.bf16.mxu1 %v9264_v14 }
 0x4e4   : > { %v3425_v17 = vsel %vm3400_vm14, %v3393_v33, %v3395_v6  ;;  %v4213_v5 = vpop.permute.xlu0 %4212  ;;  %v5541_v6 = vld [vmem:[%s9214_s1 + $0x1a0] ss:$8 sps:$4 sm:$0xff]  }
 0x4e5   : > { %4376 = vrot.lane.b32.xlu1 %v4253_v12, %s5659_s8  ;;  %3498 = vmatpush2.bf16.msra.mxu0 %v3425_v17 }
 0x4e6   : > { %4372 = vrot.lane.b32.xlu0 %v4251_v18, %s5659_s8 }
 0x4e7   : > { %v4215_v49 = vpop.permute.xlu1 %4214 }
 0x4e8   : > { %v8607_v3 = vpop.permute.xlu0 %4216  ;;  %3500 = vmatmul.mubr.bf16.vlgmr.msra.gmra.mxu0 %v5533_v48 }
 0x4e9   : > { %4386 = vrot.lane.b32.xlu1 %v8284_v59, %s5659_s8  ;;  %5333 = vmatprep.mubr.msk.bf16.mxu0 %vm476_vm8, %v5536_v62  ;;  %v4240_v59 = vsel %vm365_vm3, %v8501_v7, %v8463_v47  ;;  %v4230_v47 = vsel %vm350_vm5, %v8540_v43, %v8555_v8  ;;  %v4219_v43 = vsel %vm335_vm6, %v4213_v5, %v4215_v49 }
 0x4ea   : > { %4366 = vrot.lane.b32.xlu0 %v4241_v26, %s5659_s8 }
 0x4eb   : > { %v4211_v40 = vpop.permute.xlu1 %4210 }
 0x4ec   : > { %v3889_v39 = vpop.permute.xlu0 %3888  ;;  %v4218_v52 = vsel %vm335_vm6, %v4211_v40, %v4213_v5 }
 0x4ed   : > { %4368 = vrot.lane.b32.xlu1 %v4242_v54, %s5659_s8 }
 0x4ee   : > { %4364 = vrot.lane.b32.xlu0 %v4240_v59, %s5659_s8 }
 0x4ef   : > { %v3891_v42 = vpop.permute.xlu1 %3890 }
 0x4f0   : > { %v3399_v23 = vpop.permute.xlu0 %3398  ;;  %3510 = vmatmul.mubr.bf16.gmra.mxu0 %v5538_v32  ;;  %v3925_v11 = vsel %vm3902_vm15, %v3889_v39, %v3891_v42 }
 0x4f1   : > { %v3427_v44 = vsel %vm3400_vm14, %v3397_v19, %v3399_v23  ;;  %4378 = vrot.lane.b32.xlu1 %v8392_v50, %s5659_s8  ;;  %3969 = vmatprep.subr.bf16.mxu0 %v3925_v11  ;;  %v4231_v50 = vsel %vm350_vm5, %v8555_v8, %v8560_v34  ;;  %v4220_v19 = vsel %vm335_vm6, %v4215_v49, %v8607_v3  ;;  %v5632_v23 = vld [vmem:[%s5717_s30 + $0xc] ss:$20 sps:$4 sm:$0xff]   ;;  %v5633_v11 = vld [vmem:[%s5717_s30 + $0x4] ss:$20 sps:$4 sm:$0xff]  }
 0x4f2   : > { %4358 = vrot.lane.b32.xlu0 %v4230_v47, %s5659_s8  ;;  %3571 = vmatpush2.bf16.msra.mxu1 %v3427_v44 }
 0x4f3   : > { %v3887_v7 = vpop.permute.xlu1 %3886  ;;  %5334 = vmatprep.mubr.msk.bf16.mxu0 %vm476_vm8, %v5539_v0  ;;  %4042 = vmatprep.subr.bf16.mxu1 %v9264_v14 }
 0x4f4   : > { %v3924_v38 = vsel %vm3902_vm15, %v3887_v7, %v3889_v39  ;;  %v4202_v24 = vpop.permute.xlu0 %4201 }
 0x4f5   : > { %3573 = vmatmul.mubr.bf16.vlgmr.msra.gmra.mxu1 %v5533_v48  ;;  %4360 = vrot.lane.b32.xlu1 %v4231_v50, %s5659_s8  ;;  %v5634_v50 = vld [vmem:[%s5717_s30 + $0x10] ss:$20 sps:$4 sm:$0xff]  }
 0x4f6   : > { %4356 = vrot.lane.b32.xlu0 %v4229_v21, %s5659_s8  ;;  %3970 = vmatpush1.bf16.msra.mxu0 %v3924_v38 }
 0x4f7   : > { %v4204_v16 = vpop.permute.xlu1 %4203  ;;  %5337 = vmatprep.mubr.msk.bf16.mxu1 %vm476_vm8, %v5536_v62 }
 0x4f8   : > { %v4206_v8 = vpop.permute.xlu0 %4205  ;;  %3520 = vmatmul.mubr.bf16.gmra.mxu0 %v5541_v6  ;;  %v4208_v12 = vsel %vm320_vm4, %v4202_v24, %v4204_v16 }
 0x4f9   : > { %4370 = vrot.lane.b32.xlu1 %v8482_v35, %s5659_s8  ;;  %5335 = vmatprep.mubr.msk.bf16.mxu0 %vm476_vm8, %v5542_v30  ;;  %v4209_v18 = vsel %vm320_vm4, %v4204_v16, %v4206_v8 }
 0x4fa   : > { %4350 = vrot.lane.b32.xlu0 %v4219_v43, %s5659_s8 }
 0x4fb   : > { %v4200_v13 = vpop.permute.xlu1 %4199 }
 0x4fc   : > { %v3881_v57 = vpop.permute.xlu0 %3880  ;;  %v4207_v26 = vsel %vm320_vm4, %v4200_v13, %v4202_v24 }
 0x4fd   : > { %3581 = vmatmul.mubr.bf16.gmra.mxu1 %v5538_v32  ;;  %4352 = vrot.lane.b32.xlu1 %v4220_v19, %s5659_s8  ;;  %v5631_v32 = vld [vmem:[%s5717_s30 + $0x8] ss:$20 sps:$4 sm:$0xff]   ;;  %s5407_s30 = smul.u32 192, %s9401_s27 }
 0x4fe   : > { %4348 = vrot.lane.b32.xlu0 %v4218_v52, %s5659_s8  ;;  %5338 = vmatprep.mubr.msk.bf16.mxu1 %vm476_vm8, %v5539_v0 }
 0x4ff   : > { %v3883_v35 = vpop.permute.xlu1 %3882  ;;  %s9160_s4 = scalar_lea.vmem %s9220_s7, %s5407_s30 }
 0x500   : > { %v3879_v33 = vpop.permute.xlu0 %3878  ;;  %3530 = vmatmul.mubr.bf16.gmra.mxu0 %v5544_v9  ;;  %v3922_v17 = vsel %vm3902_vm15, %v3881_v57, %v3883_v35 }
 0x501   : > { %v3921_v5 = vsel %vm3902_vm15, %v3879_v33, %v3881_v57  ;;  %4362 = vrot.lane.b32.xlu1 %v8560_v34, %s5659_s8  ;;  %3971 = vmatprep.subr.bf16.mxu0 %v3922_v17  ;;  %v8712_v57 = vpop.f32.mrf.mxu0 }
 0x502   : > { %4342 = vrot.lane.b32.xlu0 %v4208_v12, %s5659_s8  ;;  %3972 = vmatpush1.bf16.msra.mxu0 %v3921_v5 }
 0x503   : > { %v3893_v48 = vpop.permute.xlu1 %3892  ;;  %5360 = vmatprep.mubr.msk.bf16.mxu0 %vm476_vm8, %v5547_v60 }
 0x504   : > { %v3926_v62 = vsel %vm3902_vm15, %v3891_v42, %v3893_v48  ;;  %v3873_v49 = vpop.permute.xlu0 %3872 }
 0x505   : > { %3589 = vmatmul.mubr.bf16.gmra.mxu1 %v5541_v6  ;;  %4344 = vrot.lane.b32.xlu1 %v4209_v18, %s5659_s8 }
 0x506   : > { %4043 = vmatpush1.bf16.msra.mxu1 %v3926_v62  ;;  %4340 = vrot.lane.b32.xlu0 %v4207_v26, %s5659_s8 }
 0x507   : > { %v3875_v34 = vpop.permute.xlu1 %3874  ;;  %5339 = vmatprep.mubr.msk.bf16.mxu1 %vm476_vm8, %v5542_v30  ;;  %4044 = vmatprep.subr.bf16.mxu1 %v9264_v14 }
 0x508   : > { %v3871_v40 = vpop.permute.xlu0 %3870  ;;  %v3919_v39 = vsel %vm3902_vm15, %v3873_v49, %v3875_v34 }
 0x509   : > { %v3918_v54 = vsel %vm3902_vm15, %v3871_v40, %v3873_v49  ;;  %4354 = vrot.lane.b32.xlu1 %v8607_v3, %s5659_s8  ;;  %3973 = vmatprep.subr.bf16.mxu0 %v3919_v39 }
 0x50a   : > { %4334 = vrot.lane.b32.xlu0 %v5631_v32, %s5659_s8  ;;  %3974 = vmatpush1.bf16.msra.mxu0 %v3918_v54 }
 0x50b   : > { %v3885_v59 = vpop.permute.xlu1 %3884 }
 0x50c   : > { %v3923_v42 = vsel %vm3902_vm15, %v3883_v35, %v3885_v59  ;;  %v4279_v0 = vpop.permute.xlu0 %4278 }
 0x50d   : > { %3597 = vmatmul.mubr.bf16.gmra.mxu1 %v5544_v9  ;;  %4336 = vrot.lane.b32.xlu1 %v5632_v23, %s5659_s8 }
 0x50e   : > { %4045 = vmatpush1.bf16.msra.mxu1 %v3923_v42  ;;  %4332 = vrot.lane.b32.xlu0 %v5633_v11, %s5659_s8 }
 0x50f   : > { %v4281_v44 = vpop.permute.xlu1 %4280  ;;  %4046 = vmatprep.subr.bf16.mxu1 %v9264_v14  ;;  %5364 = vmatprep.mubr.msk.bf16.mxu1 %vm476_vm8, %v5547_v60 }
 0x510   : > { %v4285_v3 = vsel %vm425_vm7, %v4279_v0, %v4281_v44  ;;  %v4283_v47 = vpop.permute.xlu0 %4282 }
 0x511   : > { %4346 = vrot.lane.b32.xlu1 %v4206_v8, %s5659_s8  ;;  %v4286_v38 = vsel %vm425_vm7, %v4281_v44, %v4283_v47 }
 0x512   : > { %4398 = vrot.lane.b32.xlu0 %v4285_v3, %s5659_s8 }
 0x513   : > { %v4277_v7 = vpop.permute.xlu1 %4276 }
 0x514   : > { %v3865_v24 = vpop.permute.xlu0 %3864  ;;  %v4284_v21 = vsel %vm425_vm7, %v4277_v7, %v4279_v0 }
 0x515   : > { %4400 = vrot.lane.b32.xlu1 %v4286_v38, %s5659_s8 }
 0x516   : > { %4338 = vrot.lane.b32.xlu0 %v5634_v50, %s5659_s8 }
 0x517   : > { %v3867_v6 = vpop.permute.xlu1 %3866 }
 0x518   : > { %v3863_v30 = vpop.permute.xlu0 %3862  ;;  %v3916_v16 = vsel %vm3902_vm15, %v3865_v24, %v3867_v6 }
 0x519   : > { %v3915_v43 = vsel %vm3902_vm15, %v3863_v30, %v3865_v24  ;;  %4396 = vrot.lane.b32.xlu1 %v4284_v21, %s5659_s8  ;;  %3975 = vmatprep.subr.bf16.mxu0 %v3916_v16 }
 0x51a   : > { %4402 = vrot.lane.b32.xlu0 %v4283_v47, %s5659_s8  ;;  %3976 = vmatpush1.bf16.msra.mxu0 %v3915_v43 }
 0x51b   : > { %v3877_v8 = vpop.permute.xlu1 %3876 }
 0x51c   : > { %v3920_v13 = vsel %vm3902_vm15, %v3875_v34, %v3877_v8  ;;  %v3857_v19 = vpop.permute.xlu0 %3856 }
 0x51d   : > { %4047 = vmatpush1.bf16.msra.mxu1 %v3920_v13 }
 0x51e   : > { %4048 = vmatprep.subr.bf16.mxu1 %v9264_v14 }
 0x51f   : > { %v3859_v9 = vpop.permute.xlu1 %3858 }
 0x520   : > { %v3855_v52 = vpop.permute.xlu0 %3854  ;;  %v3913_v35 = vsel %vm3902_vm15, %v3857_v19, %v3859_v9  ;;  %v2999_v60 = vpop.f32.mrf.mxu0 }
 0x521   : > { %v3912_v33 = vsel %vm3902_vm15, %v3855_v52, %v3857_v19  ;;  %3977 = vmatprep.subr.bf16.mxu0 %v3913_v35  ;;  %v8718_v17 = vadd.f32 %v2999_v60, %v8408_v15 }
 0x522   : > { %3978 = vmatpush1.bf16.msra.mxu0 %v3912_v33  ;;  %v3001_v12 = vpop.f32.mrf.mxu0 }
 0x523   : > { %v3869_v5 = vpop.permute.xlu1 %3868  ;;  %v8721_v48 = vadd.f32 %v3001_v12, %v8413_v63 }
 0x524   : > { %v3917_v18 = vsel %vm3902_vm15, %v3867_v6, %v3869_v5  ;;  %v3849_v62 = vpop.permute.xlu0 %3848  ;;  %v3003_v49 = vpop.f32.mrf.mxu0 }
 0x525   : > { %4049 = vmatpush1.bf16.msra.mxu1 %v3917_v18  ;;  %v8725_v26 = vadd.f32 %v3003_v49, %v8417_v45 }
 0x526   : > { %4050 = vmatprep.subr.bf16.mxu1 %v9264_v14  ;;  %v3005_v34 = vpop.f32.mrf.mxu0 }
 0x527   : > { %v3851_v40 = vpop.permute.xlu1 %3850  ;;  %v8729_v15 = vadd.f32 %v3005_v34, %v8421_v53 }
 0x528   : > { %v3847_v39 = vpop.permute.xlu0 %3846  ;;  %v3910_v54 = vsel %vm3902_vm15, %v3849_v62, %v3851_v40  ;;  %v3009_v63 = vpop.f32.mrf.mxu0 }
 0x529   : > { %v3909_v32 = vsel %vm3902_vm15, %v3847_v39, %v3849_v62  ;;  %3979 = vmatprep.subr.bf16.mxu0 %v3910_v54  ;;  %v8734_v59 = vadd.f32 %v3009_v63, %v8457_v55 }
 0x52a   : > { %3980 = vmatpush1.bf16.msra.mxu0 %v3909_v32  ;;  %v3011_v45 = vpop.f32.mrf.mxu0 }
 0x52b   : > { %v3861_v42 = vpop.permute.xlu1 %3860  ;;  %v8737_v0 = vadd.f32 %v3011_v45, %v8467_v61 }
 0x52c   : > { %v3914_v23 = vsel %vm3902_vm15, %v3859_v9, %v3861_v42  ;;  %v3841_v53 = vpop.permute.xlu0 %3840  ;;  %v3013_v11 = vpop.f32.mrf.mxu0 }
 0x52d   : > { %4051 = vmatpush1.bf16.msra.mxu1 %v3914_v23  ;;  %v8741_v44 = vadd.f32 %v3013_v11, %v8472_v22 }
 0x52e   : > { %4052 = vmatprep.subr.bf16.mxu1 %v9264_v14  ;;  %v3072_v3 = vpop.f32.mrf.mxu1  ;;  %v3015_v47 = vpop.f32.mrf.mxu0 }
 0x52f   : > { %v3843_v55 = vpop.permute.xlu1 %3842  ;;  %v8745_v7 = vadd.f32 %v3072_v3, %v8440_v1  ;;  %v8748_v38 = vadd.f32 %v3015_v47, %v8475_v2 }
 0x530   : > { %v3839_v61 = vpop.permute.xlu0 %3838  ;;  %v3907_v24 = vsel %vm3902_vm15, %v3841_v53, %v3843_v55  ;;  %v3074_v50 = vpop.f32.mrf.mxu1 }
 0x531   : > { %v3906_v6 = vsel %vm3902_vm15, %v3839_v61, %v3841_v53  ;;  %3981 = vmatprep.subr.bf16.mxu0 %v3907_v24  ;;  %v3019_v22 = vpop.f32.mrf.mxu0  ;;  %v5545_v61 = vld [vmem:[%s9214_s1 + $0x1c0] ss:$8 sps:$4 sm:$0xff]  }
 0x532   : > { %3982 = vmatpush1.bf16.msra.mxu0 %v3906_v6  ;;  %v3075_v21 = vpop.f32.mrf.mxu1  ;;  %v8753_v30 = vadd.f32 %v3019_v22, %v8499_v58 }
 0x533   : > { %v3853_v16 = vpop.permute.xlu1 %3852  ;;  %v8756_v1 = vadd.f32 %v3075_v21, %v8444_v28  ;;  %v3021_v43 = vpop.f32.mrf.mxu0 }
 0x534   : > { %v3911_v2 = vsel %vm3902_vm15, %v3851_v40, %v3853_v16  ;;  %v3833_v8 = vpop.permute.xlu0 %3832  ;;  %v3077_v13 = vpop.f32.mrf.mxu1  ;;  %v8760_v19 = vadd.f32 %v3021_v43, %v8508_v31 }
 0x535   : > { %4053 = vmatpush1.bf16.msra.mxu1 %v3911_v2  ;;  %v3023_v9 = vpop.f32.mrf.mxu0 }
 0x536   : > { %4054 = vmatprep.subr.bf16.mxu1 %v9264_v14  ;;  %v3080_v52 = vpop.f32.mrf.mxu1  ;;  %v8764_v58 = vadd.f32 %v3023_v9, %v8511_v25 }
 0x537   : > { %v3835_v35 = vpop.permute.xlu1 %3834  ;;  %v8767_v28 = vadd.f32 %v3080_v52, %v8491_v36  ;;  %v3025_v60 = vpop.f32.mrf.mxu0 }
 0x538   : > { %v3831_v33 = vpop.permute.xlu0 %3830  ;;  %v3904_v12 = vsel %vm3902_vm15, %v3833_v8, %v3835_v35  ;;  %v3082_v5 = vpop.f32.mrf.mxu1  ;;  %v8771_v31 = vadd.f32 %v3025_v60, %v8514_v37  ;;  %v5551_v60 = vld [vmem:[%s9214_s1 + $0x1e4] ss:$8 sps:$4 sm:$0xff]  }
 0x539   : > { %v3903_v18 = vsel %vm3902_vm15, %v3831_v33, %v3833_v8  ;;  %3983 = vmatprep.subr.bf16.mxu0 %v3904_v12  ;;  %v3029_v62 = vpop.f32.mrf.mxu0 }
 0x53a   : > { %3984 = vmatpush1.bf16.msra.mxu0 %v3903_v18  ;;  %v3083_v49 = vpop.f32.mrf.mxu1  ;;  %v8775_v25 = vadd.f32 %v3029_v62, %v8537_v41 }
 0x53b   : > { %v3845_v34 = vpop.permute.xlu1 %3844  ;;  %v8778_v36 = vadd.f32 %v3083_v49, %v8495_v20  ;;  %v3031_v40 = vpop.f32.mrf.mxu0 }
 0x53c   : > { %v3908_v39 = vsel %vm3902_vm15, %v3843_v55, %v3845_v34  ;;  %v3897_v54 = vpop.permute.xlu0 %3896  ;;  %v3085_v63 = vpop.f32.mrf.mxu1  ;;  %v8782_v37 = vadd.f32 %v3031_v40, %v8547_v29  ;;  %v5553_v40 = vld [vmem:[%s9214_s1 + $0x1e0] ss:$8 sps:$4 sm:$0xff]  }
 0x53d   : > { %4055 = vmatpush1.bf16.msra.mxu1 %v3908_v39  ;;  %v3033_v32 = vpop.f32.mrf.mxu0  ;;  %v5554_v39 = vld [vmem:[%s9214_s1 + $0x1f4] ss:$8 sps:$4 sm:$0xff]  }
 0x53e   : > { %4056 = vmatprep.subr.bf16.mxu1 %v9264_v14  ;;  %v8786_v45 = vadd.f32 %v3033_v32, %v8550_v51 }
 0x53f   : > { %v3899_v41 = vpop.permute.xlu1 %3898  ;;  %v3088_v42 = vpop.f32.mrf.mxu1 }
 0x540   : > { %9382 = vst [vmem:[#allocation48_spill] sm:$0xff] %v8786_v45  ;;  %v3837_v23 = vpop.permute.xlu0 %3836  ;;  %v3928_v20 = vsel %vm3902_vm15, %v3897_v54, %v3899_v41  ;;  %v8790_v53 = vadd.f32 %v3088_v42, %v8529_v56  ;;  %v5548_v56 = vld [vmem:[%s9214_s1 + $0x1d4] ss:$8 sps:$4 sm:$0xff]  }
 0x541   : > { %v3905_v11 = vsel %vm3902_vm15, %v3835_v35, %v3837_v23  ;;  %3999 = vmatprep.subr.bf16.mxu0 %v3928_v20  ;;  %v3090_v29 = vpop.f32.mrf.mxu1  ;;  %v5550_v35 = vld [vmem:[%s9214_s1 + $0x1d0] ss:$8 sps:$4 sm:$0xff]  }
 0x542   : > { %4057 = vmatpush1.bf16.msra.mxu1 %v3905_v11  ;;  %v5556_v11 = vld [vmem:[%s9214_s1 + $0x1f0] ss:$8 sps:$4 sm:$0xff]   ;;  %v5559_v29 = vld [vmem:[%s9214_s1 + $0x204] ss:$8 sps:$4 sm:$0xff]  }
 0x543   : > { %v3895_v3 = vpop.permute.xlu1 %3894  ;;  %4072 = vmatprep.subr.bf16.mxu1 %v9264_v14  ;;  %v3091_v47 = vpop.f32.mrf.mxu1 }
 0x544   : > { %v3927_v51 = vsel %vm3902_vm15, %v3895_v3, %v3897_v54  ;;  %v4391_v55 = vpop.permute.xlu0 %4390  ;;  %v8799_v24 = vadd.f32 %v3091_v47, %v8533_v10 }
 0x545   : > { %4000 = vmatpush2.bf16.msra.mxu0 %v3927_v51  ;;  %v3093_v50 = vpop.f32.mrf.mxu1 }
 0x547   : > { %v4393_v6 = vpop.permute.xlu1 %4392  ;;  %v3096_v22 = vpop.f32.mrf.mxu1 }
 0x548   : > { %v3901_v21 = vpop.permute.xlu0 %3900  ;;  %4002 = vmatmul.mubr.bf16.vlgmr.msra.gmra.mxu0 %v5545_v61  ;;  %v4427_v16 = vsel %vm4404_vm0, %v4391_v55, %v4393_v6  ;;  %v8806_v43 = vadd.f32 %v3096_v22, %v8568_v27 }
 0x549   : > { %v3929_v2 = vsel %vm3902_vm15, %v3899_v41, %v3901_v21  ;;  %4471 = vmatprep.subr.bf16.mxu0 %v4427_v16  ;;  %5361 = vmatprep.mubr.msk.bf16.mxu0 %vm476_vm8, %v5548_v56  ;;  %v3098_v10 = vpop.f32.mrf.mxu1 }
 0x54a   : > { %4073 = vmatpush2.bf16.msra.mxu1 %v3929_v2 }
 0x54b   : > { %v4389_v8 = vpop.permute.xlu1 %4388  ;;  %4544 = vmatprep.subr.bf16.mxu1 %v9264_v14  ;;  %v3099_v13 = vpop.f32.mrf.mxu1 }
 0x54c   : > { %v4426_v9 = vsel %vm4404_vm0, %v4389_v8, %v4391_v55  ;;  %v4383_v52 = vpop.permute.xlu0 %4382  ;;  %v8816_v27 = vadd.f32 %v3099_v13, %v8572_v46 }
 0x54d   : > { %4075 = vmatmul.mubr.bf16.vlgmr.msra.gmra.mxu1 %v5545_v61  ;;  %4472 = vmatpush1.bf16.msra.mxu0 %v4426_v9  ;;  %v3101_v33 = vpop.f32.mrf.mxu1 }
 0x54e   : > { %5365 = vmatprep.mubr.msk.bf16.mxu1 %vm476_vm8, %v5548_v56 }
 0x54f   : > { %v4385_v12 = vpop.permute.xlu1 %4384 }
 0x550   : > { %v4381_v5 = vpop.permute.xlu0 %4380  ;;  %4012 = vmatmul.mubr.bf16.gmra.mxu0 %v5550_v35  ;;  %v4424_v18 = vsel %vm4404_vm0, %v4383_v52, %v4385_v12 }
 0x551   : > { %v4423_v62 = vsel %vm4404_vm0, %v4381_v5, %v4383_v52  ;;  %4473 = vmatprep.subr.bf16.mxu0 %v4424_v18  ;;  %5362 = vmatprep.mubr.msk.bf16.mxu0 %vm476_vm8, %v5551_v60 }
 0x552   : > { %4474 = vmatpush1.bf16.msra.mxu0 %v4423_v62 }
 0x553   : > { %v4395_v46 = vpop.permute.xlu1 %4394 }
 0x554   : > { %v4428_v49 = vsel %vm4404_vm0, %v4393_v6, %v4395_v46  ;;  %v4375_v34 = vpop.permute.xlu0 %4374 }
 0x555   : > { %4083 = vmatmul.mubr.bf16.gmra.mxu1 %v5550_v35 }
 0x556   : > { %4545 = vmatpush1.bf16.msra.mxu1 %v4428_v49  ;;  %5366 = vmatprep.mubr.msk.bf16.mxu1 %vm476_vm8, %v5551_v60 }
 0x557   : > { %v4377_v54 = vpop.permute.xlu1 %4376  ;;  %4546 = vmatprep.subr.bf16.mxu1 %v9264_v14 }
 0x558   : > { %v4373_v63 = vpop.permute.xlu0 %4372  ;;  %4022 = vmatmul.mubr.bf16.gmra.mxu0 %v5553_v40  ;;  %v4421_v32 = vsel %vm4404_vm0, %v4375_v34, %v4377_v54 }
 0x559   : > { %v4420_v41 = vsel %vm4404_vm0, %v4373_v63, %v4375_v34  ;;  %4475 = vmatprep.subr.bf16.mxu0 %v4421_v32  ;;  %5363 = vmatprep.mubr.msk.bf16.mxu0 %vm476_vm8, %v5554_v39 }
 0x55a   : > { %4476 = vmatpush1.bf16.msra.mxu0 %v4420_v41 }
 0x55b   : > { %v4387_v42 = vpop.permute.xlu1 %4386 }
 0x55c   : > { %v4425_v23 = vsel %vm4404_vm0, %v4385_v12, %v4387_v42  ;;  %v4367_v20 = vpop.permute.xlu0 %4366 }
 0x55d   : > { %4091 = vmatmul.mubr.bf16.gmra.mxu1 %v5553_v40 }
 0x55e   : > { %4547 = vmatpush1.bf16.msra.mxu1 %v4425_v23  ;;  %5367 = vmatprep.mubr.msk.bf16.mxu1 %vm476_vm8, %v5554_v39 }
 0x55f   : > { %v4369_v3 = vpop.permute.xlu1 %4368  ;;  %4548 = vmatprep.subr.bf16.mxu1 %v9264_v14 }
 0x560   : > { %v4365_v47 = vpop.permute.xlu0 %4364  ;;  %4032 = vmatmul.mubr.bf16.gmra.mxu0 %v5556_v11  ;;  %v4418_v51 = vsel %vm4404_vm0, %v4367_v20, %v4369_v3 }
 0x561   : > { %v4417_v55 = vsel %vm4404_vm0, %v4365_v47, %v4367_v20  ;;  %4477 = vmatprep.subr.bf16.mxu0 %v4418_v51  ;;  %5388 = vmatprep.mubr.msk.bf16.mxu0 %vm476_vm8, %v5559_v29 }
 0x562   : > { %4478 = vmatpush1.bf16.msra.mxu0 %v4417_v55 }
 0x563   : > { %v4379_v61 = vpop.permute.xlu1 %4378 }
 0x564   : > { %v4422_v56 = vsel %vm4404_vm0, %v4377_v54, %v4379_v61  ;;  %v4359_v50 = vpop.permute.xlu0 %4358  ;;  %v5557_v61 = vld [vmem:[%s9214_s1 + $0x200] ss:$8 sps:$4 sm:$0xff]  }
 0x565   : > { %4099 = vmatmul.mubr.bf16.gmra.mxu1 %v5556_v11 }
 0x566   : > { %4549 = vmatpush1.bf16.msra.mxu1 %v4422_v56  ;;  %5392 = vmatprep.mubr.msk.bf16.mxu1 %vm476_vm8, %v5559_v29 }
 0x567   : > { %v4361_v6 = vpop.permute.xlu1 %4360  ;;  %4550 = vmatprep.subr.bf16.mxu1 %v9264_v14 }
 0x568   : > { %v4357_v22 = vpop.permute.xlu0 %4356  ;;  %v4415_v21 = vsel %vm4404_vm0, %v4359_v50, %v4361_v6 }
 0x569   : > { %v4414_v16 = vsel %vm4404_vm0, %v4357_v22, %v4359_v50  ;;  %4479 = vmatprep.subr.bf16.mxu0 %v4415_v21  ;;  %v5560_v50 = vld [vmem:[%s9214_s1 + $0x214] ss:$8 sps:$4 sm:$0xff]   ;;  %v5565_v22 = vld [vmem:[%s9214_s1 + $0x220] ss:$8 sps:$4 sm:$0xff]  }
 0x56a   : > { %4480 = vmatpush1.bf16.msra.mxu0 %v4414_v16  ;;  %v5566_v21 = vld [vmem:[%s9214_s1 + $0x234] ss:$8 sps:$4 sm:$0xff]   ;;  %v5568_v16 = vld [vmem:[%s9214_s1 + $0x230] ss:$8 sps:$4 sm:$0xff]  }
 0x56b   : > { %v4371_v2 = vpop.permute.xlu1 %4370 }
 0x56c   : > { %v4419_v10 = vsel %vm4404_vm0, %v4369_v3, %v4371_v2  ;;  %v4351_v8 = vpop.permute.xlu0 %4350 }
 0x56d   : > { %4551 = vmatpush1.bf16.msra.mxu1 %v4419_v10 }
 0x56e   : > { %4552 = vmatprep.subr.bf16.mxu1 %v9264_v14 }
 0x56f   : > { %v4353_v13 = vpop.permute.xlu1 %4352 }
 0x570   : > { %v4349_v9 = vpop.permute.xlu0 %4348  ;;  %v4412_v52 = vsel %vm4404_vm0, %v4351_v8, %v4353_v13 }
 0x571   : > { %v4411_v35 = vsel %vm4404_vm0, %v4349_v9, %v4351_v8  ;;  %4481 = vmatprep.subr.bf16.mxu0 %v4412_v52 }
 0x572   : > { %4482 = vmatpush1.bf16.msra.mxu0 %v4411_v35 }
 0x573   : > { %v4363_v60 = vpop.permute.xlu1 %4362 }
 0x574   : > { %v4416_v33 = vsel %vm4404_vm0, %v4361_v6, %v4363_v60  ;;  %v4343_v12 = vpop.permute.xlu0 %4342  ;;  %v5563_v6 = vld [vmem:[%s9214_s1 + $0x224] ss:$8 sps:$4 sm:$0xff]  }
 0x575   : > { %4553 = vmatpush1.bf16.msra.mxu1 %v4416_v33 }
 0x576   : > { %4554 = vmatprep.subr.bf16.mxu1 %v9264_v14 }
 0x577   : > { %v4345_v5 = vpop.permute.xlu1 %4344 }
 0x578   : > { %v4341_v18 = vpop.permute.xlu0 %4340  ;;  %v4409_v62 = vsel %vm4404_vm0, %v4343_v12, %v4345_v5 }
 0x579   : > { %v4408_v46 = vsel %vm4404_vm0, %v4341_v18, %v4343_v12  ;;  %4483 = vmatprep.subr.bf16.mxu0 %v4409_v62 }
 0x57a   : > { %4484 = vmatpush1.bf16.msra.mxu0 %v4408_v46 }
 0x57b   : > { %v4355_v49 = vpop.permute.xlu1 %4354 }
 0x57c   : > { %v4413_v34 = vsel %vm4404_vm0, %v4353_v13, %v4355_v49  ;;  %v4335_v40 = vpop.permute.xlu0 %4334 }
 0x57d   : > { %4555 = vmatpush1.bf16.msra.mxu1 %v4413_v34 }
 0x57e   : > { %4556 = vmatprep.subr.bf16.mxu1 %v9264_v14 }
 0x57f   : > { %v4337_v39 = vpop.permute.xlu1 %4336 }
 0x580   : > { %v4333_v54 = vpop.permute.xlu0 %4332  ;;  %v4406_v63 = vsel %vm4404_vm0, %v4335_v40, %v4337_v39 }
 0x581   : > { %v4405_v32 = vsel %vm4404_vm0, %v4333_v54, %v4335_v40  ;;  %4485 = vmatprep.subr.bf16.mxu0 %v4406_v63 }
 0x582   : > { %4486 = vmatpush1.bf16.msra.mxu0 %v4405_v32  ;;  %v8907_v32 = vpop.f32.mrf.mxu0 }
 0x583   : > { %v4347_v41 = vpop.permute.xlu1 %4346  ;;  %9383 = vst [vmem:[#allocation49_spill] sm:$0xff] %v8907_v32 }
 0x584   : > { %v4410_v42 = vsel %vm4404_vm0, %v4345_v5, %v4347_v41  ;;  %v4399_v23 = vpop.permute.xlu0 %4398 }
 0x585   : > { %4557 = vmatpush1.bf16.msra.mxu1 %v4410_v42 }
 0x586   : > { %4558 = vmatprep.subr.bf16.mxu1 %v9264_v14 }
 0x587   : > { %v4401_v20 = vpop.permute.xlu1 %4400 }
 0x588   : > { %v4339_v11 = vpop.permute.xlu0 %4338  ;;  %v4430_v29 = vsel %vm4404_vm0, %v4399_v23, %v4401_v20 }
 0x589   : > { %v4407_v3 = vsel %vm4404_vm0, %v4337_v39, %v4339_v11  ;;  %4501 = vmatprep.subr.bf16.mxu0 %v4430_v29 }
 0x58a   : > { %4559 = vmatpush1.bf16.msra.mxu1 %v4407_v3 }
 0x58b   : > { %v4397_v47 = vpop.permute.xlu1 %4396  ;;  %4574 = vmatprep.subr.bf16.mxu1 %v9264_v14  ;;  %v5562_v14 = vld [vmem:[%s9214_s1 + $0x210] ss:$8 sps:$4 sm:$0xff]  }
 0x58c   : > { %v4429_v51 = vsel %vm4404_vm0, %v4397_v47, %v4399_v23  ;;  %v4403_v55 = vpop.permute.xlu0 %4402 }
 0x58d   : > { %v4431_v56 = vsel %vm4404_vm0, %v4401_v20, %v4403_v55  ;;  %4502 = vmatpush2.bf16.msra.mxu0 %v4429_v51 }
 0x58e   : > { %4575 = vmatpush2.bf16.msra.mxu1 %v4431_v56 }
 0x590   : > { %4504 = vmatmul.mubr.bf16.vlgmr.msra.gmra.mxu0 %v5557_v61 }
 0x591   : > { %4577 = vmatmul.mubr.bf16.vlgmr.msra.gmra.mxu1 %v5557_v61  ;;  %5389 = vmatprep.mubr.msk.bf16.mxu0 %vm476_vm8, %v5560_v50 }
 0x592   : > { %5393 = vmatprep.mubr.msk.bf16.mxu1 %vm476_vm8, %v5560_v50 }
 0x598   : > { %4514 = vmatmul.mubr.bf16.gmra.mxu0 %v5562_v14 }
 0x599   : > { %4585 = vmatmul.mubr.bf16.gmra.mxu1 %v5562_v14  ;;  %5390 = vmatprep.mubr.msk.bf16.mxu0 %vm476_vm8, %v5563_v6 }
 0x59a   : > { %5394 = vmatprep.mubr.msk.bf16.mxu1 %vm476_vm8, %v5563_v6 }
 0x5a0   : > { %4524 = vmatmul.mubr.bf16.gmra.mxu0 %v5565_v22 }
 0x5a1   : > { %4593 = vmatmul.mubr.bf16.gmra.mxu1 %v5565_v22  ;;  %5391 = vmatprep.mubr.msk.bf16.mxu0 %vm476_vm8, %v5566_v21 }
 0x5a2   : > { %5395 = vmatprep.mubr.msk.bf16.mxu1 %vm476_vm8, %v5566_v21 }
 0x5a8   : > { %4534 = vmatmul.mubr.bf16.gmra.mxu0 %v5568_v16 }
 0x5a9   : > { %4601 = vmatmul.mubr.bf16.gmra.mxu1 %v5568_v16 }
 0x5b5   : > { %v3574_v2 = vpop.f32.mrf.mxu1 }
 0x5b6   : > { %v3631_v10 = vadd.f32 %v3574_v2, %v8745_v7 }
 0x5b7   : > { %v3576_v8 = vpop.f32.mrf.mxu1 }
 0x5b9   : > { %v3577_v13 = vpop.f32.mrf.mxu1 }
 0x5ba   : > { %v3634_v9 = vadd.f32 %v3577_v13, %v8756_v1 }
 0x5bb   : > { %v3579_v52 = vpop.f32.mrf.mxu1 }
 0x5bd   : > { %v3582_v35 = vpop.f32.mrf.mxu1 }
 0x5be   : > { %v3637_v60 = vadd.f32 %v3582_v35, %v8767_v28 }
 0x5bf   : > { %v3584_v33 = vpop.f32.mrf.mxu1 }
 0x5c1   : > { %v3585_v12 = vpop.f32.mrf.mxu1 }
 0x5c2   : > { %v3640_v5 = vadd.f32 %v3585_v12, %v8778_v36  ;;  %v3501_v36 = vpop.f32.mrf.mxu0 }
 0x5c3   : > { %v3587_v18 = vpop.f32.mrf.mxu1 }
 0x5c4   : > { %v3503_v42 = vpop.f32.mrf.mxu0 }
 0x5c5   : > { %v3590_v62 = vpop.f32.mrf.mxu1 }
 0x5c6   : > { %v3643_v46 = vadd.f32 %v3590_v62, %v8790_v53  ;;  %v8910_v23 = vpop.f32.mrf.mxu0 }
 0x5c7   : > { %v3592_v49 = vpop.f32.mrf.mxu1 }
 0x5c8   : > { %v8912_v53 = vpop.f32.mrf.mxu0 }
 0x5c9   : > { %v3593_v34 = vpop.f32.mrf.mxu1  ;;  %v3633_v45 = vadd.f32 %v8912_v53, %v8729_v15 }
 0x5ca   : > { %v3646_v7 = vadd.f32 %v3593_v34, %v8799_v24  ;;  %v8914_v20 = vpop.f32.mrf.mxu0 }
 0x5cb   : > { %v3595_v40 = vpop.f32.mrf.mxu1 }
 0x5cc   : > { %v8916_v24 = vpop.f32.mrf.mxu0 }
 0x5cd   : > { %v3598_v39 = vpop.f32.mrf.mxu1 }
 0x5ce   : > { %v3649_v1 = vadd.f32 %v3598_v39, %v8806_v43  ;;  %v8918_v11 = vpop.f32.mrf.mxu0 }
 0x5cf   : > { %v3600_v54 = vpop.f32.mrf.mxu1 }
 0x5d0   : > { %v8920_v43 = vpop.f32.mrf.mxu0 }
 0x5d1   : > { %v3601_v63 = vpop.f32.mrf.mxu1 }
 0x5d2   : > { %v3652_v28 = vadd.f32 %v3601_v63, %v8816_v27  ;;  %v8922_v29 = vpop.f32.mrf.mxu0 }
 0x5d3   : > { %v3603_v41 = vpop.f32.mrf.mxu1 }
 0x5d4   : > { %v8924_v3 = vpop.f32.mrf.mxu0 }
 0x5d6   : > { %v8926_v27 = vpop.f32.mrf.mxu0 }
 0x5d8   : > { %v8928_v47 = vpop.f32.mrf.mxu0 }
 0x5da   : > { %v8930_v51 = vpop.f32.mrf.mxu0 }
 0x5dc   : > { %v8932_v55 = vpop.f32.mrf.mxu0 }
 0x5de   : > { %v8934_v61 = vpop.f32.mrf.mxu0 }
 0x5df   : > { %9384 = vst [vmem:[#allocation10_spill] sm:$0xff] %v8934_v61 }
 0x5e0   : > { %v8936_v6 = vpop.f32.mrf.mxu0 }
 0x5e1   : > { %9385 = vst [vmem:[#allocation30_spill] sm:$0xff] %v8936_v6 }
 0x608   : > { %v4003_v21 = vpop.f32.mrf.mxu0 }
 0x60a   : > { %v4005_v13 = vpop.f32.mrf.mxu0 }
 0x60c   : > { %v4007_v12 = vpop.f32.mrf.mxu0 }
 0x60d   : > { %v4076_v56 = vpop.f32.mrf.mxu1 }
 0x60e   : > { %v4133_v50 = vadd.f32 %v4076_v56, %v3631_v10  ;;  %v4009_v10 = vpop.f32.mrf.mxu0 }
 0x60f   : > { %v4078_v14 = vpop.f32.mrf.mxu1 }
 0x610   : > { %v4013_v54 = vpop.f32.mrf.mxu0 }
 0x611   : > { %v4079_v22 = vpop.f32.mrf.mxu1 }
 0x612   : > { %v8938_v16 = vadd.f32 %v4079_v22, %v3634_v9  ;;  %v4015_v56 = vpop.f32.mrf.mxu0 }
 0x613   : > { %v4081_v2 = vpop.f32.mrf.mxu1 }
 0x614   : > { %v4017_v2 = vpop.f32.mrf.mxu0 }
 0x615   : > { %v4084_v8 = vpop.f32.mrf.mxu1 }
 0x616   : > { %v8940_v52 = vadd.f32 %v4084_v8, %v3637_v60 }
 0x617   : > { %v4086_v35 = vpop.f32.mrf.mxu1 }
 0x618   : > { %v8952_v35 = vpop.f32.mrf.mxu0 }
 0x619   : > { %v4087_v33 = vpop.f32.mrf.mxu1 }
 0x61a   : > { %v8942_v18 = vadd.f32 %v4087_v33, %v3640_v5 }
 0x61b   : > { %v4089_v62 = vpop.f32.mrf.mxu1 }
 0x61d   : > { %v4092_v49 = vpop.f32.mrf.mxu1 }
 0x61e   : > { %v8944_v34 = vadd.f32 %v4092_v49, %v3643_v46  ;;  %v8954_v46 = vpop.f32.mrf.mxu0 }
 0x61f   : > { %v4094_v40 = vpop.f32.mrf.mxu1 }
 0x620   : > { %v8956_v33 = vpop.f32.mrf.mxu0 }
 0x621   : > { %v4095_v39 = vpop.f32.mrf.mxu1 }
 0x622   : > { %v8946_v9 = vadd.f32 %v4095_v39, %v3646_v7  ;;  %v8958_v62 = vpop.f32.mrf.mxu0 }
 0x623   : > { %v4097_v63 = vpop.f32.mrf.mxu1 }
 0x624   : > { %v8960_v7 = vpop.f32.mrf.mxu0 }
 0x625   : > { %v4100_v41 = vpop.f32.mrf.mxu1 }
 0x626   : > { %v8948_v60 = vadd.f32 %v4100_v41, %v3649_v1  ;;  %v8962_v49 = vpop.f32.mrf.mxu0  ;;  %v4696_v1 = vlaneseq }
 0x627   : > { %v4102_v14 = vpop.f32.mrf.mxu1 }
 0x628   : > { %9386 = vst [vmem:[#allocation50_spill] sm:$0xff] %v8948_v60  ;;  %v8964_v40 = vpop.f32.mrf.mxu0  ;;  %v4697_v39 = vshrl.u32 %v4696_v1, 7  ;;  %v3632_v1 = vadd.f32 %v8910_v23, %v8725_v26 }
 0x629   : > { %v4103_v22 = vpop.f32.mrf.mxu1  ;;  %9388 = vst [vmem:[#allocation31_spill] sm:$0xff] %v8964_v40 }
 0x62a   : > { %v8950_v5 = vadd.f32 %v4103_v22, %v3652_v28  ;;  %v8966_v63 = vpop.f32.mrf.mxu0  ;;  %v3629_v28 = vadd.f32 %v3501_v36, %v8718_v17  ;;  %v8969_v41 = vsub.s32 0, %v4697_v39  ;;  %v4702_v14 = vsub.s32 1, %v4697_v39 }
 0x62b   : > { %v4105_v8 = vpop.f32.mrf.mxu1  ;;  %9389 = vst [vmem:[#allocation13_spill] sm:$0xff] %v8966_v63  ;;  %v4706_v6 = vsub.s32 2, %v4697_v39 }
 0x62c   : > { %9387 = vst [vmem:[#allocation11_spill] sm:$0xff] %v8950_v5  ;;  %v8971_v22 = vpop.f32.mrf.mxu0  ;;  %v4681_v8 = vld [vmem:[%s9215_s2] sm:$0x7]  ;;  %v3630_v5 = vadd.f32 %v3503_v42, %v8721_v48  ;;  %v4131_v60 = vadd.f32 %v4003_v21, %v3629_v28  ;;  %v4134_v48 = vadd.f32 %v4007_v12, %v3632_v1  ;;  %v3639_v1 = vadd.f32 %v8920_v43, %v8748_v38 }
 0x62d   : > { %9390 = vst [vmem:[#allocation33_spill] sm:$0xff] %v8971_v22  ;;  %v8982_v36 = vrot.slane %v4681_v8, %v8969_v41  ;;  %v8984_v22 = vrot.slane %v4681_v8, %v4702_v14  ;;  %v8992_v23 = vrot.slane %v4681_v8, %v4706_v6 }
 0x62e   : > { %v4132_v63 = vadd.f32 %v4005_v13, %v3630_v5  ;;  %v3635_v13 = vadd.f32 %v8914_v20, %v8734_v59  ;;  %v4135_v5 = vadd.f32 %v4009_v10, %v3633_v45 }
 0x650   : > { %v4505_v40 = vpop.f32.mrf.mxu0 }
 0x651   : > { %v8979_v61 = vadd.f32 %v4505_v40, %v4131_v60  ;;  %v4578_v17 = vpop.f32.mrf.mxu1 }
 0x652   : > { %v4507_v32 = vpop.f32.mrf.mxu0  ;;  %v8988_v42 = vadd.f32 %v4578_v17, %v4133_v50  ;;  %v4137_v50 = vadd.f32 %v4013_v54, %v3635_v13 }
 0x653   : > { %v8990_v21 = vadd.f32 %v4507_v32, %v4132_v63  ;;  %v4580_v26 = vpop.f32.mrf.mxu1  ;;  %v4711_v15 = vmul.f32 %v8982_v36, %v8979_v61  ;;  %v3636_v32 = vadd.f32 %v8916_v24, %v8737_v0  ;;  %v3638_v63 = vadd.f32 %v8918_v11, %v8741_v44 }
 0x654   : > { %v4509_v60 = vpop.f32.mrf.mxu0  ;;  %v4713_v20 = vmul.f32 %v8992_v23, %v8988_v42 }
 0x655   : > { %v8996_v40 = vadd.f32 %v4509_v60, %v4134_v48  ;;  %v4581_v39 = vpop.f32.mrf.mxu1  ;;  %v4712_v53 = vmul.f32 %v8984_v22, %v8990_v21  ;;  %v4138_v28 = vadd.f32 %v4015_v56, %v3636_v32  ;;  %v4140_v17 = vadd.f32 %v4017_v2, %v3638_v63 }
 0x656   : > { %v4511_v6 = vpop.f32.mrf.mxu0  ;;  %v9005_v12 = vadd.f32 %v4581_v39, %v8938_v16  ;;  %v3641_v60 = vadd.f32 %v8922_v29, %v8753_v30 }
 0x657   : > { %v9007_v59 = vadd.f32 %v4511_v6, %v4135_v5  ;;  %v4583_v45 = vpop.f32.mrf.mxu1  ;;  %v4717_v10 = vadd.f32 %v4712_v53, %v4711_v15  ;;  %v4714_v16 = vmul.f32 %v8982_v36, %v8996_v40  ;;  %v4141_v5 = vadd.f32 %v8952_v35, %v3639_v1 }
 0x658   : > { %v4515_v14 = vpop.f32.mrf.mxu0  ;;  %v4716_v56 = vmul.f32 %v8992_v23, %v9005_v12  ;;  %v3642_v53 = vadd.f32 %v8924_v3, %v8760_v19  ;;  %v4143_v32 = vadd.f32 %v8954_v46, %v3641_v60  ;;  %v2633_v1 = vadd.f32 %v8712_v57, %v8400_v4 }
 0x659   : > { %v9013_v8 = vadd.f32 %v4515_v14, %v4137_v50  ;;  %v4586_v0 = vpop.f32.mrf.mxu1  ;;  %v4718_v24 = vadd.f32 %v4717_v10, %v4713_v20  ;;  %v4715_v54 = vmul.f32 %v8984_v22, %v9007_v59  ;;  %v3644_v20 = vadd.f32 %v8926_v27, %v8764_v58 }
 0x65a   : > { %v4517_v48 = vpop.f32.mrf.mxu0  ;;  %v9022_v26 = vadd.f32 %v4586_v0, %v8940_v52  ;;  %v4144_v10 = vadd.f32 %v8956_v33, %v3642_v53  ;;  %v3645_v14 = vadd.f32 %v8928_v47, %v8771_v31  ;;  %v3647_v31 = vadd.f32 %v8930_v51, %v8775_v25 }
 0x65b   : > { %v9024_v44 = vadd.f32 %v4517_v48, %v4138_v28  ;;  %v4588_v11 = vpop.f32.mrf.mxu1  ;;  %4719 = vadd.xlane.f32.xlu1 %v4718_v24  ;;  %v4721_v13 = vadd.f32 %v4715_v54, %v4714_v16  ;;  %v4769_v52 = vmul.f32 %v8982_v36, %v9013_v8  ;;  %v4146_v0 = vadd.f32 %v8958_v62, %v3644_v20  ;;  %v9396_v20 = vld [vmem:[#allocation13_spill] sm:$0xff] }
 0x65c   : > { %v4519_v39 = vpop.f32.mrf.mxu0  ;;  %v4771_v6 = vmul.f32 %v8992_v23, %v9022_v26  ;;  %v4147_v47 = vadd.f32 %v8960_v7, %v3645_v14  ;;  %v4149_v4 = vadd.f32 %v8962_v49, %v3647_v31 }
 0x65d   : > { %v9031_v38 = vadd.f32 %v4519_v39, %v4140_v17  ;;  %v4589_v43 = vpop.f32.mrf.mxu1  ;;  %v4722_v2 = vadd.f32 %v4721_v13, %v4716_v56  ;;  %v4770_v15 = vmul.f32 %v8984_v22, %v9024_v44  ;;  %v3648_v13 = vadd.f32 %v8932_v55, %v8782_v37  ;;  %v9391_v39 = vld [vmem:[#allocation49_spill] sm:$0xff]  ;;  %v9394_v37 = vld [vmem:[#allocation31_spill] sm:$0xff] }
 0x65e   : > { %v4521_v50 = vpop.f32.mrf.mxu0  ;;  %v9041_v30 = vadd.f32 %v4589_v43, %v8942_v18  ;;  %v3149_v43 = vadd.f32 %v9391_v39, %v2633_v1 }
 0x65f   : > { %v9043_v29 = vadd.f32 %v4521_v50, %v4141_v5  ;;  %v4591_v35 = vpop.f32.mrf.mxu1  ;;  %4723 = vadd.xlane.f32.xlu0 %v4722_v2  ;;  %v4775_v45 = vadd.f32 %v4770_v15, %v4769_v52  ;;  %v4772_v18 = vmul.f32 %v8982_v36, %v9031_v38  ;;  %v9392_v2 = vld [vmem:[#allocation48_spill] sm:$0xff]  ;;  %v9393_v52 = vld [vmem:[#allocation10_spill] sm:$0xff]  ;;  %v4150_v55 = vadd.f32 %v9394_v37, %v3648_v13 }
 0x660   : > { %v4525_v19 = vpop.f32.mrf.mxu0  ;;  %v4774_v16 = vmul.f32 %v8992_v23, %v9041_v30  ;;  %v3650_v15 = vadd.f32 %v9393_v52, %v9392_v2  ;;  %v4682_v37 = vld [vmem:[%s9216_s3] sm:$0xff] }
 0x661   : > { %v9050_v3 = vadd.f32 %v4525_v19, %v4143_v32  ;;  %v4594_v46 = vpop.f32.mrf.mxu1  ;;  %v4776_v63 = vadd.f32 %v4775_v45, %v4771_v6  ;;  %v4773_v28 = vmul.f32 %v8984_v22, %v9043_v29  ;;  %v9395_v6 = vld [vmem:[#allocation30_spill] sm:$0xff] }
 0x662   : > { %v4527_v24 = vpop.f32.mrf.mxu0  ;;  %v9060_v58 = vadd.f32 %v4594_v46, %v8944_v34  ;;  %v3651_v45 = vadd.f32 %v9395_v6, %v3149_v43  ;;  %v9397_v46 = vld [vmem:[#allocation50_spill] sm:$0xff] }
 0x663   : > { %v9062_v27 = vadd.f32 %v4527_v24, %v4144_v10  ;;  %v4596_v33 = vpop.f32.mrf.mxu1  ;;  %4777 = vadd.xlane.f32.xlu0 %v4776_v63  ;;  %v4779_v54 = vadd.f32 %v4773_v28, %v4772_v18  ;;  %v4826_v11 = vmul.f32 %v8982_v36, %v9050_v3  ;;  %v4152_v10 = vadd.f32 %v9396_v20, %v3650_v15  ;;  %v9398_v24 = vld [vmem:[#allocation33_spill] sm:$0xff] }
 0x664   : > { %v4529_v62 = vpop.f32.mrf.mxu0  ;;  %v4828_v60 = vmul.f32 %v8992_v23, %v9060_v58  ;;  %v4153_v33 = vadd.f32 %v9398_v24, %v3651_v45 }
 0x665   : > { %v9071_v17 = vadd.f32 %v4529_v62, %v4146_v0  ;;  %v4597_v34 = vpop.f32.mrf.mxu1  ;;  %v4780_v48 = vadd.f32 %v4779_v54, %v4774_v16  ;;  %v4827_v56 = vmul.f32 %v8984_v22, %v9062_v27 }
 0x666   : > { %v4531_v57 = vpop.f32.mrf.mxu0  ;;  %v9081_v25 = vadd.f32 %v4597_v34, %v8946_v9 }
 0x667   : > { %v9083_v51 = vadd.f32 %v4531_v57, %v4147_v47  ;;  %v4599_v7 = vpop.f32.mrf.mxu1  ;;  %4781 = vadd.xlane.f32.xlu1 %v4780_v48  ;;  %v4832_v5 = vadd.f32 %v4827_v56, %v4826_v11  ;;  %v4829_v50 = vmul.f32 %v8982_v36, %v9071_v17  ;;  %v9399_v48 = vld [vmem:[#allocation11_spill] sm:$0xff] }
 0x668   : > { %v4535_v49 = vpop.f32.mrf.mxu0  ;;  %v4831_v14 = vmul.f32 %v8992_v23, %v9081_v25 }
 0x669   : > { %v9091_v53 = vadd.f32 %v4535_v49, %v4149_v4  ;;  %v4602_v9 = vpop.f32.mrf.mxu1  ;;  %v4833_v32 = vadd.f32 %v4832_v5, %v4828_v60  ;;  %v4830_v35 = vmul.f32 %v8984_v22, %v9083_v51 }
 0x66a   : > { %v4537_v19 = vpop.f32.mrf.mxu0  ;;  %v9100_v63 = vadd.f32 %v4602_v9, %v9397_v46 }
 0x66b   : > { %v9102_v18 = vadd.f32 %v4537_v19, %v4150_v55  ;;  %v4604_v28 = vpop.f32.mrf.mxu1  ;;  %4834 = vadd.xlane.f32.xlu0 %v4833_v32  ;;  %v4836_v0 = vadd.f32 %v4830_v35, %v4829_v50  ;;  %v4883_v47 = vmul.f32 %v8982_v36, %v9091_v53 }
 0x66c   : > { %v4539_v16 = vpop.f32.mrf.mxu0  ;;  %v4885_v4 = vmul.f32 %v8992_v23, %v9100_v63 }
 0x66d   : > { %v9107_v54 = vadd.f32 %v4539_v16, %v4152_v10  ;;  %v4605_v1 = vpop.f32.mrf.mxu1  ;;  %v4837_v31 = vadd.f32 %v4836_v0, %v4831_v14  ;;  %v4884_v62 = vmul.f32 %v8984_v22, %v9102_v18 }
 0x66e   : > { %v4541_v34 = vpop.f32.mrf.mxu0  ;;  %v9114_v11 = vadd.f32 %v4605_v1, %v9399_v48 }
 0x66f   : > { %v9116_v56 = vadd.f32 %v4541_v34, %v4153_v33  ;;  %v4607_v13 = vpop.f32.mrf.mxu1  ;;  %4838 = vadd.xlane.f32.xlu1 %v4837_v31  ;;  %v4889_v57 = vadd.f32 %v4884_v62, %v4883_v47  ;;  %v4886_v60 = vmul.f32 %v8982_v36, %v9107_v54  ;;  %v4683_v36 = vld [vmem:[%s9216_s3 + $0x8] sm:$0xff] }
 0x670   : > { %v4888_v39 = vmul.f32 %v8992_v23, %v9114_v11 }
 0x671   : > { %v4890_v7 = vadd.f32 %v4889_v57, %v4885_v4  ;;  %v4887_v5 = vmul.f32 %v8984_v22, %v9116_v56 }
 0x673   : > { %4891 = vadd.xlane.f32.xlu0 %v4890_v7  ;;  %v4893_v43 = vadd.f32 %v4887_v5, %v4886_v60 }
 0x675   : > { %v4894_v2 = vadd.f32 %v4893_v43, %v4888_v39  ;;  %v4684_v39 = vld [vmem:[#allocation2] sm:$0x1] }
 0x677   : > { %4895 = vadd.xlane.f32.xlu1 %v4894_v2 }
 0x6e4   : > { %v4720_v52 = vpop.xlane.xlu1 %4719 }
 0x6e5   : > { %v4725_v15 = vmul.f32 0.00390625, %v4720_v52 }
 0x6e7   : > { %v4727_v49 = vmul.f32 %v4725_v15, %v4682_v37 }
 0x6e8   : > { %v4724_v55 = vpop.xlane.xlu0 %4723 }
 0x6e9   : > { %v4726_v22 = vmul.f32 0.00390625, %v4724_v55  ;;  %v4730_v23 = vsel %vm4729_vm1, %v4727_v49, 0.0 }
 0x6eb   : > { %v4728_v9 = vmul.f32 %v4726_v22, %v4683_v36 }
 0x6ec   : > { %v4778_v32 = vpop.xlane.xlu0 %4777 }
 0x6ed   : > { %v4731_v50 = vsel %vm4729_vm1, %v4728_v9, 0.0  ;;  %v4783_v35 = vmul.f32 0.00390625, %v4778_v32 }
 0x6ee   : > { %v4732_v6 = vadd.f32 %v4731_v50, %v4730_v23 }
 0x6ef   : > { %v4785_v10 = vmul.f32 %v4783_v35, %v4682_v37 }
 0x6f0   : > { %v4733_v45 = vrot.slane %v4732_v6, 4  ;;  %v4782_v20 = vpop.xlane.xlu1 %4781 }
 0x6f1   : > { %v4784_v19 = vmul.f32 0.00390625, %v4782_v20  ;;  %v4787_v24 = vsel %vm4729_vm1, %v4785_v10, 0.0 }
 0x6f2   : > { %v4734_v46 = vadd.f32 %v4733_v45, %v4732_v6 }
 0x6f3   : > { %v4786_v28 = vmul.f32 %v4784_v19, %v4683_v36 }
 0x6f4   : > { %v4735_v14 = vrot.slane %v4734_v46, 2  ;;  %v4835_v0 = vpop.xlane.xlu0 %4834 }
 0x6f5   : > { %v4788_v33 = vsel %vm4729_vm1, %v4786_v28, 0.0  ;;  %v4840_v16 = vmul.f32 0.00390625, %v4835_v0 }
 0x6f6   : > { %v4736_v1 = vadd.f32 %v4735_v14, %v4734_v46  ;;  %v4789_v31 = vadd.f32 %v4788_v33, %v4787_v24 }
 0x6f7   : > { %v4842_v48 = vmul.f32 %v4840_v16, %v4682_v37 }
 0x6f8   : > { %v4737_v47 = vrot.slane %v4736_v1, 1  ;;  %v4790_v62 = vrot.slane %v4789_v31, 4  ;;  %v4839_v34 = vpop.xlane.xlu1 %4838 }
 0x6f9   : > { %v4841_v13 = vmul.f32 0.00390625, %v4839_v34  ;;  %v4844_v43 = vsel %vm4729_vm1, %v4842_v48, 0.0 }
 0x6fa   : > { %v4791_v4 = vadd.f32 %v4790_v62, %v4789_v31  ;;  %v4738_v7 = vadd.f32 %v4737_v47, %v4736_v1  ;;  %v4685_v1 = vld [vmem:[%s9218_s5] sm:$0xff] }
 0x6fb   : > { %v4843_v57 = vmul.f32 %v4841_v13, %v4683_v36  ;;  %v4687_v13 = vld [vmem:[%s9219_s6] sm:$0xff] }
 0x6fc   : > { %v4792_v60 = vrot.slane %v4791_v4, 2  ;;  %v4892_v5 = vpop.xlane.xlu0 %4891  ;;  %v4739_v49 = vadd.f32 %v4738_v7, %v4684_v39  ;;  %v4688_v7 = vld [vmem:[%s9219_s6 + $0x8] sm:$0xff] }
 0x6fd   : > { %v4845_v2 = vsel %vm4729_vm1, %v4843_v57, 0.0  ;;  %v4897_v55 = vmul.f32 0.00390625, %v4892_v5 }
 0x6fe   : > { %v4793_v52 = vadd.f32 %v4792_v60, %v4791_v4  ;;  %v4846_v15 = vadd.f32 %v4845_v2, %v4844_v43  ;;  %v4740_v20 = vmax.f32 %v4739_v49, 0.0 }
 0x6ff   : > { %v4899_v6 = vmul.f32 %v4897_v55, %v4682_v37  ;;  %v4686_v37 = vld [vmem:[%s9218_s5 + $0x8] sm:$0xff] }
 0x700   : > { %v4794_v22 = vrot.slane %v4793_v52, 1  ;;  %v4847_v9 = vrot.slane %v4846_v15, 4  ;;  %v4896_v32 = vpop.xlane.xlu1 %4895  ;;  %v4744_v33 = vrot.slane %v4740_v20, %v8969_v41 }
 0x701   : > { %v4898_v23 = vmul.f32 0.00390625, %v4896_v32  ;;  %v4901_v0 = vsel %vm4729_vm1, %v4899_v6, 0.0 }
 0x702   : > { %v4795_v50 = vadd.f32 %v4794_v22, %v4793_v52  ;;  %v4848_v35 = vadd.f32 %v4847_v9, %v4846_v15  ;;  %v4745_v34 = vmul.f32 %v4744_v33, %v4685_v1  ;;  %v4746_v4 = vmul.f32 %v4744_v33, %v4686_v37 }
 0x703   : > { %v4900_v45 = vmul.f32 %v4898_v23, %v4683_v36 }
 0x704   : > { %v4796_v10 = vadd.f32 %v4795_v50, %v4684_v39  ;;  %v4849_v19 = vrot.slane %v4848_v35, 2  ;;  %v4749_v52 = vadd.f32 %v4745_v34, %v4687_v13  ;;  %v4750_v55 = vadd.f32 %v4746_v4, %v4688_v7 }
 0x705   : > { %v4902_v46 = vsel %vm4729_vm1, %v4900_v45, 0.0 }
 0x706   : > { %v4797_v28 = vmax.f32 %v4796_v10, 0.0  ;;  %v4850_v14 = vadd.f32 %v4849_v19, %v4848_v35  ;;  %v4903_v24 = vadd.f32 %v4902_v46, %v4901_v0  ;;  %v5396_v35 = vmul.f32 -1.442695, %v4749_v52 }
 0x707   : > { %v5397_v45 = vmul.f32 -1.442695, %v4750_v55 }
 0x708   : > { %v4851_v16 = vrot.slane %v4850_v14, 1  ;;  %v4904_v31 = vrot.slane %v4903_v24, 4  ;;  %v4801_v36 = vrot.slane %v4797_v28, %v8969_v41  ;;  %5569 = vpow2.f32 %v5396_v35 }
 0x709   : > { %5571 = vpow2.f32 %v5397_v45 }
 0x70a   : > { %v4852_v47 = vadd.f32 %v4851_v16, %v4850_v14  ;;  %v4905_v62 = vadd.f32 %v4904_v31, %v4903_v24  ;;  %v4802_v60 = vmul.f32 %v4801_v36, %v4685_v1  ;;  %v4803_v43 = vmul.f32 %v4801_v36, %v4686_v37 }
 0x70c   : > { %v4853_v48 = vadd.f32 %v4852_v47, %v4684_v39  ;;  %v4906_v57 = vrot.slane %v4905_v62, 2  ;;  %v4806_v22 = vadd.f32 %v4802_v60, %v4687_v13  ;;  %v4807_v23 = vadd.f32 %v4803_v43, %v4688_v7 }
 0x70e   : > { %v4854_v5 = vmax.f32 %v4853_v48, 0.0  ;;  %v4907_v2 = vadd.f32 %v4906_v57, %v4905_v62  ;;  %v5398_v19 = vmul.f32 -1.442695, %v4806_v22  ;;  %v5399_v46 = vmul.f32 -1.442695, %v4807_v23 }
 0x710   : > { %v4858_v15 = vrot.slane %v4854_v5, %v8969_v41  ;;  %v4908_v49 = vrot.slane %v4907_v2, 1  ;;  %5573 = vpow2.f32 %v5398_v19 }
 0x711   : > { %5575 = vpow2.f32 %v5399_v46 }
 0x712   : > { %v4859_v9 = vmul.f32 %v4858_v15, %v4685_v1  ;;  %v4860_v32 = vmul.f32 %v4858_v15, %v4686_v37  ;;  %v4909_v50 = vadd.f32 %v4908_v49, %v4907_v2 }
 0x714   : > { %v4863_v6 = vadd.f32 %v4859_v9, %v4687_v13  ;;  %v4864_v20 = vadd.f32 %v4860_v32, %v4688_v7  ;;  %v4910_v10 = vadd.f32 %v4909_v50, %v4684_v39 }
 0x715   : > { %v5570_v39 = vpop.eup %5569 }
 0x716   : > { %v4911_v28 = vmax.f32 %v4910_v10, 0.0  ;;  %v5400_v14 = vmul.f32 -1.442695, %v4863_v6  ;;  %v5401_v0 = vmul.f32 -1.442695, %v4864_v20  ;;  %v5572_v34 = vpop.eup %5571  ;;  %v4757_v57 = vadd.f32 1.0, %v5570_v39 }
 0x717   : > { %v4758_v5 = vadd.f32 1.0, %v5572_v34 }
 0x718   : > { %v4915_v24 = vrot.slane %v4911_v28, %v8969_v41  ;;  %5577 = vpow2.f32 %v5400_v14 }
 0x719   : > { %5579 = vpow2.f32 %v5401_v0 }
 0x71a   : > { %v4916_v33 = vmul.f32 %v4915_v24, %v4685_v1  ;;  %v4917_v16 = vmul.f32 %v4915_v24, %v4686_v37 }
 0x71c   : > { %v4920_v31 = vadd.f32 %v4916_v33, %v4687_v13  ;;  %v4921_v36 = vadd.f32 %v4917_v16, %v4688_v7 }
 0x71d   : > { %v5574_v48 = vpop.eup %5573 }
 0x71e   : > { %v5402_v47 = vmul.f32 -1.442695, %v4920_v31  ;;  %v5403_v62 = vmul.f32 -1.442695, %v4921_v36  ;;  %v5576_v4 = vpop.eup %5575  ;;  %v4814_v43 = vadd.f32 1.0, %v5574_v48 }
 0x71f   : > { %v4815_v2 = vadd.f32 1.0, %v5576_v4 }
 0x720   : > { %5581 = vpow2.f32 %v5402_v47 }
 0x721   : > { %5583 = vpow2.f32 %v5403_v62 }
 0x722   : > { %5585 = vrcp.f32 %v4757_v57 }
 0x723   : > { %5587 = vrcp.f32 %v4758_v5 }
 0x724   : > { %5589 = vrcp.f32 %v4814_v43 }
 0x725   : > { %v5578_v60 = vpop.eup %5577  ;;  %5591 = vrcp.f32 %v4815_v2 }
 0x726   : > { %v5580_v41 = vpop.eup %5579  ;;  %v4871_v1 = vadd.f32 1.0, %v5578_v60 }
 0x727   : > { %v4872_v37 = vadd.f32 1.0, %v5580_v41 }
 0x728   : > { %5593 = vrcp.f32 %v4871_v1 }
 0x729   : > { %5595 = vrcp.f32 %v4872_v37 }
 0x72d   : > { %v5582_v13 = vpop.eup %5581 }
 0x72e   : > { %v5584_v7 = vpop.eup %5583  ;;  %v4928_v52 = vadd.f32 1.0, %v5582_v13 }
 0x72f   : > { %v4929_v15 = vadd.f32 1.0, %v5584_v7  ;;  %v5586_v55 = vpop.eup %5585 }
 0x730   : > { %5597 = vrcp.f32 %v4928_v52  ;;  %v5588_v49 = vpop.eup %5587 }
 0x731   : > { %5599 = vrcp.f32 %v4929_v15  ;;  %v5590_v22 = vpop.eup %5589 }
 0x732   : > { %v5592_v9 = vpop.eup %5591  ;;  %v4934_v6 = vmax.f32 %v5586_v55, %v5590_v22 }
 0x733   : > { %v4935_v20 = vmax.f32 %v5588_v49, %v5592_v9 }
 0x735   : > { %v5594_v32 = vpop.eup %5593 }
 0x736   : > { %v5596_v23 = vpop.eup %5595 }
 0x73d   : > { %v5598_v50 = vpop.eup %5597 }
 0x73e   : > { %v5600_v35 = vpop.eup %5599  ;;  %v4936_v45 = vmax.f32 %v5594_v32, %v5598_v50 }
 0x73f   : > { %v4937_v10 = vmax.f32 %v5596_v23, %v5600_v35 }
 0x740   : > { %v4938_v19 = vmax.f32 %v4934_v6, %v4936_v45 }
 0x741   : > { %v4939_v46 = vmax.f32 %v4935_v20, %v4937_v10 }
 0x742   : > { %v4940_v28 = vsub.f32 %v5586_v55, %v4938_v19  ;;  %v4946_v33 = vsub.f32 %v5590_v22, %v4938_v19  ;;  %v4952_v62 = vsub.f32 %v5594_v32, %v4938_v19  ;;  %v4958_v48 = vsub.f32 %v5598_v50, %v4938_v19 }
 0x743   : > { %v4941_v14 = vsub.f32 %v5588_v49, %v4939_v46  ;;  %v4947_v0 = vsub.f32 %v5592_v9, %v4939_v46  ;;  %v4953_v24 = vsub.f32 %v5596_v23, %v4939_v46  ;;  %v4959_v16 = vsub.f32 %v5600_v35, %v4939_v46 }
 0x744   : > { %v4942_v47 = vmul.f32 1.442695, %v4940_v28  ;;  %v4948_v34 = vmul.f32 1.442695, %v4946_v33  ;;  %v4954_v57 = vmul.f32 1.442695, %v4952_v62 }
 0x745   : > { %v4944_v31 = vmul.f32 1.442695, %v4941_v14  ;;  %v4950_v36 = vmul.f32 1.442695, %v4947_v0  ;;  %v4956_v39 = vmul.f32 1.442695, %v4953_v24 }
 0x746   : > { %v4962_v4 = vmul.f32 1.442695, %v4959_v16  ;;  %v4960_v60 = vmul.f32 1.442695, %v4958_v48 }
 0x747   : > { %5601 = vpow2.f32 %v4944_v31 }
 0x748   : > { %5603 = vpow2.f32 %v4950_v36 }
 0x749   : > { %5605 = vpow2.f32 %v4942_v47 }
 0x74a   : > { %5607 = vpow2.f32 %v4956_v39 }
 0x74b   : > { %5609 = vpow2.f32 %v4948_v34 }
 0x74c   : > { %5611 = vpow2.f32 %v4962_v4 }
 0x74d   : > { %5613 = vpow2.f32 %v4954_v57 }
 0x74e   : > { %5615 = vpow2.f32 %v4960_v60 }
 0x754   : > { %v5602_v5 = vpop.eup %5601 }
 0x755   : > { %v5604_v41 = vpop.eup %5603 }
 0x756   : > { %v5606_v43 = vpop.eup %5605  ;;  %v4965_v2 = vadd.f32 %v5604_v41, %v5602_v5 }
 0x757   : > { %v5608_v1 = vpop.eup %5607 }
 0x758   : > { %v5610_v37 = vpop.eup %5609  ;;  %v4967_v13 = vadd.f32 %v5608_v1, %v4965_v2 }
 0x759   : > { %v5612_v7 = vpop.eup %5611  ;;  %v4964_v52 = vadd.f32 %v5610_v37, %v5606_v43 }
 0x75a   : > { %v5614_v15 = vpop.eup %5613  ;;  %v4969_v55 = vadd.f32 %v5612_v7, %v4967_v13 }
 0x75b   : > { %v4966_v49 = vadd.f32 %v5614_v15, %v4964_v52  ;;  %v5616_v22 = vpop.eup %5615 }
 0x75c   : > { %5617 = vrcp.f32 %v4969_v55 }
 0x75d   : > { %v4968_v9 = vadd.f32 %v5616_v22, %v4966_v49 }
 0x75f   : > { %5619 = vrcp.f32 %v4968_v9 }
 0x769   : > { %v5618_v32 = vpop.eup %5617 }
 0x76a   : > { %v4973_v23 = vmul.f32 %v5618_v32, %v5602_v5  ;;  %v4997_v45 = vmul.f32 %v5618_v32, %v5604_v41  ;;  %v5027_v10 = vmul.f32 %v5618_v32, %v5608_v1  ;;  %v5057_v46 = vmul.f32 %v5618_v32, %v5612_v7 }
 0x76c   : > { %v5620_v50 = vpop.eup %5619  ;;  %4981 = vperm.xlu1 %5434, %v4973_v23  }
 0x76d   : > { %v4972_v35 = vmul.f32 %v5620_v50, %v5606_v43  ;;  %v4996_v6 = vmul.f32 %v5620_v50, %v5610_v37  ;;  %v5026_v20 = vmul.f32 %v5620_v50, %v5614_v15  ;;  %v5056_v19 = vmul.f32 %v5620_v50, %v5616_v22 }
 0x76f   : > { %4976 = vperm.xlu0 %5433, %v4972_v35  }
 0x770   : > { %5006 = vperm.xlu1 %5434, %v4996_v6  }
 0x774   : > { %5011 = vperm.xlu1 %5434, %v4997_v45  }
 0x778   : > { %5036 = vperm.xlu1 %5434, %v5026_v20  }
 0x77c   : > { %5041 = vperm.xlu1 %5434, %v5027_v10  }
 0x780   : > { %5066 = vperm.xlu1 %5434, %v5056_v19  }
 0x784   : > { %5071 = vperm.xlu1 %5434, %v5057_v46  }
 0x7e7   : > { %v4982_v28 = vpop.permute.xlu1 %4981 }
 0x7e8   : > { %v4987_v14 = vmul.f32 %v4982_v28, %v8996_v40  ;;  %v4988_v0 = vmul.f32 %v4982_v28, %v9007_v59  ;;  %v4989_v24 = vmul.f32 %v4982_v28, %v9005_v12 }
 0x7ea   : > { %4993 = vst [vmem:[%s9160_s4 + $0x18] sm:$0xff] %v4987_v14  ;;  %4994 = vst [vmem:[%s9160_s4 + $0x20] sm:$0xff] %v4988_v0  ;;  %v4977_v33 = vpop.permute.xlu0 %4976 }
 0x7eb   : > { %4995 = vst [vmem:[%s9160_s4 + $0x28] sm:$0xff] %v4989_v24  ;;  %v4984_v16 = vmul.f32 %v4977_v33, %v8979_v61  ;;  %v4985_v31 = vmul.f32 %v4977_v33, %v8990_v21  ;;  %v4986_v36 = vmul.f32 %v4977_v33, %v8988_v42  ;;  %v5007_v40 = vpop.permute.xlu1 %5006 }
 0x7ec   : > { %v5014_v59 = vmul.f32 %v5007_v40, %v9013_v8  ;;  %v5015_v12 = vmul.f32 %v5007_v40, %v9024_v44  ;;  %v5016_v47 = vmul.f32 %v5007_v40, %v9022_v26 }
 0x7ed   : > { %4990 = vst [vmem:[%s9160_s4] sm:$0xff] %v4984_v16  ;;  %4991 = vst [vmem:[%s9160_s4 + $0x8] sm:$0xff] %v4985_v31 }
 0x7ee   : > { %4992 = vst [vmem:[%s9160_s4 + $0x10] sm:$0xff] %v4986_v36  ;;  %5020 = vst [vmem:[%s9160_s4 + $0x30] sm:$0xff] %v5014_v59 }
 0x7ef   : > { %5021 = vst [vmem:[%s9160_s4 + $0x38] sm:$0xff] %v5015_v12  ;;  %5022 = vst [vmem:[%s9160_s4 + $0x40] sm:$0xff] %v5016_v47  ;;  %v5012_v61 = vpop.permute.xlu1 %5011 }
 0x7f0   : > { %v5017_v42 = vmul.f32 %v5012_v61, %v9031_v38  ;;  %v5018_v21 = vmul.f32 %v5012_v61, %v9043_v29  ;;  %v5019_v8 = vmul.f32 %v5012_v61, %v9041_v30 }
 0x7f2   : > { %5023 = vst [vmem:[%s9160_s4 + $0x48] sm:$0xff] %v5017_v42  ;;  %5024 = vst [vmem:[%s9160_s4 + $0x50] sm:$0xff] %v5018_v21 }
 0x7f3   : > { %5025 = vst [vmem:[%s9160_s4 + $0x58] sm:$0xff] %v5019_v8  ;;  %v5037_v26 = vpop.permute.xlu1 %5036 }
 0x7f4   : > { %v5044_v44 = vmul.f32 %v5037_v26, %v9050_v3  ;;  %v5045_v62 = vmul.f32 %v5037_v26, %v9062_v27  ;;  %v5046_v39 = vmul.f32 %v5037_v26, %v9060_v58 }
 0x7f6   : > { %5050 = vst [vmem:[%s9160_s4 + $0x60] sm:$0xff] %v5044_v44  ;;  %5051 = vst [vmem:[%s9160_s4 + $0x68] sm:$0xff] %v5045_v62 }
 0x7f7   : > { %5052 = vst [vmem:[%s9160_s4 + $0x70] sm:$0xff] %v5046_v39  ;;  %v5042_v38 = vpop.permute.xlu1 %5041 }
 0x7f8   : > { %v5047_v30 = vmul.f32 %v5042_v38, %v9071_v17  ;;  %v5048_v29 = vmul.f32 %v5042_v38, %v9083_v51  ;;  %v5049_v34 = vmul.f32 %v5042_v38, %v9081_v25 }
 0x7fa   : > { %5053 = vst [vmem:[%s9160_s4 + $0x78] sm:$0xff] %v5047_v30  ;;  %5054 = vst [vmem:[%s9160_s4 + $0x80] sm:$0xff] %v5048_v29 }
 0x7fb   : > { %5055 = vst [vmem:[%s9160_s4 + $0x88] sm:$0xff] %v5049_v34  ;;  %v5067_v3 = vpop.permute.xlu1 %5066 }
 0x7fc   : > { %v5074_v58 = vmul.f32 %v5067_v3, %v9091_v53  ;;  %v5075_v27 = vmul.f32 %v5067_v3, %v9102_v18  ;;  %v5076_v48 = vmul.f32 %v5067_v3, %v9100_v63 }
 0x7fe   : > { %5080 = vst [vmem:[%s9160_s4 + $0x90] sm:$0xff] %v5074_v58  ;;  %5081 = vst [vmem:[%s9160_s4 + $0x98] sm:$0xff] %v5075_v27 }
 0x7ff   : > { %5082 = vst [vmem:[%s9160_s4 + $0xa0] sm:$0xff] %v5076_v48  ;;  %v5072_v17 = vpop.permute.xlu1 %5071 }
 0x800   : > { %v5077_v51 = vmul.f32 %v5072_v17, %v9107_v54  ;;  %v5078_v25 = vmul.f32 %v5072_v17, %v9116_v56  ;;  %v5079_v4 = vmul.f32 %v5072_v17, %v9114_v11 }
 0x802   : > { %5083 = vst [vmem:[%s9160_s4 + $0xa8] sm:$0xff] %v5077_v51  ;;  %5084 = vst [vmem:[%s9160_s4 + $0xb0] sm:$0xff] %v5078_v25 }
 0x803   : > { %5085 = vst [vmem:[%s9160_s4 + $0xb8] sm:$0xff] %v5079_v4 }
 0x804 PF: > { %s19_s26 = sadd.s32 1, %s5641_s26  }
 0x805   : > { %p16_p4 = scmp.ge.s32.totalorder %s19_s26, 4  }
 0x807   :  { %18 = sbr.rel (!%p16_p4) target bundleno = 3 (0x3), region = 86 }

</bundles_post_ra>
